<compile_context>
chip_gen: v7x
topology: tpu7x:2x2x1
jax: 0.10.0
libtpu: 0.0.40
codegen_flags: <defaults>
</compile_context>

<pallas_src>
import functools
import math

import jax
import jax.numpy as jnp
from jax.experimental import pallas as pl
from jax.experimental.pallas import tpu as pltpu


# ----------------------------------------------------------------------------
# Pallas kernel
# ----------------------------------------------------------------------------
def _layernorm(v, g, b, eps=1e-5):
    mu = jnp.mean(v, axis=-1, keepdims=True)
    var = jnp.mean((v - mu) ** 2, axis=-1, keepdims=True)
    return (v - mu) * jax.lax.rsqrt(var + eps) * g + b


def clip_encoder_kernel(
    x_ref,
    ln1_g_ref, ln1_b_ref,
    w_in_ref, b_in_ref,
    w_out_ref, b_out_ref,
    ln2_g_ref, ln2_b_ref,
    w1_ref, b1_ref,
    w2_ref, b2_ref,
    fln_g_ref, fln_b_ref,
    o_ref,
    state_ref,
    *, n_head, n_layers, gelu_bf16,
):
    layer = pl.program_id(1)

    # Load the embedding block into the resident activation carry at layer 0.
    @pl.when(layer == 0)
    def _init():
        state_ref[...] = x_ref[...]

    x = state_ref[...]                        # (Bt, S, D) float32
    Bt, S, D = x.shape
    H = n_head
    dh = D // H
    scale = 1.0 / math.sqrt(dh)

    # ------------------------- attention block ------------------------------
    h = _layernorm(x, ln1_g_ref[0], ln1_b_ref[0])            # f32
    h2d = h.astype(jnp.bfloat16).reshape(Bt * S, D)
    qkv = (jnp.dot(h2d, w_in_ref[0], preferred_element_type=jnp.float32)
           + b_in_ref[0])                                     # (Bt*S, 3D) f32

    # Fold 1/sqrt(dh) into q (f32) before the bf16 cast.
    q = (qkv[:, 0:D] * scale).reshape(Bt, S, H, dh)
    k = qkv[:, D:2 * D].reshape(Bt, S, H, dh)
    v = qkv[:, 2 * D:3 * D].reshape(Bt, S, H, dh)

    def to_heads(t):                          # (Bt,S,H,dh) -> (Bt*H,S,dh) bf16
        return (jnp.swapaxes(t, 1, 2)
                .reshape(Bt * H, S, dh)
                .astype(jnp.bfloat16))

    qh, kh, vh = to_heads(q), to_heads(k), to_heads(v)

    # Finite additive causal mask (no -inf -> no NaN path).
    row = jax.lax.broadcasted_iota(jnp.int32, (S, S), 0)
    col = jax.lax.broadcasted_iota(jnp.int32, (S, S), 1)
    mask_add = jnp.where(col > row, jnp.float32(-1e30), jnp.float32(0.0))

    # Single batched attention over the flattened (Bt*H) batch dim.
    s = jnp.einsum('bqd,bkd->bqk', qh, kh,
                   preferred_element_type=jnp.float32)        # (Bt*H, S, S)
    s = s + mask_add[None]
    p = jnp.exp(s - jnp.max(s, axis=-1, keepdims=True))
    p = p * pl.reciprocal(jnp.sum(p, axis=-1, keepdims=True), approx=True)
    oh = jnp.einsum('bqk,bkd->bqd', p.astype(jnp.bfloat16), vh,
                    preferred_element_type=jnp.float32)       # (Bt*H, S, dh)
    attn = jnp.swapaxes(oh.reshape(Bt, H, S, dh), 1, 2).reshape(Bt, S, D)

    attn2d = attn.astype(jnp.bfloat16).reshape(Bt * S, D)
    attn_proj = (jnp.dot(attn2d, w_out_ref[0], preferred_element_type=jnp.float32)
                 + b_out_ref[0]).reshape(Bt, S, D)
    x1 = x + attn_proj

    # ---------------------------- MLP block ---------------------------------
    g = _layernorm(x1, ln2_g_ref[0], ln2_b_ref[0])
    g2d = g.astype(jnp.bfloat16).reshape(Bt * S, D)
    hid = (jnp.dot(g2d, w1_ref[0], preferred_element_type=jnp.float32)
           + b1_ref[0])                                       # (Bt*S, 4D)
    if gelu_bf16:
        hid = hid.astype(jnp.bfloat16)        # bf16 VPU/EUP path (v6e/v7x)
    hid = hid * jax.nn.sigmoid(1.702 * hid)   # quick-GELU
    mlp = (jnp.dot(hid.astype(jnp.bfloat16), w2_ref[0],
                   preferred_element_type=jnp.float32) + b2_ref[0])
    x2 = x1 + mlp.reshape(Bt, S, D)

    state_ref[...] = x2                       # carry to next layer

    # Final LayerNorm fused into the last layer step.
    @pl.when(layer == n_layers - 1)
    def _final():
        o_ref[...] = _layernorm(x2, fln_g_ref[...], fln_b_ref[...])


# ----------------------------------------------------------------------------
# Chip / tiling heuristics
# ----------------------------------------------------------------------------
def _tpu_setup():
    kind = ""
    try:
        kind = jax.devices()[0].device_kind.lower()
    except Exception:
        pass
    try:
        info = pltpu.get_tpu_info()
        vmem_phys = int(getattr(info, "vmem_capacity_bytes", 64 * 1024 * 1024))
    except Exception:
        vmem_phys = 64 * 1024 * 1024          # conservative fallback
    is_v5e = ("v5 lite" in kind) or ("v5e" in kind) or ("v5lite" in kind)
    is_v7 = "v7" in kind                      # dual-TensorCore chips
    return vmem_phys, is_v5e, is_v7


def _per_batch_elem_bytes(S, D, H, gelu_bf16):
    """Rough VMEM bytes of in-kernel intermediates per batch element."""
    f32 = 4
    state = S * D * f32                       # activation carry
    io = 2 * 2 * S * D * f32                  # in/out blocks (double-buffered)
    qkv = S * 3 * D * f32
    heads = 3 * S * D * 2                     # bf16 q/k/v head views
    scores = 2 * H * S * S * f32              # scores + probs
    hidden = S * 4 * D * (2 if gelu_bf16 else f32) + S * 4 * D * 2
    return state + io + qkv + heads + scores + hidden


def _pick_block_b(B, S, D, H, vmem_limit, gelu_bf16, two_tc):
    """Largest batch block that fits the VMEM budget (weights + activations)."""
    # double-buffered bf16 per-layer weights (12*D^2 params) + small biases/LN
    weight_bytes = 2 * (12 * D * D * 2 + 14 * D * 4)
    budget = vmem_limit - weight_bytes - (4 << 20)   # safety margin
    per_b = _per_batch_elem_bytes(S, D, H, gelu_bf16)
    cap = max(1, budget // per_b)
    bt = int(min(B, min(cap, 16)))
    if two_tc:
        # Keep >=2 batch blocks only where there are 2 TensorCores to feed.
        n_blocks = -(-B // bt)
        if n_blocks < 2 and B >= 2:
            bt = -(-B // 2)
    return max(1, bt)


# ----------------------------------------------------------------------------
# Wrappers
# ----------------------------------------------------------------------------
def clip_encoder(x, params, n_head):
    """x: (B, S, D) float32 (S already padded to a multiple of 16)."""
    B, S, D = x.shape
    L = params["w_in"].shape[0]

    vmem_phys, is_v5e, is_v7 = _tpu_setup()
    vmem_limit = min(int(vmem_phys * 0.85), 110 * 1024 * 1024)
    gelu_bf16 = not is_v5e                    # v5e has no bf16 VPU/EUP

    Bt = _pick_block_b(B, S, D, n_head, vmem_limit, gelu_bf16, two_tc=is_v7)
    B_pad = -(-B // Bt) * Bt
    if B_pad != B:
        x = jnp.pad(x, ((0, B_pad - B), (0, 0), (0, 0)))

    weights = (
        params["ln1_g"], params["ln1_b"],
        params["w_in"], params["b_in"],
        params["w_out"], params["b_out"],
        params["ln2_g"], params["ln2_b"],
        params["w1"], params["b1"],
        params["w2"], params["b2"],
    )

    def wmap(b, l):                 # per-layer stacked weights: block l
        return (l, 0, 0)

    def cmap(b, l):                 # constant (final LN) params
        return (0, 0)

    in_specs = [pl.BlockSpec((Bt, S, D), lambda b, l: (b, 0, 0))]
    in_specs += [pl.BlockSpec((1,) + w.shape[1:], wmap) for w in weights]
    in_specs += [pl.BlockSpec(params["final_ln_g"].shape, cmap),
                 pl.BlockSpec(params["final_ln_b"].shape, cmap)]

    out = pl.pallas_call(
        functools.partial(clip_encoder_kernel, n_head=n_head, n_layers=L,
                          gelu_bf16=gelu_bf16),
        out_shape=jax.ShapeDtypeStruct((B_pad, S, D), jnp.float32),
        grid_spec=pltpu.PrefetchScalarGridSpec(
            num_scalar_prefetch=0,
            grid=(B_pad // Bt, L),
            in_specs=in_specs,
            out_specs=pl.BlockSpec((Bt, S, D), lambda b, l: (b, 0, 0)),
            scratch_shapes=[pltpu.VMEM((Bt, S, D), jnp.float32)],
        ),
        compiler_params=pltpu.CompilerParams(
            dimension_semantics=("parallel", "arbitrary"),
            vmem_limit_bytes=vmem_limit,
        ),
    )(x, *weights, params["final_ln_g"], params["final_ln_b"])

    return out[:B] if B_pad != B else out


def clip_forward(tokens, params, n_head):
    """tokens: (B, S) int32 -> (B, S, D) float32."""
    # TODO(synk): token-embedding row gather is data-dependent and stays in
    # plain JAX (glue); the matmul/attention/norm hot path is all in Pallas.
    B, S = tokens.shape
    x = params["token_embedding"][tokens] + params["position_embedding"][None, :S]
    x = x.astype(jnp.float32)

    # Pad S to a multiple of 16 (bf16 sublane tiling); the causal mask hides
    # pad keys from real query rows, pad rows are sliced off.
    S_pad = ((S + 15) // 16) * 16
    if S_pad != S:
        x = jnp.pad(x, ((0, 0), (0, S_pad - S), (0, 0)))

    out = clip_encoder(x, params, n_head)
    return out[:, :S] if S_pad != S else out


# ----------------------------------------------------------------------------
# Pure-JAX reference (for tolerance-asserted correctness)
# ----------------------------------------------------------------------------
def clip_forward_ref(tokens, params, n_head):
    B, S = tokens.shape
    x = params["token_embedding"][tokens] + params["position_embedding"][None, :S]
    x = x.astype(jnp.float32)
    D = x.shape[-1]
    H = n_head
    dh = D // H
    L = params["w_in"].shape[0]
    mask = jnp.triu(jnp.ones((S, S), bool), k=1)

    def ln(v, g, b):
        mu = v.mean(-1, keepdims=True)
        var = ((v - mu) ** 2).mean(-1, keepdims=True)
        return (v - mu) / jnp.sqrt(var + 1e-5) * g + b

    for l in range(L):
        h = ln(x, params["ln1_g"][l], params["ln1_b"][l])
        qkv = h @ params["w_in"][l].astype(jnp.float32) + params["b_in"][l]
        q, k, v = jnp.split(qkv, 3, axis=-1)
        q = q.reshape(B, S, H, dh).transpose(0, 2, 1, 3)
        k = k.reshape(B, S, H, dh).transpose(0, 2, 1, 3)
        v = v.reshape(B, S, H, dh).transpose(0, 2, 1, 3)
        s = (q @ jnp.swapaxes(k, -1, -2)) / jnp.sqrt(dh)
        s = jnp.where(mask, -jnp.inf, s)
        p = jax.nn.softmax(s, axis=-1)
        o = (p @ v).transpose(0, 2, 1, 3).reshape(B, S, D)
        o = o @ params["w_out"][l].astype(jnp.float32) + params["b_out"][l]
        x = x + o
        h = ln(x, params["ln2_g"][l], params["ln2_b"][l])
        h = h @ params["w1"][l].astype(jnp.float32) + params["b1"][l]
        h = h * jax.nn.sigmoid(1.702 * h)
        h = h @ params["w2"][l].astype(jnp.float32) + params["b2"][l]
        x = x + h
    return ln(x, params["final_ln_g"], params["final_ln_b"])


# ----------------------------------------------------------------------------
# Deterministic parameter construction (synthetic, no checkpoint)
# ----------------------------------------------------------------------------
def make_params(key, n_vocab, n_embed, n_tokens, n_layers):
    D, L = n_embed, n_layers
    std = 0.02
    keys = jax.random.split(key, 6)

    def w(k, shape):   # matmul weights stored in bf16 (halved HBM/VMEM traffic)
        return (std * jax.random.normal(k, shape, jnp.float32)).astype(jnp.bfloat16)

    return {
        "token_embedding": std * jax.random.normal(keys[0], (n_vocab, D), jnp.float32),
        "position_embedding": std * jax.random.normal(keys[1], (n_tokens, D), jnp.float32),
        "ln1_g": jnp.ones((L, 1, D), jnp.float32),
        "ln1_b": jnp.zeros((L, 1, D), jnp.float32),
        "w_in": w(keys[2], (L, D, 3 * D)),
        "b_in": jnp.zeros((L, 1, 3 * D), jnp.float32),
        "w_out": w(keys[3], (L, D, D)),
        "b_out": jnp.zeros((L, 1, D), jnp.float32),
        "ln2_g": jnp.ones((L, 1, D), jnp.float32),
        "ln2_b": jnp.zeros((L, 1, D), jnp.float32),
        "w1": w(keys[4], (L, D, 4 * D)),
        "b1": jnp.zeros((L, 1, 4 * D), jnp.float32),
        "w2": w(keys[5], (L, 4 * D, D)),
        "b2": jnp.zeros((L, 1, D), jnp.float32),
        "final_ln_g": jnp.ones((1, D), jnp.float32),
        "final_ln_b": jnp.zeros((1, D), jnp.float32),
    }


# ----------------------------------------------------------------------------
if __name__ == "__main__":
    # Small shapes consistent with CLIP (49408 vocab, 768 dim, 77 tokens,
    # 12 heads, 12 layers) scaled down for a quick synthetic run.
    B, S, D, H, V, L = 2, 16, 64, 4, 512, 2

    key = jax.random.PRNGKey(0)
    key, k_tok = jax.random.split(key)
    params = make_params(key, n_vocab=V, n_embed=D, n_tokens=S, n_layers=L)
    tokens = jax.random.randint(k_tok, (B, S), 0, V, dtype=jnp.int32)

    out = jax.block_until_ready(clip_forward(tokens, params, n_head=H))
    ref = jax.block_until_ready(clip_forward_ref(tokens, params, n_head=H))

    assert out.shape == (B, S, D) and out.dtype == jnp.float32
    assert bool(jnp.all(jnp.isfinite(out)))
    max_err = float(jnp.max(jnp.abs(out - ref)))
    assert max_err < 0.2, f"max abs error vs reference: {max_err}"
    print("KERNEL_OK")
</pallas_src>

<mosaic_0001>
module attributes {stable_mosaic.version = 11 : i64} {
  func.func @clip_encoder_kernel(%arg0: i32, %arg1: i32, %arg2: memref<2x16x64xf32, #tpu.memory_space<vmem>>, %arg3: memref<1x1x64xf32, #tpu.memory_space<vmem>>, %arg4: memref<1x1x64xf32, #tpu.memory_space<vmem>>, %arg5: memref<1x64x192xbf16, #tpu.memory_space<vmem>>, %arg6: memref<1x1x192xf32, #tpu.memory_space<vmem>>, %arg7: memref<1x64x64xbf16, #tpu.memory_space<vmem>>, %arg8: memref<1x1x64xf32, #tpu.memory_space<vmem>>, %arg9: memref<1x1x64xf32, #tpu.memory_space<vmem>>, %arg10: memref<1x1x64xf32, #tpu.memory_space<vmem>>, %arg11: memref<1x64x256xbf16, #tpu.memory_space<vmem>>, %arg12: memref<1x1x256xf32, #tpu.memory_space<vmem>>, %arg13: memref<1x256x64xbf16, #tpu.memory_space<vmem>>, %arg14: memref<1x1x64xf32, #tpu.memory_space<vmem>>, %arg15: memref<1x64xf32, #tpu.memory_space<vmem>>, %arg16: memref<1x64xf32, #tpu.memory_space<vmem>>, %arg17: memref<2x16x64xf32, #tpu.memory_space<vmem>>, %arg18: memref<2x16x64xf32, #tpu.memory_space<vmem>>) attributes {dimension_semantics = [#tpu.dimension_semantics<parallel>, #tpu.dimension_semantics<arbitrary>], iteration_bounds = array<i64: 1, 2>, scalar_prefetch = 0 : i64, scratch_operands = 1 : i64, tpu.core_type = #tpu.core_type<tc>, window_params = [{transform_indices = @transform_0, window_bounds = array<i64: 2, 16, 64>}, {transform_indices = @transform_1, window_bounds = array<i64: 1, 1, 64>}, {transform_indices = @transform_2, window_bounds = array<i64: 1, 1, 64>}, {transform_indices = @transform_3, window_bounds = array<i64: 1, 64, 192>}, {transform_indices = @transform_4, window_bounds = array<i64: 1, 1, 192>}, {transform_indices = @transform_5, window_bounds = array<i64: 1, 64, 64>}, {transform_indices = @transform_6, window_bounds = array<i64: 1, 1, 64>}, {transform_indices = @transform_7, window_bounds = array<i64: 1, 1, 64>}, {transform_indices = @transform_8, window_bounds = array<i64: 1, 1, 64>}, {transform_indices = @transform_9, window_bounds = array<i64: 1, 64, 256>}, {transform_indices = @transform_10, window_bounds = array<i64: 1, 1, 256>}, {transform_indices = @transform_11, window_bounds = array<i64: 1, 256, 64>}, {transform_indices = @transform_12, window_bounds = array<i64: 1, 1, 64>}, {pipeline_mode = #tpu.pipeline_mode<synchronous>, transform_indices = @transform_13, window_bounds = array<i64: 1, 64>}, {pipeline_mode = #tpu.pipeline_mode<synchronous>, transform_indices = @transform_14, window_bounds = array<i64: 1, 64>}, {transform_indices = @transform_15, window_bounds = array<i64: 2, 16, 64>}]} {
    %c0_i32 = arith.constant 0 : i32
    %0 = arith.cmpi eq, %arg1, %c0_i32 : i32
    %1 = arith.extui %0 : i1 to i32
    %c0_i32_0 = arith.constant 0 : i32
    %2 = arith.cmpi ne, %1, %c0_i32_0 : i32
    scf.if %2 {
      %c0_65 = arith.constant 0 : index
      %c0_66 = arith.constant 0 : index
      %c0_67 = arith.constant 0 : index
      %153 = vector.load %arg2[%c0_65, %c0_66, %c0_67] : memref<2x16x64xf32, #tpu.memory_space<vmem>>, vector<2x16x64xf32>
      %c0_68 = arith.constant 0 : index
      %c0_69 = arith.constant 0 : index
      %c0_70 = arith.constant 0 : index
      %154 = vector.load %arg18[%c0_68, %c0_69, %c0_70] : memref<2x16x64xf32, #tpu.memory_space<vmem>>, vector<2x16x64xf32>
      tpu.vector_store %arg18[%c0_68, %c0_69, %c0_70], %153 {strides = array<i32>} : memref<2x16x64xf32, #tpu.memory_space<vmem>>, vector<2x16x64xf32>,
    } else {
    }
    %c0 = arith.constant 0 : index
    %c0_1 = arith.constant 0 : index
    %c0_2 = arith.constant 0 : index
    %3 = vector.load %arg18[%c0, %c0_1, %c0_2] : memref<2x16x64xf32, #tpu.memory_space<vmem>>, vector<2x16x64xf32>
    %c0_3 = arith.constant 0 : index
    %c0_4 = arith.constant 0 : index
    %c0_5 = arith.constant 0 : index
    %4 = vector.load %arg3[%c0_3, %c0_4, %c0_5] : memref<1x1x64xf32, #tpu.memory_space<vmem>>, vector<1x1x64xf32>
    %5 = vector.shape_cast %4 : vector<1x1x64xf32> to vector<1x64xf32>
    %c0_6 = arith.constant 0 : index
    %c0_7 = arith.constant 0 : index
    %c0_8 = arith.constant 0 : index
    %6 = vector.load %arg4[%c0_6, %c0_7, %c0_8] : memref<1x1x64xf32, #tpu.memory_space<vmem>>, vector<1x1x64xf32>
    %7 = vector.shape_cast %6 : vector<1x1x64xf32> to vector<1x64xf32>
    %cst = arith.constant dense<0.000000e+00> : vector<2x16xf32>
    %8 = vector.multi_reduction <add>, %3, %cst [2] : vector<2x16x64xf32> to vector<2x16xf32>
    %9 = vector.shape_cast %8 : vector<2x16xf32> to vector<2x16x1xf32>
    %cst_9 = arith.constant 6.400000e+01 : f32
    %10 = vector.broadcast %cst_9 : f32 to vector<2x16x1xf32>
    %11 = arith.divf %9, %10 : vector<2x16x1xf32>
    %12 = vector.broadcast %11 : vector<2x16x1xf32> to vector<2x16x64xf32>
    %13 = arith.subf %3, %12 : vector<2x16x64xf32>
    %14 = arith.mulf %13, %13 : vector<2x16x64xf32>
    %cst_10 = arith.constant dense<0.000000e+00> : vector<2x16xf32>
    %15 = vector.multi_reduction <add>, %14, %cst_10 [2] : vector<2x16x64xf32> to vector<2x16xf32>
    %16 = vector.shape_cast %15 : vector<2x16xf32> to vector<2x16x1xf32>
    %cst_11 = arith.constant 6.400000e+01 : f32
    %17 = vector.broadcast %cst_11 : f32 to vector<2x16x1xf32>
    %18 = arith.divf %16, %17 : vector<2x16x1xf32>
    %19 = vector.broadcast %11 : vector<2x16x1xf32> to vector<2x16x64xf32>
    %20 = arith.subf %3, %19 : vector<2x16x64xf32>
    %cst_12 = arith.constant 9.99999974E-6 : f32
    %21 = vector.broadcast %cst_12 : f32 to vector<2x16x1xf32>
    %22 = arith.addf %18, %21 : vector<2x16x1xf32>
    %23 = math.rsqrt %22 : vector<2x16x1xf32>
    %24 = vector.broadcast %23 : vector<2x16x1xf32> to vector<2x16x64xf32>
    %25 = arith.mulf %20, %24 : vector<2x16x64xf32>
    %26 = vector.shape_cast %5 : vector<1x64xf32> to vector<1x1x64xf32>
    %27 = vector.broadcast %26 : vector<1x1x64xf32> to vector<2x16x64xf32>
    %28 = arith.mulf %25, %27 : vector<2x16x64xf32>
    %29 = vector.shape_cast %7 : vector<1x64xf32> to vector<1x1x64xf32>
    %30 = vector.broadcast %29 : vector<1x1x64xf32> to vector<2x16x64xf32>
    %31 = arith.addf %28, %30 : vector<2x16x64xf32>
    %32 = arith.truncf %31 : vector<2x16x64xf32> to vector<2x16x64xbf16>
    %33 = vector.shape_cast %32 : vector<2x16x64xbf16> to vector<32x64xbf16>
    %c0_13 = arith.constant 0 : index
    %c0_14 = arith.constant 0 : index
    %c0_15 = arith.constant 0 : index
    %34 = vector.load %arg5[%c0_13, %c0_14, %c0_15] : memref<1x64x192xbf16, #tpu.memory_space<vmem>>, vector<1x64x192xbf16>
    %35 = vector.shape_cast %34 : vector<1x64x192xbf16> to vector<64x192xbf16>
    %cst_16 = arith.constant dense<0.000000e+00> : vector<32x192xf32>
    %36 = tpu.matmul %33, %35, %cst_16 {dimension_numbers = #tpu.dot_dimension_numbers<[1], [0], [0], [1], [0, 0, 1, 1], [], []>} : vector<32x64xbf16>, vector<64x192xbf16>, vector<32x192xf32> -> vector<32x192xf32>
    %c0_17 = arith.constant 0 : index
    %c0_18 = arith.constant 0 : index
    %c0_19 = arith.constant 0 : index
    %37 = vector.load %arg6[%c0_17, %c0_18, %c0_19] : memref<1x1x192xf32, #tpu.memory_space<vmem>>, vector<1x1x192xf32>
    %38 = vector.shape_cast %37 : vector<1x1x192xf32> to vector<1x192xf32>
    %39 = vector.broadcast %38 : vector<1x192xf32> to vector<32x192xf32>
    %40 = arith.addf %36, %39 : vector<32x192xf32>
    %41 = vector.extract_strided_slice %40 {offsets = [0, 0], sizes = [32, 64], strides = [1, 1]} : vector<32x192xf32> to vector<32x64xf32>
    %cst_20 = arith.constant 2.500000e-01 : f32
    %42 = vector.broadcast %cst_20 : f32 to vector<32x64xf32>
    %43 = arith.mulf %41, %42 : vector<32x64xf32>
    %44 = vector.shape_cast %43 : vector<32x64xf32> to vector<2x16x4x16xf32>
    %45 = vector.extract_strided_slice %40 {offsets = [0, 64], sizes = [32, 64], strides = [1, 1]} : vector<32x192xf32> to vector<32x64xf32>
    %46 = vector.shape_cast %45 : vector<32x64xf32> to vector<2x16x4x16xf32>
    %47 = vector.extract_strided_slice %40 {offsets = [0, 128], sizes = [32, 64], strides = [1, 1]} : vector<32x192xf32> to vector<32x64xf32>
    %48 = vector.shape_cast %47 : vector<32x64xf32> to vector<2x16x4x16xf32>
    %49 = tpu.transpose %44, [0, 2, 1, 3] : vector<2x16x4x16xf32> -> vector<2x4x16x16xf32>
    %50 = vector.shape_cast %49 : vector<2x4x16x16xf32> to vector<8x16x16xf32>
    %51 = arith.truncf %50 : vector<8x16x16xf32> to vector<8x16x16xbf16>
    %52 = tpu.transpose %46, [0, 2, 1, 3] : vector<2x16x4x16xf32> -> vector<2x4x16x16xf32>
    %53 = vector.shape_cast %52 : vector<2x4x16x16xf32> to vector<8x16x16xf32>
    %54 = arith.truncf %53 : vector<8x16x16xf32> to vector<8x16x16xbf16>
    %55 = tpu.transpose %48, [0, 2, 1, 3] : vector<2x16x4x16xf32> -> vector<2x4x16x16xf32>
    %56 = vector.shape_cast %55 : vector<2x4x16x16xf32> to vector<8x16x16xf32>
    %57 = arith.truncf %56 : vector<8x16x16xf32> to vector<8x16x16xbf16>
    %58 = tpu.iota {dimensions = array<i32: 0>} : vector<16x16xi32>
    %59 = tpu.iota {dimensions = array<i32: 1>} : vector<16x16xi32>
    %60 = arith.cmpi sgt, %59, %58 : vector<16x16xi32>
    %cst_21 = arith.constant -1.000000e+30 : f32
    %cst_22 = arith.constant 0.000000e+00 : f32
    %61 = vector.broadcast %cst_21 : f32 to vector<16x16xf32>
    %62 = vector.broadcast %cst_22 : f32 to vector<16x16xf32>
    %63 = arith.select %60, %61, %62 : vector<16x16xi1>, vector<16x16xf32>
    "tpu.trace_start"() <{level = 10 : i32, message = "bqd,bkd->bqk"}> : () -> ()
    %cst_23 = arith.constant dense<0.000000e+00> : vector<8x16x16xf32>
    %64 = tpu.matmul %51, %54, %cst_23 {dimension_numbers = #tpu.dot_dimension_numbers<[2], [2], [1], [1], [0, 0, 0, 1, 1, 1], [0], [0]>} : vector<8x16x16xbf16>, vector<8x16x16xbf16>, vector<8x16x16xf32> -> vector<8x16x16xf32>
    "tpu.trace_stop"() : () -> ()
    %65 = vector.shape_cast %63 : vector<16x16xf32> to vector<1x16x16xf32>
    %66 = vector.broadcast %65 : vector<1x16x16xf32> to vector<8x16x16xf32>
    %67 = arith.addf %64, %66 : vector<8x16x16xf32>
    %cst_24 = arith.constant dense<0xFF800000> : vector<8x16xf32>
    %68 = vector.multi_reduction <maximumf>, %67, %cst_24 [2] : vector<8x16x16xf32> to vector<8x16xf32>
    %69 = vector.shape_cast %68 : vector<8x16xf32> to vector<8x16x1xf32>
    %70 = vector.broadcast %69 : vector<8x16x1xf32> to vector<8x16x16xf32>
    %71 = arith.subf %67, %70 : vector<8x16x16xf32>
    %72 = math.exp %71 : vector<8x16x16xf32>
    %cst_25 = arith.constant dense<0.000000e+00> : vector<8x16xf32>
    %73 = vector.multi_reduction <add>, %72, %cst_25 [2] : vector<8x16x16xf32> to vector<8x16xf32>
    %74 = vector.shape_cast %73 : vector<8x16xf32> to vector<8x16x1xf32>
    %75 = tpu.reciprocal %74 {approx = true} : vector<8x16x1xf32> -> vector<8x16x1xf32>
    %76 = vector.broadcast %75 : vector<8x16x1xf32> to vector<8x16x16xf32>
    %77 = arith.mulf %72, %76 : vector<8x16x16xf32>
    %78 = arith.truncf %77 : vector<8x16x16xf32> to vector<8x16x16xbf16>
    "tpu.trace_start"() <{level = 10 : i32, message = "bqk,bkd->bqd"}> : () -> ()
    %cst_26 = arith.constant dense<0.000000e+00> : vector<8x16x16xf32>
    %79 = tpu.matmul %78, %57, %cst_26 {dimension_numbers = #tpu.dot_dimension_numbers<[2], [1], [1], [2], [0, 0, 0, 1, 1, 2], [0], [0]>} : vector<8x16x16xbf16>, vector<8x16x16xbf16>, vector<8x16x16xf32> -> vector<8x16x16xf32>
    "tpu.trace_stop"() : () -> ()
    %80 = vector.shape_cast %79 : vector<8x16x16xf32> to vector<2x4x16x16xf32>
    %81 = tpu.transpose %80, [0, 2, 1, 3] : vector<2x4x16x16xf32> -> vector<2x16x4x16xf32>
    %82 = vector.shape_cast %81 : vector<2x16x4x16xf32> to vector<2x16x64xf32>
    %83 = arith.truncf %82 : vector<2x16x64xf32> to vector<2x16x64xbf16>
    %84 = vector.shape_cast %83 : vector<2x16x64xbf16> to vector<32x64xbf16>
    %c0_27 = arith.constant 0 : index
    %c0_28 = arith.constant 0 : index
    %c0_29 = arith.constant 0 : index
    %85 = vector.load %arg7[%c0_27, %c0_28, %c0_29] : memref<1x64x64xbf16, #tpu.memory_space<vmem>>, vector<1x64x64xbf16>
    %86 = vector.shape_cast %85 : vector<1x64x64xbf16> to vector<64x64xbf16>
    %cst_30 = arith.constant dense<0.000000e+00> : vector<32x64xf32>
    %87 = tpu.matmul %84, %86, %cst_30 {dimension_numbers = #tpu.dot_dimension_numbers<[1], [0], [0], [1], [0, 0, 1, 1], [], []>} : vector<32x64xbf16>, vector<64x64xbf16>, vector<32x64xf32> -> vector<32x64xf32>
    %c0_31 = arith.constant 0 : index
    %c0_32 = arith.constant 0 : index
    %c0_33 = arith.constant 0 : index
    %88 = vector.load %arg8[%c0_31, %c0_32, %c0_33] : memref<1x1x64xf32, #tpu.memory_space<vmem>>, vector<1x1x64xf32>
    %89 = vector.shape_cast %88 : vector<1x1x64xf32> to vector<1x64xf32>
    %90 = vector.broadcast %89 : vector<1x64xf32> to vector<32x64xf32>
    %91 = arith.addf %87, %90 : vector<32x64xf32>
    %92 = vector.shape_cast %91 : vector<32x64xf32> to vector<2x16x64xf32>
    %93 = arith.addf %3, %92 : vector<2x16x64xf32>
    %c0_34 = arith.constant 0 : index
    %c0_35 = arith.constant 0 : index
    %c0_36 = arith.constant 0 : index
    %94 = vector.load %arg9[%c0_34, %c0_35, %c0_36] : memref<1x1x64xf32, #tpu.memory_space<vmem>>, vector<1x1x64xf32>
    %95 = vector.shape_cast %94 : vector<1x1x64xf32> to vector<1x64xf32>
    %c0_37 = arith.constant 0 : index
    %c0_38 = arith.constant 0 : index
    %c0_39 = arith.constant 0 : index
    %96 = vector.load %arg10[%c0_37, %c0_38, %c0_39] : memref<1x1x64xf32, #tpu.memory_space<vmem>>, vector<1x1x64xf32>
    %97 = vector.shape_cast %96 : vector<1x1x64xf32> to vector<1x64xf32>
    %cst_40 = arith.constant dense<0.000000e+00> : vector<2x16xf32>
    %98 = vector.multi_reduction <add>, %93, %cst_40 [2] : vector<2x16x64xf32> to vector<2x16xf32>
    %99 = vector.shape_cast %98 : vector<2x16xf32> to vector<2x16x1xf32>
    %cst_41 = arith.constant 6.400000e+01 : f32
    %100 = vector.broadcast %cst_41 : f32 to vector<2x16x1xf32>
    %101 = arith.divf %99, %100 : vector<2x16x1xf32>
    %102 = vector.broadcast %101 : vector<2x16x1xf32> to vector<2x16x64xf32>
    %103 = arith.subf %93, %102 : vector<2x16x64xf32>
    %104 = arith.mulf %103, %103 : vector<2x16x64xf32>
    %cst_42 = arith.constant dense<0.000000e+00> : vector<2x16xf32>
    %105 = vector.multi_reduction <add>, %104, %cst_42 [2] : vector<2x16x64xf32> to vector<2x16xf32>
    %106 = vector.shape_cast %105 : vector<2x16xf32> to vector<2x16x1xf32>
    %cst_43 = arith.constant 6.400000e+01 : f32
    %107 = vector.broadcast %cst_43 : f32 to vector<2x16x1xf32>
    %108 = arith.divf %106, %107 : vector<2x16x1xf32>
    %109 = vector.broadcast %101 : vector<2x16x1xf32> to vector<2x16x64xf32>
    %110 = arith.subf %93, %109 : vector<2x16x64xf32>
    %cst_44 = arith.constant 9.99999974E-6 : f32
    %111 = vector.broadcast %cst_44 : f32 to vector<2x16x1xf32>
    %112 = arith.addf %108, %111 : vector<2x16x1xf32>
    %113 = math.rsqrt %112 : vector<2x16x1xf32>
    %114 = vector.broadcast %113 : vector<2x16x1xf32> to vector<2x16x64xf32>
    %115 = arith.mulf %110, %114 : vector<2x16x64xf32>
    %116 = vector.shape_cast %95 : vector<1x64xf32> to vector<1x1x64xf32>
    %117 = vector.broadcast %116 : vector<1x1x64xf32> to vector<2x16x64xf32>
    %118 = arith.mulf %115, %117 : vector<2x16x64xf32>
    %119 = vector.shape_cast %97 : vector<1x64xf32> to vector<1x1x64xf32>
    %120 = vector.broadcast %119 : vector<1x1x64xf32> to vector<2x16x64xf32>
    %121 = arith.addf %118, %120 : vector<2x16x64xf32>
    %122 = arith.truncf %121 : vector<2x16x64xf32> to vector<2x16x64xbf16>
    %123 = vector.shape_cast %122 : vector<2x16x64xbf16> to vector<32x64xbf16>
    %c0_45 = arith.constant 0 : index
    %c0_46 = arith.constant 0 : index
    %c0_47 = arith.constant 0 : index
    %124 = vector.load %arg11[%c0_45, %c0_46, %c0_47] : memref<1x64x256xbf16, #tpu.memory_space<vmem>>, vector<1x64x256xbf16>
    %125 = vector.shape_cast %124 : vector<1x64x256xbf16> to vector<64x256xbf16>
    %cst_48 = arith.constant dense<0.000000e+00> : vector<32x256xf32>
    %126 = tpu.matmul %123, %125, %cst_48 {dimension_numbers = #tpu.dot_dimension_numbers<[1], [0], [0], [1], [0, 0, 1, 1], [], []>} : vector<32x64xbf16>, vector<64x256xbf16>, vector<32x256xf32> -> vector<32x256xf32>
    %c0_49 = arith.constant 0 : index
    %c0_50 = arith.constant 0 : index
    %c0_51 = arith.constant 0 : index
    %127 = vector.load %arg12[%c0_49, %c0_50, %c0_51] : memref<1x1x256xf32, #tpu.memory_space<vmem>>, vector<1x1x256xf32>
    %128 = vector.shape_cast %127 : vector<1x1x256xf32> to vector<1x256xf32>
    %129 = vector.broadcast %128 : vector<1x256xf32> to vector<32x256xf32>
    %130 = arith.addf %126, %129 : vector<32x256xf32>
    %131 = arith.truncf %130 : vector<32x256xf32> to vector<32x256xbf16>
    %cst_52 = arith.constant 1.703130e+00 : bf16
    %132 = vector.broadcast %cst_52 : bf16 to vector<32x256xbf16>
    %133 = arith.mulf %132, %131 : vector<32x256xbf16>
    %134 = arith.negf %133 : vector<32x256xbf16>
    %135 = math.exp %134 : vector<32x256xbf16>
    %cst_53 = arith.constant 1.000000e+00 : bf16
    %136 = vector.broadcast %cst_53 : bf16 to vector<32x256xbf16>
    %137 = arith.addf %136, %135 : vector<32x256xbf16>
    %138 = arith.divf %136, %137 : vector<32x256xbf16>
    %139 = arith.mulf %131, %138 : vector<32x256xbf16>
    %c0_54 = arith.constant 0 : index
    %c0_55 = arith.constant 0 : index
    %c0_56 = arith.constant 0 : index
    %140 = vector.load %arg13[%c0_54, %c0_55, %c0_56] : memref<1x256x64xbf16, #tpu.memory_space<vmem>>, vector<1x256x64xbf16>
    %141 = vector.shape_cast %140 : vector<1x256x64xbf16> to vector<256x64xbf16>
    %cst_57 = arith.constant dense<0.000000e+00> : vector<32x64xf32>
    %142 = tpu.matmul %139, %141, %cst_57 {dimension_numbers = #tpu.dot_dimension_numbers<[1], [0], [0], [1], [0, 0, 1, 1], [], []>} : vector<32x256xbf16>, vector<256x64xbf16>, vector<32x64xf32> -> vector<32x64xf32>
    %c0_58 = arith.constant 0 : index
    %c0_59 = arith.constant 0 : index
    %c0_60 = arith.constant 0 : index
    %143 = vector.load %arg14[%c0_58, %c0_59, %c0_60] : memref<1x1x64xf32, #tpu.memory_space<vmem>>, vector<1x1x64xf32>
    %144 = vector.shape_cast %143 : vector<1x1x64xf32> to vector<1x64xf32>
    %145 = vector.broadcast %144 : vector<1x64xf32> to vector<32x64xf32>
    %146 = arith.addf %142, %145 : vector<32x64xf32>
    %147 = vector.shape_cast %146 : vector<32x64xf32> to vector<2x16x64xf32>
    %148 = arith.addf %93, %147 : vector<2x16x64xf32>
    %c0_61 = arith.constant 0 : index
    %c0_62 = arith.constant 0 : index
    %c0_63 = arith.constant 0 : index
    %149 = vector.load %arg18[%c0_61, %c0_62, %c0_63] : memref<2x16x64xf32, #tpu.memory_space<vmem>>, vector<2x16x64xf32>
    tpu.vector_store %arg18[%c0_61, %c0_62, %c0_63], %148 {strides = array<i32>} : memref<2x16x64xf32, #tpu.memory_space<vmem>>, vector<2x16x64xf32>,
    %c1_i32 = arith.constant 1 : i32
    %150 = arith.cmpi eq, %arg1, %c1_i32 : i32
    %151 = arith.extui %150 : i1 to i32
    %c0_i32_64 = arith.constant 0 : i32
    %152 = arith.cmpi ne, %151, %c0_i32_64 : i32
    scf.if %152 {
      %c0_65 = arith.constant 0 : index
      %c0_66 = arith.constant 0 : index
      %153 = vector.load %arg15[%c0_65, %c0_66] : memref<1x64xf32, #tpu.memory_space<vmem>>, vector<1x64xf32>
      %c0_67 = arith.constant 0 : index
      %c0_68 = arith.constant 0 : index
      %154 = vector.load %arg16[%c0_67, %c0_68] : memref<1x64xf32, #tpu.memory_space<vmem>>, vector<1x64xf32>
      %cst_69 = arith.constant dense<0.000000e+00> : vector<2x16xf32>
      %155 = vector.multi_reduction <add>, %148, %cst_69 [2] : vector<2x16x64xf32> to vector<2x16xf32>
      %156 = vector.shape_cast %155 : vector<2x16xf32> to vector<2x16x1xf32>
      %cst_70 = arith.constant 6.400000e+01 : f32
      %157 = vector.broadcast %cst_70 : f32 to vector<2x16x1xf32>
      %158 = arith.divf %156, %157 : vector<2x16x1xf32>
      %159 = vector.broadcast %158 : vector<2x16x1xf32> to vector<2x16x64xf32>
      %160 = arith.subf %148, %159 : vector<2x16x64xf32>
      %161 = arith.mulf %160, %160 : vector<2x16x64xf32>
      %cst_71 = arith.constant dense<0.000000e+00> : vector<2x16xf32>
      %162 = vector.multi_reduction <add>, %161, %cst_71 [2] : vector<2x16x64xf32> to vector<2x16xf32>
      %163 = vector.shape_cast %162 : vector<2x16xf32> to vector<2x16x1xf32>
      %cst_72 = arith.constant 6.400000e+01 : f32
      %164 = vector.broadcast %cst_72 : f32 to vector<2x16x1xf32>
      %165 = arith.divf %163, %164 : vector<2x16x1xf32>
      %166 = vector.broadcast %158 : vector<2x16x1xf32> to vector<2x16x64xf32>
      %167 = arith.subf %148, %166 : vector<2x16x64xf32>
      %cst_73 = arith.constant 9.99999974E-6 : f32
      %168 = vector.broadcast %cst_73 : f32 to vector<2x16x1xf32>
      %169 = arith.addf %165, %168 : vector<2x16x1xf32>
      %170 = math.rsqrt %169 : vector<2x16x1xf32>
      %171 = vector.broadcast %170 : vector<2x16x1xf32> to vector<2x16x64xf32>
      %172 = arith.mulf %167, %171 : vector<2x16x64xf32>
      %173 = vector.shape_cast %153 : vector<1x64xf32> to vector<1x1x64xf32>
      %174 = vector.broadcast %173 : vector<1x1x64xf32> to vector<2x16x64xf32>
      %175 = arith.mulf %172, %174 : vector<2x16x64xf32>
      %176 = vector.shape_cast %154 : vector<1x64xf32> to vector<1x1x64xf32>
      %177 = vector.broadcast %176 : vector<1x1x64xf32> to vector<2x16x64xf32>
      %178 = arith.addf %175, %177 : vector<2x16x64xf32>
      %c0_74 = arith.constant 0 : index
      %c0_75 = arith.constant 0 : index
      %c0_76 = arith.constant 0 : index
      %179 = vector.load %arg17[%c0_74, %c0_75, %c0_76] : memref<2x16x64xf32, #tpu.memory_space<vmem>>, vector<2x16x64xf32>
      tpu.vector_store %arg17[%c0_74, %c0_75, %c0_76], %178 {strides = array<i32>} : memref<2x16x64xf32, #tpu.memory_space<vmem>>, vector<2x16x64xf32>,
    } else {
    }
    return
  }
  func.func @transform_0(%arg0: i32, %arg1: i32) -> (i32, i32, i32) {
    %c0_i32 = arith.constant 0 : i32
    %c0_i32_0 = arith.constant 0 : i32
    %c0_i32_1 = arith.constant 0 : i32
    return %arg0, %c0_i32, %c0_i32_0 : i32, i32, i32
  }
  func.func @transform_1(%arg0: i32, %arg1: i32) -> (i32, i32, i32) {
    %c0_i32 = arith.constant 0 : i32
    %c0_i32_0 = arith.constant 0 : i32
    %c0_i32_1 = arith.constant 0 : i32
    return %arg1, %c0_i32, %c0_i32_0 : i32, i32, i32
  }
  func.func @transform_2(%arg0: i32, %arg1: i32) -> (i32, i32, i32) {
    %c0_i32 = arith.constant 0 : i32
    %c0_i32_0 = arith.constant 0 : i32
    %c0_i32_1 = arith.constant 0 : i32
    return %arg1, %c0_i32, %c0_i32_0 : i32, i32, i32
  }
  func.func @transform_3(%arg0: i32, %arg1: i32) -> (i32, i32, i32) {
    %c0_i32 = arith.constant 0 : i32
    %c0_i32_0 = arith.constant 0 : i32
    %c0_i32_1 = arith.constant 0 : i32
    return %arg1, %c0_i32, %c0_i32_0 : i32, i32, i32
  }
  func.func @transform_4(%arg0: i32, %arg1: i32) -> (i32, i32, i32) {
    %c0_i32 = arith.constant 0 : i32
    %c0_i32_0 = arith.constant 0 : i32
    %c0_i32_1 = arith.constant 0 : i32
    return %arg1, %c0_i32, %c0_i32_0 : i32, i32, i32
  }
  func.func @transform_5(%arg0: i32, %arg1: i32) -> (i32, i32, i32) {
    %c0_i32 = arith.constant 0 : i32
    %c0_i32_0 = arith.constant 0 : i32
    %c0_i32_1 = arith.constant 0 : i32
    return %arg1, %c0_i32, %c0_i32_0 : i32, i32, i32
  }
  func.func @transform_6(%arg0: i32, %arg1: i32) -> (i32, i32, i32) {
    %c0_i32 = arith.constant 0 : i32
    %c0_i32_0 = arith.constant 0 : i32
    %c0_i32_1 = arith.constant 0 : i32
    return %arg1, %c0_i32, %c0_i32_0 : i32, i32, i32
  }
  func.func @transform_7(%arg0: i32, %arg1: i32) -> (i32, i32, i32) {
    %c0_i32 = arith.constant 0 : i32
    %c0_i32_0 = arith.constant 0 : i32
    %c0_i32_1 = arith.constant 0 : i32
    return %arg1, %c0_i32, %c0_i32_0 : i32, i32, i32
  }
  func.func @transform_8(%arg0: i32, %arg1: i32) -> (i32, i32, i32) {
    %c0_i32 = arith.constant 0 : i32
    %c0_i32_0 = arith.constant 0 : i32
    %c0_i32_1 = arith.constant 0 : i32
    return %arg1, %c0_i32, %c0_i32_0 : i32, i32, i32
  }
  func.func @transform_9(%arg0: i32, %arg1: i32) -> (i32, i32, i32) {
    %c0_i32 = arith.constant 0 : i32
    %c0_i32_0 = arith.constant 0 : i32
    %c0_i32_1 = arith.constant 0 : i32
    return %arg1, %c0_i32, %c0_i32_0 : i32, i32, i32
  }
  func.func @transform_10(%arg0: i32, %arg1: i32) -> (i32, i32, i32) {
    %c0_i32 = arith.constant 0 : i32
    %c0_i32_0 = arith.constant 0 : i32
    %c0_i32_1 = arith.constant 0 : i32
    return %arg1, %c0_i32, %c0_i32_0 : i32, i32, i32
  }
  func.func @transform_11(%arg0: i32, %arg1: i32) -> (i32, i32, i32) {
    %c0_i32 = arith.constant 0 : i32
    %c0_i32_0 = arith.constant 0 : i32
    %c0_i32_1 = arith.constant 0 : i32
    return %arg1, %c0_i32, %c0_i32_0 : i32, i32, i32
  }
  func.func @transform_12(%arg0: i32, %arg1: i32) -> (i32, i32, i32) {
    %c0_i32 = arith.constant 0 : i32
    %c0_i32_0 = arith.constant 0 : i32
    %c0_i32_1 = arith.constant 0 : i32
    return %arg1, %c0_i32, %c0_i32_0 : i32, i32, i32
  }
  func.func @transform_13(%arg0: i32, %arg1: i32) -> (i32, i32) {
    %c0_i32 = arith.constant 0 : i32
    %c0_i32_0 = arith.constant 0 : i32
    %c0_i32_1 = arith.constant 0 : i32
    return %c0_i32, %c0_i32_0 : i32, i32
  }
  func.func @transform_14(%arg0: i32, %arg1: i32) -> (i32, i32) {
    %c0_i32 = arith.constant 0 : i32
    %c0_i32_0 = arith.constant 0 : i32
    %c0_i32_1 = arith.constant 0 : i32
    return %c0_i32, %c0_i32_0 : i32, i32
  }
  func.func @transform_15(%arg0: i32, %arg1: i32) -> (i32, i32, i32) {
    %c0_i32 = arith.constant 0 : i32
    %c0_i32_0 = arith.constant 0 : i32
    %c0_i32_1 = arith.constant 0 : i32
    return %arg0, %c0_i32, %c0_i32_0 : i32, i32, i32
  }
}

</mosaic_0001>

<bundles_post_ra>
// kernel: tpu_custom_call.1
= control target key start
LH: loop header
LB: loop body
LE: loop exit
PB: predicated region body
PF: predicated region fallthrough
CT: control target
= control target key end

     0   :  { %s6950_s0 = inlined_call_operand.vmem [shape: f32[2,16,64], index: 0, kind: input, shape index: {}]   ;;  %s6951_s1 = inlined_call_operand.vmem [shape: f32[2,1,64], index: 1, kind: input, shape index: {}]   ;;  %s6952_s2 = inlined_call_operand.vmem [shape: f32[2,1,64], index: 2, kind: input, shape index: {}]   ;;  %s6953_s3 = inlined_call_operand.vmem [shape: bf16[2,64,192], index: 3, kind: input, shape index: {}]   ;;  %s6954_s4 = inlined_call_operand.vmem [shape: f32[2,1,192], index: 4, kind: input, shape index: {}]   ;;  %s6955_s5 = inlined_call_operand.vmem [shape: bf16[2,64,64], index: 5, kind: input, shape index: {}]   ;;  %s6956_s6 = inlined_call_operand.vmem [shape: f32[2,1,64], index: 6, kind: input, shape index: {}]   ;;  %s6957_s7 = inlined_call_operand.vmem [shape: f32[2,1,64], index: 7, kind: input, shape index: {}]   ;;  %s6958_s8 = inlined_call_operand.vmem [shape: f32[2,1,64], index: 8, kind: input, shape index: {}]   ;;  %s6959_s9 = inlined_call_operand.vmem [shape: bf16[2,64,256], index: 9, kind: input, shape index: {}]   ;;  %s6960_s10 = inlined_call_operand.vmem [shape: f32[2,1,256], index: 10, kind: input, shape index: {}]   ;;  %s6961_s11 = inlined_call_operand.vmem [shape: bf16[2,256,64], index: 11, kind: input, shape index: {}]   ;;  %s6962_s12 = inlined_call_operand.vmem [shape: f32[2,1,64], index: 12, kind: input, shape index: {}]   ;;  %s6963_s13 = inlined_call_operand.vmem [shape: f32[1,64], index: 13, kind: input, shape index: {}]   ;;  %s6964_s14 = inlined_call_operand.vmem [shape: f32[1,64], index: 14, kind: input, shape index: {}]   ;;  %s6965_s15 = inlined_call_operand.hbm [shape: f32[2,16,64], index: 15, kind: output, shape index: {}]  }
   0x1   :  { %6969 = sst [smem:[#allocation10_spill]] %s6952_s2 }
   0x2   :  { %6970 = sst [smem:[#allocation11_spill]] %s6953_s3 }
   0x3   :  { %6971 = sst [smem:[#allocation12_spill]] %s6954_s4 }
   0x4   :  { %6972 = sst [smem:[#allocation13_spill]] %s6963_s13 }
   0x5   :  { %6973 = sst [smem:[#allocation14_spill]] %s6964_s14 }
   0x6   :  { %6974 = sst [smem:[#allocation15_spill]] %s6965_s15 }
   0x7   :  { %20 = vsyncpa [#allocation4], 0  ;;  %s5741_s18 = smov 0   ;;  %s5743_s19 = smov 0  }
   0x8   :  { %s5745_s20 = smov 0  }
   0x9 LB: > { %6975 = sst [smem:[#allocation6_spill]] %s5640_s19  ;;  %s35_s22 = sadd.s32 1, %s5640_s19  ;;  %s5644_s20 = sphi %s5745_s20, %s26_s20   ;;  %s5640_s19 = sphi %s5743_s19, %s6997_s19   ;;  %s5636_s18 = sphi %s5741_s18, %s6996_s18  }
   0xa   : > { %6976 = sst [smem:[#allocation7_spill]] %s5644_s20  ;;  %p36_p0 = scmp.ge.s32.totalorder %s35_s22, 2 }
   0xb   : > { %p5068_p1 = scmp.ge.s32.totalorder %s5644_s20, 1  ;;  %p558_p2 = scmp.lt.s32.totalorder %s5644_s20, 3 }
   0xc   : > { %s6999_s22 = smov (%p36_p0, %s35_s22), 0 }
   0xd   : > { %6977 = sst [smem:[#allocation8_spill]] %s6999_s22  ;;  %p559_p3 = pnand %p5068_p1, %p558_p2 }
   0xf   : > { %562 = sbr.rel (%p559_p3) target bundleno = 3206 (0xc86), region = 80 }
  0x16   : > { %p655_p4 = scmp.lt.s32.totalorder %s5636_s18, 1  ;;  %s6979_s3 = sld [smem:[#allocation11_spill]] }
  0x17   : > { %s6980_s4 = sld [smem:[#allocation12_spill]]  ;;  %p5079_p5 = scmp.ne.s32.totalorder %s5636_s18, 0 }
  0x18   : > { %s5764_s23 = scalar_select %p655_p4, %s5636_s18, 1 }
  0x19   : > { %v709_v0 = vld [vmem:[%s6950_s0] sm:$0xff] (!%p5079_p5)  ;;  %vm713_vm0 = vcmask (!%p5079_p5), 523264   ;;  %v710_v1 = vld [vmem:[%s6950_s0 + $0x8] sm:$0xff] (!%p5079_p5)  ;;  %v711_v2 = vld [vmem:[%s6950_s0 + $0x10] sm:$0xff] (!%p5079_p5) }
  0x1a   : > { %s5187_s30 = sshll.u32 %s5764_s23, 6  ;;  %s5071_s16 = sshll.u32 %s5764_s23, 1  ;;  %714 = vst.msk [vmem:[#allocation2] sm:$0xff] (!%p5079_p5), %vm713_vm0, %v709_v0  ;;  %715 = vst.msk [vmem:[#allocation2 + $0x8] sm:$0xff] (!%p5079_p5), %vm713_vm0, %v710_v1  ;;  %v712_v3 = vld [vmem:[%s6950_s0 + $0x18] sm:$0xff] (!%p5079_p5) }
  0x1b   : > { %s5188_s15 = sshll.u32 %s5764_s23, 5  ;;  %s683_s22 = scalar_lea.vmem %s6958_s8, %s5764_s23  ;;  %716 = vst.msk [vmem:[#allocation2 + $0x10] sm:$0xff] (!%p5079_p5), %vm713_vm0, %v711_v2  ;;  %717 = vst.msk [vmem:[#allocation2 + $0x18] sm:$0xff] (!%p5079_p5), %vm713_vm0, %v712_v3 }
  0x1c   : > { %s5779_s24 = scalar_lea.vmem %s6979_s3, %s5187_s30  ;;  %s5794_s28 = scalar_lea.vmem %s6955_s5, %s5188_s15 }
  0x1d   : > { %s5784_s19 = scalar_lea.vmem %s6980_s4, %s5071_s16  ;;  %s5812_s26 = scalar_lea.vmem %s6960_s10, %s5071_s16 }
  0x1e   : > { %6981 = sst [smem:[#allocation9_spill]] %s5784_s19  ;;  %s5807_s19 = scalar_lea.vmem %s6959_s9, %s5187_s30 }
  0x1f   : > { %s5190_s13 = sshll.u32 %s5764_s23, 7  ;;  %s700_s3 = scalar_lea.vmem %s6962_s12, %s5764_s23 }
  0x20   : > { %s5818_s2 = scalar_lea.vmem %s6961_s11, %s5190_s13  ;;  %708 = sbr.rel (%p5079_p5) target bundleno = 39 (0x27), region = 84 }
  0x27 PF: > { %v718_v4 = vld [vmem:[#allocation2] sm:$0xff]  ;;  %vm724_vm1 = vcmask 523264   ;;  %v720_v5 = vld [vmem:[#allocation2 + $0x10] sm:$0xff]  ;;  %v719_v6 = vld [vmem:[#allocation2 + $0x8] sm:$0xff]  ;;  %v5646_v37 = vmov 0   ;;  %s6982_s15 = scalar_lea.vmem %s6951_s1, %s5764_s23  ;;  %s6983_s4 = sld [smem:[#allocation10_spill]] }
  0x28   : > { %v725_v7 = vsel %vm724_vm1, %v718_v4, 0.0  ;;  %v731_v8 = vsel %vm724_vm1, %v720_v5, 0.0  ;;  %v721_v9 = vld [vmem:[#allocation2 + $0x18] sm:$0xff]  ;;  %v728_v10 = vsel %vm724_vm1, %v719_v6, 0.0  ;;  %v5440_v32 = vld [vmem:[%s5779_s24 + $0x4] ss:$8 sps:$4 sm:$0xff]   ;;  %898 = vmatprep.mubr.bf16.mxu0 %v5646_v37  ;;  %s6986_s27 = scalar_lea.vmem %s6956_s6, %s5764_s23 }
  0x29   : > { %726 = vadd.xlane.f32.xlu0 %v725_v7  ;;  %732 = vadd.xlane.f32.xlu1 %v731_v8  ;;  %v734_v11 = vsel %vm724_vm1, %v721_v9, 0.0  ;;  %v5442_v33 = vld [vmem:[%s5779_s24] ss:$8 sps:$4 sm:$0xff]   ;;  %v5443_v34 = vld [vmem:[%s5779_s24 + $0x14] ss:$8 sps:$4 sm:$0xff]   ;;  %s6985_s16 = sld [smem:[#allocation9_spill]] }
  0x2a   : > { %866 = vmatprep.subr.bf16.mxu0 %v5440_v32  ;;  %v5445_v35 = vld [vmem:[%s5779_s24 + $0x10] ss:$8 sps:$4 sm:$0xff]   ;;  %v5446_v36 = vld [vmem:[%s5779_s24 + $0x24] ss:$8 sps:$4 sm:$0xff]   ;;  %v5448_v38 = vld [vmem:[%s5779_s24 + $0x20] ss:$8 sps:$4 sm:$0xff]  }
  0x2b   : > { %867 = vmatpush1.bf16.msra.mxu0 %v5442_v33  ;;  %v5449_v39 = vld [vmem:[%s5779_s24 + $0x34] ss:$8 sps:$4 sm:$0xff]   ;;  %v5451_v40 = vld [vmem:[%s5779_s24 + $0x30] ss:$8 sps:$4 sm:$0xff]   ;;  %v5080_v55 = vld [vmem:[%s6982_s15] ss:$0 sm:$0xff] }
  0x2c   : > { %868 = vmatprep.subr.bf16.mxu0 %v5443_v34  ;;  %s5647_s17 = smov 96   ;;  %s5648_s25 = smov 112   ;;  %vm5652_vm2 = vmmov 0   ;;  %vm2744_vm3 = vcmask 130048   ;;  %vm4253_vm6 = vcmask 261120   ;;  %vm4258_vm7 = vcmask 392192  }
  0x2d   : > { %729 = vadd.xlane.f32.xlu0 %v728_v10  ;;  %735 = vadd.xlane.f32.xlu1 %v734_v11  ;;  %s6984_s30 = scalar_lea.vmem %s6983_s4, %s5764_s23  ;;  %s5649_s14 = smov 80  }
  0x2e   : > { %v5081_v60 = vld [vmem:[%s6984_s30] ss:$0 sm:$0xff]  ;;  %s5650_s21 = smov 64   ;;  %s5655_s20 = smov 32  }
  0x2f   : > { %869 = vmatpush1.bf16.msra.mxu0 %v5445_v35  ;;  %s5656_s24 = smov 16   ;;  %s5657_s13 = smov 48  }
  0x30   : > { %870 = vmatprep.subr.bf16.mxu0 %v5446_v36  ;;  %s6987_s4 = scalar_lea.vmem %s6957_s7, %s5764_s23  ;;  %p5180_p6 = scmp.ne.s32.totalorder %s5636_s18, 1 }
  0x33   : > { %871 = vmatpush1.bf16.msra.mxu0 %v5448_v38 }
  0x34   : > { %872 = vmatprep.subr.bf16.mxu0 %v5449_v39 }
  0x37   : > { %873 = vmatpush1.bf16.msra.mxu0 %v5451_v40 }
  0xb6   : > { %v727_v12 = vpop.xlane.xlu0 %726  ;;  %v733_v13 = vpop.xlane.xlu1 %732 }
  0xb7   : > { %v738_v14 = vmul.f32 0.015625, %v727_v12  ;;  %v740_v15 = vmul.f32 0.015625, %v733_v13  ;;  %v5877_v12 = vld [vmem:[%s6985_s16] sm:$0x3] }
  0xb9   : > { %v742_v16 = vsub.f32 %v718_v4, %v738_v14  ;;  %v5841_v17 = vsub.f32 %v720_v5, %v740_v15 }
  0xba   : > { %v730_v18 = vpop.xlane.xlu0 %729  ;;  %v736_v19 = vpop.xlane.xlu1 %735 }
  0xbb   : > { %v739_v20 = vmul.f32 0.015625, %v730_v18  ;;  %v741_v21 = vmul.f32 0.015625, %v736_v19  ;;  %v746_v22 = vmul.f32 %v742_v16, %v742_v16  ;;  %v748_v23 = vmul.f32 %v5841_v17, %v5841_v17 }
  0xbd   : > { %v743_v24 = vsub.f32 %v719_v6, %v739_v20  ;;  %v745_v25 = vsub.f32 %v721_v9, %v741_v21  ;;  %v750_v26 = vsel %vm724_vm1, %v746_v22, 0.0  ;;  %v756_v27 = vsel %vm724_vm1, %v748_v23, 0.0 }
  0xbe   : > { %751 = vadd.xlane.f32.xlu0 %v750_v26  ;;  %v810_v9 = vlaneseq }
  0xbf   : > { %v747_v28 = vmul.f32 %v743_v24, %v743_v24  ;;  %v749_v29 = vmul.f32 %v745_v25, %v745_v25 }
  0xc0   : > { %v5873_v10 = vshrl.u32 %v810_v9, 7 }
  0xc1   : > { %v753_v30 = vsel %vm724_vm1, %v747_v28, 0.0  ;;  %v759_v31 = vsel %vm724_vm1, %v749_v29, 0.0 }
  0xc2   : > { %757 = vadd.xlane.f32.xlu0 %v756_v27  ;;  %754 = vadd.xlane.f32.xlu1 %v753_v30  ;;  %v812_v11 = vsub.s32 0, %v5873_v10 }
  0xc4   : > { %v813_v13 = vrot.slane %v5877_v12, %v812_v11 }
  0xc6   : > { %760 = vadd.xlane.f32.xlu1 %v759_v31 }
 0x14b   : > { %v752_v41 = vpop.xlane.xlu0 %751 }
 0x14c   : > { %v762_v42 = vmul.f32 0.015625, %v752_v41 }
 0x14e   : > { %v766_v43 = vadd.f32 1e-05, %v762_v42  ;;  %v5651_v42 = vmov 0.0  }
 0x14f   : > { %v755_v44 = vpop.xlane.xlu1 %754  ;;  %v758_v45 = vpop.xlane.xlu0 %757  ;;  %5257 = vmatprep.subr.bf16.mxu0 %v5651_v42  ;;  %5263 = vmatprep.subr.bf16.mxu1 %v5651_v42 }
 0x150   : > { %5484 = vrsqrt.f32 %v766_v43  ;;  %v763_v46 = vmul.f32 0.015625, %v755_v44  ;;  %v764_v47 = vmul.f32 0.015625, %v758_v45  ;;  %v816_v43 = vsub.s32 1, %v5873_v10  ;;  %5265 = vmatprep.mubr.msk.bf16.mxu1 %vm5652_vm2, %v5651_v42 }
 0x152   : > { %v767_v48 = vadd.f32 1e-05, %v763_v46  ;;  %v768_v49 = vadd.f32 1e-05, %v764_v47  ;;  %v817_v45 = vrot.slane %v5877_v12, %v816_v43 }
 0x153   : > { %v761_v50 = vpop.xlane.xlu1 %760 }
 0x154   : > { %5486 = vrsqrt.f32 %v767_v48  ;;  %v765_v51 = vmul.f32 0.015625, %v761_v50 }
 0x155   : > { %5488 = vrsqrt.f32 %v768_v49 }
 0x156   : > { %v769_v52 = vadd.f32 1e-05, %v765_v51 }
 0x158   : > { %5490 = vrsqrt.f32 %v769_v52 }
 0x15a   : > { %v5485_v53 = vpop.eup %5484 }
 0x15b   : > { %v774_v54 = vmul.f32 %v5485_v53, %v742_v16 }
 0x15d   : > { %v784_v58 = vmul.f32 %v5080_v55, %v774_v54 }
 0x15e   : > { %v5487_v56 = vpop.eup %5486 }
 0x15f   : > { %v775_v57 = vmul.f32 %v5487_v56, %v743_v24  ;;  %v5489_v59 = vpop.eup %5488  ;;  %v794_v63 = vadd.f32 %v5081_v60, %v784_v58 }
 0x160   : > { %v776_v1 = vmul.f32 %v5489_v59, %v5841_v17 }
 0x161   : > { %v785_v61 = vmul.f32 %v5080_v55, %v775_v57 }
 0x162   : > { %v5491_v62 = vpop.eup %5490  ;;  %v786_v5 = vmul.f32 %v5080_v55, %v776_v1 }
 0x163   : > { %v795_v0 = vadd.f32 %v5081_v60, %v785_v61  ;;  %v777_v2 = vmul.f32 %v5491_v62, %v745_v25 }
 0x164   : > { %v796_v7 = vadd.f32 %v5081_v60, %v786_v5 }
 0x165   : > { %v798_v3 = vpack.c.bf16 %v795_v0, %v794_v63  ;;  %v787_v4 = vmul.f32 %v5080_v55, %v777_v2  ;;  %v5653_v55 = vmov 1983009808  }
 0x166   : > { %v966_v56 = vunpack.c.l.s4 %v5653_v55 }
 0x167   : > { %5090 = vmatmul.mubr.msk.bf16.vlgmr.msra.gmra.mrb[0].mxu0 %vm724_vm1, %v798_v3  ;;  %v797_v6 = vadd.f32 %v5081_v60, %v787_v4  ;;  %v5654_v60 = vmov 1934713408  }
 0x168   : > { %908 = vmatprep.mubr.bf16.mxu0 %v5646_v37  ;;  %v967_v59 = vunpack.c.0.s8 %v966_v56  ;;  %v998_v61 = vunpack.c.l.s4 %v5654_v60 }
 0x169   : > { %v799_v8 = vpack.c.bf16 %v797_v6, %v796_v7 }
 0x16a   : > { %v5995_v1 = vsub.s32 %v967_v59, %v5873_v10  ;;  %v999_v4 = vunpack.c.0.s8 %v998_v61 }
 0x16f   : > { %5091 = vmatmul.mubr.msk.bf16.gmra.mrb[4].mxu0 %vm724_vm1, %v799_v8 }
 0x170   : > { %5259 = vmatprep.mubr.msk.bf16.mxu0 %vm5652_vm2, %v5651_v42 }
 0x23a   : > { %v900_v14 = vpop.f32.mrb[0].mxu0 }
 0x23b   : > { %v901_v15 = vadd.f32 %v900_v14, %v813_v13  ;;  %v5882_v16 = vpop.f32.mrb[1].mxu0 }
 0x23c   : > { %v904_v17 = vpop.f32.mrb[2].mxu0  ;;  %v5955_v46 = vadd.f32 %v5882_v16, %v817_v45  ;;  %v6006_v16 = vsub.s32 %v999_v4, %v5873_v10 }
 0x23d   : > { %v5884_v18 = vpop.f32.mrb[3].mxu0  ;;  %1247 = vrot.lane.b32.xlu1 %v901_v15, %s5647_s17  ;;  %1239 = vrot.lane.b32.xlu0 %v901_v15, %s5648_s25  ;;  %v905_v19 = vadd.f32 %v904_v17, %v813_v13  ;;  %v5902_v26 = vmul.f32 0.25, %v901_v15 }
 0x23e   : > { %v5962_v47 = vadd.f32 %v5884_v18, %v817_v45 }
 0x23f   : > { %v5910_v27 = vmul.f32 0.25, %v905_v19 }
 0x241   : > { %1241 = vrot.lane.b32.xlu1 %v905_v19, %s5648_s25  ;;  %1255 = vrot.lane.b32.xlu0 %v901_v15, %s5649_s14 }
 0x242   : > { %v910_v20 = vpop.f32.mrb[4].mxu0 }
 0x243   : > { %v911_v21 = vadd.f32 %v910_v20, %v813_v13  ;;  %v5890_v22 = vpop.f32.mrb[5].mxu0 }
 0x244   : > { %v914_v23 = vpop.f32.mrb[6].mxu0  ;;  %v5973_v48 = vadd.f32 %v5890_v22, %v817_v45 }
 0x245   : > { %1249 = vrot.lane.b32.xlu1 %v905_v19, %s5647_s17  ;;  %v5893_v24 = vpop.f32.mrb[7].mxu0  ;;  %1243 = vrot.lane.b32.xlu0 %v911_v21, %s5648_s25  ;;  %v915_v25 = vadd.f32 %v914_v23, %v813_v13  ;;  %v5927_v33 = vmul.f32 0.25, %v911_v21 }
 0x246   : > { %v5984_v49 = vadd.f32 %v5893_v24, %v817_v45 }
 0x247   : > { %v5932_v36 = vmul.f32 0.25, %v915_v25 }
 0x249   : > { %1257 = vrot.lane.b32.xlu1 %v905_v19, %s5649_s14  ;;  %1251 = vrot.lane.b32.xlu0 %v911_v21, %s5647_s17 }
 0x24d   : > { %1245 = vrot.lane.b32.xlu1 %v915_v25, %s5648_s25  ;;  %1259 = vrot.lane.b32.xlu0 %v911_v21, %s5649_s14 }
 0x251   : > { %1253 = vrot.lane.b32.xlu1 %v915_v25, %s5647_s17  ;;  %1263 = vrot.lane.b32.xlu0 %v901_v15, %s5650_s21 }
 0x255   : > { %1261 = vrot.lane.b32.xlu1 %v915_v25, %s5649_s14  ;;  %927 = vrot.lane.b32.xlu0 %v5902_v26, %s5648_s25 }
 0x259   : > { %1265 = vrot.lane.b32.xlu1 %v905_v19, %s5650_s21  ;;  %939 = vrot.lane.b32.xlu0 %v5902_v26, %s5647_s17 }
 0x25d   : > { %929 = vrot.lane.b32.xlu1 %v5910_v27, %s5648_s25  ;;  %951 = vrot.lane.b32.xlu0 %v5902_v26, %s5649_s14 }
 0x261   : > { %941 = vrot.lane.b32.xlu1 %v5910_v27, %s5647_s17  ;;  %1267 = vrot.lane.b32.xlu0 %v911_v21, %s5650_s21 }
 0x265   : > { %953 = vrot.lane.b32.xlu1 %v5910_v27, %s5649_s14 }
 0x269   : > { %1269 = vrot.lane.b32.xlu1 %v915_v25, %s5650_s21 }
 0x2af   : > { %v1248_v28 = vpop.permute.xlu1 %1247  ;;  %v1240_v29 = vpop.permute.xlu0 %1239 }
 0x2b0   : > { %1271 = vrot.lane.b32.xlu0 %v1240_v29, %s5650_s21 }
 0x2b3   : > { %v1242_v30 = vpop.permute.xlu1 %1241  ;;  %v1256_v31 = vpop.permute.xlu0 %1255 }
 0x2b4   : > { %1273 = vrot.lane.b32.xlu1 %v1242_v30, %s5650_s21  ;;  %1279 = vrot.lane.b32.xlu0 %v1248_v28, %s5650_s21 }
 0x2b7   : > { %v1250_v32 = vpop.permute.xlu1 %1249  ;;  %v1244_v34 = vpop.permute.xlu0 %1243 }
 0x2b8   : > { %1281 = vrot.lane.b32.xlu1 %v1250_v32, %s5650_s21  ;;  %1287 = vrot.lane.b32.xlu0 %v1256_v31, %s5650_s21 }
 0x2bb   : > { %v1258_v35 = vpop.permute.xlu1 %1257  ;;  %v1252_v39 = vpop.permute.xlu0 %1251 }
 0x2bc   : > { %1289 = vrot.lane.b32.xlu1 %v1258_v35, %s5650_s21  ;;  %931 = vrot.lane.b32.xlu0 %v5927_v33, %s5648_s25 }
 0x2bf   : > { %v1246_v38 = vpop.permute.xlu1 %1245  ;;  %v1260_v41 = vpop.permute.xlu0 %1259 }
 0x2c0   : > { %933 = vrot.lane.b32.xlu1 %v5932_v36, %s5648_s25  ;;  %1275 = vrot.lane.b32.xlu0 %v1244_v34, %s5650_s21 }
 0x2c3   : > { %v1254_v40 = vpop.permute.xlu1 %1253  ;;  %v5990_v50 = vpop.permute.xlu0 %1263 }
 0x2c4   : > { %1277 = vrot.lane.b32.xlu1 %v1246_v38, %s5650_s21  ;;  %1283 = vrot.lane.b32.xlu0 %v1252_v39, %s5650_s21 }
 0x2c7   : > { %v1262_v44 = vpop.permute.xlu1 %1261  ;;  %v928_v52 = vpop.permute.xlu0 %927 }
 0x2c8   : > { %1285 = vrot.lane.b32.xlu1 %v1254_v40, %s5650_s21  ;;  %1291 = vrot.lane.b32.xlu0 %v1260_v41, %s5650_s21 }
 0x2cb   : > { %v5992_v51 = vpop.permute.xlu1 %1265  ;;  %v940_v54 = vpop.permute.xlu0 %939 }
 0x2cc   : > { %1293 = vrot.lane.b32.xlu1 %v1262_v44, %s5650_s21  ;;  %943 = vrot.lane.b32.xlu0 %v5927_v33, %s5647_s17  ;;  %v963_v2 = vcombine.low %v5902_v26, %v940_v54  ;;  %v964_v3 = vcombine.high %v5902_v26, %v940_v54 }
 0x2ce   : > { %v971_v14 = vrot.slane %v963_v2, %v5995_v1  ;;  %v978_v15 = vrot.slane %v964_v3, %v5995_v1 }
 0x2cf   : > { %v930_v53 = vpop.permute.xlu1 %929  ;;  %v952_v58 = vpop.permute.xlu0 %951 }
 0x2d0   : > { %945 = vrot.lane.b32.xlu1 %v5932_v36, %s5647_s17  ;;  %955 = vrot.lane.b32.xlu0 %v5927_v33, %s5649_s14  ;;  %v979_v62 = vcombine.low %v928_v52, %v952_v58  ;;  %v980_v63 = vcombine.high %v928_v52, %v952_v58 }
 0x2d2   : > { %v987_v7 = vrot.slane %v979_v62, %v5995_v1  ;;  %v994_v8 = vrot.slane %v980_v63, %v5995_v1 }
 0x2d3   : > { %v942_v57 = vpop.permute.xlu1 %941  ;;  %v6020_v52 = vpop.permute.xlu0 %1267 }
 0x2d4   : > { %957 = vrot.lane.b32.xlu1 %v5932_v36, %s5649_s14  ;;  %1587 = vrot.lane.b32.xlu0 %v5955_v46, %s5648_s25  ;;  %v1031_v12 = vcombine.low %v5910_v27, %v942_v57  ;;  %v1032_v13 = vcombine.high %v5910_v27, %v942_v57  ;;  %v995_v19 = vcombine.low %v971_v14, %v987_v7 }
 0x2d5   : > { %v996_v20 = vcombine.high %v971_v14, %v987_v7  ;;  %v1011_v21 = vcombine.low %v978_v15, %v994_v8  ;;  %v1012_v22 = vcombine.high %v978_v15, %v994_v8 }
 0x2d6   : > { %v1039_v23 = vrot.slane %v1031_v12, %v5995_v1  ;;  %v1046_v24 = vrot.slane %v1032_v13, %v5995_v1  ;;  %v1003_v29 = vrot.slane %v995_v19, %v6006_v16 }
 0x2d7   : > { %v954_v0 = vpop.permute.xlu1 %953  ;;  %v1010_v30 = vrot.slane %v996_v20, %v6006_v16  ;;  %v1019_v31 = vrot.slane %v1011_v21, %v6006_v16  ;;  %v1026_v32 = vrot.slane %v1012_v22, %v6006_v16 }
 0x2d8   : > { %1589 = vrot.lane.b32.xlu1 %v5962_v47, %s5648_s25  ;;  %1611 = vrot.lane.b32.xlu0 %v5955_v46, %s5649_s14  ;;  %v1047_v5 = vcombine.low %v930_v53, %v954_v0  ;;  %v1048_v6 = vcombine.high %v930_v53, %v954_v0 }
 0x2d9   : > { %v1895_v40 = vcombine.low %v1003_v29, %v1010_v30  ;;  %v5092_v41 = vcombine.high %v1003_v29, %v1010_v30  ;;  %v1911_v44 = vcombine.low %v1019_v31, %v1026_v32  ;;  %v5093_v45 = vcombine.high %v1019_v31, %v1026_v32 }
 0x2da   : > { %v1055_v17 = vrot.slane %v1047_v5, %v5995_v1  ;;  %v1062_v18 = vrot.slane %v1048_v6, %v5995_v1 }
 0x2db   : > { %v1902_v57 = vrot.slane %v1895_v40, %v5995_v1  ;;  %v1910_v58 = vrot.slane %v5092_v41, %v5995_v1  ;;  %v1918_v59 = vrot.slane %v1911_v44, %v5995_v1  ;;  %v1926_v60 = vrot.slane %v5093_v45, %v5995_v1  ;;  %v6030_v2 = vpop.permute.xlu1 %1269 }
 0x2dc   : > { %1599 = vrot.lane.b32.xlu1 %v5955_v46, %s5647_s17  ;;  %1591 = vrot.lane.b32.xlu0 %v5973_v48, %s5648_s25  ;;  %v1063_v25 = vcombine.low %v1039_v23, %v1055_v17  ;;  %v1064_v26 = vcombine.high %v1039_v23, %v1055_v17  ;;  %v1079_v27 = vcombine.low %v1046_v24, %v1062_v18 }
 0x2dd   : > { %v1080_v28 = vcombine.high %v1046_v24, %v1062_v18  ;;  %v1927_v4 = vcombine.low %v1902_v57, %v1910_v58  ;;  %v1943_v5 = vcombine.low %v1918_v59, %v1926_v60  ;;  %v1928_v6 = vcombine.high %v1902_v57, %v1910_v58 }
 0x2de   : > { %v1071_v34 = vrot.slane %v1063_v25, %v6006_v16  ;;  %v1078_v35 = vrot.slane %v1064_v26, %v6006_v16  ;;  %v1087_v38 = vrot.slane %v1079_v27, %v6006_v16  ;;  %v1944_v7 = vcombine.high %v1918_v59, %v1926_v60 }
 0x2df   : > { %v1094_v39 = vrot.slane %v1080_v28, %v6006_v16  ;;  %v6033_v15 = vrot.slane %v1927_v4, %v6006_v16  ;;  %v6036_v17 = vrot.slane %v1943_v5, %v6006_v16  ;;  %v6039_v18 = vrot.slane %v1928_v6, %v6006_v16 }
 0x2e0   : > { %1601 = vrot.lane.b32.xlu1 %v5962_v47, %s5647_s17  ;;  %v1963_v53 = vcombine.low %v1071_v34, %v1078_v35  ;;  %v5094_v54 = vcombine.high %v1071_v34, %v1078_v35  ;;  %v6042_v19 = vrot.slane %v1944_v7, %v6006_v16 }
 0x2e1   : > { %v1979_v55 = vcombine.low %v1087_v38, %v1094_v39  ;;  %v5095_v56 = vcombine.high %v1087_v38, %v1094_v39  ;;  %v1959_v28 = vcombine.low %v6033_v15, %v6036_v17  ;;  %v1960_v31 = vcombine.high %v6033_v15, %v6036_v17 }
 0x2e2   : > { %v1970_v61 = vrot.slane %v1963_v53, %v5995_v1  ;;  %v1978_v62 = vrot.slane %v5094_v54, %v5995_v1  ;;  %v1961_v34 = vcombine.low %v6039_v18, %v6042_v19  ;;  %v1962_v35 = vcombine.high %v6039_v18, %v6042_v19 }
 0x2e3   : > { %v1986_v63 = vrot.slane %v1979_v55, %v5995_v1  ;;  %v1994_v0 = vrot.slane %v5095_v56, %v5995_v1 }
 0x2e4   : > { %1613 = vrot.lane.b32.xlu1 %v5962_v47, %s5649_s14  ;;  %v1995_v8 = vcombine.low %v1970_v61, %v1978_v62  ;;  %v1996_v20 = vcombine.high %v1970_v61, %v1978_v62 }
 0x2e5   : > { %v2011_v12 = vcombine.low %v1986_v63, %v1994_v0  ;;  %v2012_v21 = vcombine.high %v1986_v63, %v1994_v0 }
 0x2e6   : > { %v6047_v24 = vrot.slane %v1995_v8, %v6006_v16  ;;  %v6057_v32 = vrot.slane %v1996_v20, %v6006_v16 }
 0x2e7   : > { %v6050_v25 = vrot.slane %v2011_v12, %v6006_v16 }
 0x2e8   : > { %1593 = vrot.lane.b32.xlu1 %v5984_v49, %s5648_s25  ;;  %s6989_s25 = sld [smem:[#allocation14_spill]] (!%p5180_p6) }
 0x2e9   : > { %v2027_v44 = vcombine.low %v6047_v24, %v6050_v25  ;;  %v2028_v56 = vcombine.high %v6047_v24, %v6050_v25 }
 0x2ec   : > { %1603 = vrot.lane.b32.xlu1 %v5973_v48, %s5647_s17 }
 0x322   : > { %v1272_v3 = vpop.permute.xlu0 %1271 }
 0x326   : > { %v1274_v13 = vpop.permute.xlu1 %1273  ;;  %v1280_v14 = vpop.permute.xlu0 %1279 }
 0x327   : > { %v1311_v22 = vcombine.low %v5990_v50, %v1280_v14  ;;  %v1312_v23 = vcombine.high %v5990_v50, %v1280_v14  ;;  %v6060_v50 = vrot.slane %v2012_v21, %v6006_v16 }
 0x329   : > { %v1319_v38 = vrot.slane %v1311_v22, %v5995_v1  ;;  %v1326_v39 = vrot.slane %v1312_v23, %v5995_v1  ;;  %v2029_v63 = vcombine.low %v6057_v32, %v6060_v50  ;;  %v2030_v0 = vcombine.high %v6057_v32, %v6060_v50 }
 0x32a   : > { %v1282_v26 = vpop.permute.xlu1 %1281  ;;  %v1288_v27 = vpop.permute.xlu0 %1287 }
 0x32b   : > { %v1327_v29 = vcombine.low %v1272_v3, %v1288_v27  ;;  %v1328_v30 = vcombine.high %v1272_v3, %v1288_v27  ;;  %v1379_v45 = vcombine.low %v5992_v51, %v1282_v26  ;;  %v1380_v53 = vcombine.high %v5992_v51, %v1282_v26 }
 0x32d   : > { %v1335_v40 = vrot.slane %v1327_v29, %v5995_v1  ;;  %v1342_v41 = vrot.slane %v1328_v30, %v5995_v1  ;;  %v1387_v6 = vrot.slane %v1379_v45, %v5995_v1  ;;  %v1394_v7 = vrot.slane %v1380_v53, %v5995_v1 }
 0x32e   : > { %v1290_v54 = vpop.permute.xlu1 %1289  ;;  %v6074_v55 = vpop.permute.xlu0 %931 }
 0x32f   : > { %v1343_v57 = vcombine.low %v1319_v38, %v1335_v40  ;;  %v1344_v58 = vcombine.high %v1319_v38, %v1335_v40  ;;  %v1359_v59 = vcombine.low %v1326_v39, %v1342_v41  ;;  %v1360_v60 = vcombine.high %v1326_v39, %v1342_v41 }
 0x330   : > { %v1395_v61 = vcombine.low %v1274_v13, %v1290_v54  ;;  %v1396_v62 = vcombine.high %v1274_v13, %v1290_v54 }
 0x331   : > { %v1351_v51 = vrot.slane %v1343_v57, %v6006_v16  ;;  %v1358_v3 = vrot.slane %v1344_v58, %v6006_v16  ;;  %v1367_v4 = vrot.slane %v1359_v59, %v6006_v16  ;;  %v1374_v5 = vrot.slane %v1360_v60, %v6006_v16 }
 0x332   : > { %v1403_v8 = vrot.slane %v1395_v61, %v5995_v1  ;;  %v1410_v12 = vrot.slane %v1396_v62, %v5995_v1  ;;  %v6090_v13 = vpop.permute.xlu1 %933  ;;  %v1276_v14 = vpop.permute.xlu0 %1275 }
 0x333   : > { %v2175_v20 = vcombine.low %v1351_v51, %v1358_v3  ;;  %v5100_v21 = vcombine.high %v1351_v51, %v1358_v3  ;;  %v2191_v22 = vcombine.low %v1367_v4, %v1374_v5  ;;  %v5101_v23 = vcombine.high %v1367_v4, %v1374_v5 }
 0x334   : > { %v1411_v24 = vcombine.low %v1387_v6, %v1403_v8  ;;  %v1412_v25 = vcombine.high %v1387_v6, %v1403_v8  ;;  %v1427_v26 = vcombine.low %v1394_v7, %v1410_v12  ;;  %v1428_v27 = vcombine.high %v1394_v7, %v1410_v12 }
 0x335   : > { %v6093_v29 = vrot.slane %v2175_v20, %v5995_v1  ;;  %v6096_v30 = vrot.slane %v5100_v21, %v5995_v1  ;;  %v6099_v32 = vrot.slane %v2191_v22, %v5995_v1  ;;  %v6102_v50 = vrot.slane %v5101_v23, %v5995_v1 }
 0x336   : > { %v1419_v38 = vrot.slane %v1411_v24, %v6006_v16  ;;  %v1426_v39 = vrot.slane %v1412_v25, %v6006_v16  ;;  %v1435_v40 = vrot.slane %v1427_v26, %v6006_v16  ;;  %v1442_v41 = vrot.slane %v1428_v27, %v6006_v16  ;;  %v1278_v45 = vpop.permute.xlu1 %1277  ;;  %v1284_v53 = vpop.permute.xlu0 %1283 }
 0x337   : > { %v1447_v54 = vcombine.low %v6020_v52, %v1284_v53  ;;  %v1448_v57 = vcombine.high %v6020_v52, %v1284_v53  ;;  %v2207_v58 = vcombine.low %v6093_v29, %v6096_v30  ;;  %v2223_v59 = vcombine.low %v6099_v32, %v6102_v50 }
 0x338   : > { %v2243_v60 = vcombine.low %v1419_v38, %v1426_v39  ;;  %v5102_v61 = vcombine.high %v1419_v38, %v1426_v39  ;;  %v2259_v62 = vcombine.low %v1435_v40, %v1442_v41  ;;  %v5103_v51 = vcombine.high %v1435_v40, %v1442_v41 }
 0x339   : > { %v6115_v3 = vrot.slane %v2207_v58, %v6006_v16  ;;  %v6118_v4 = vrot.slane %v2223_v59, %v6006_v16  ;;  %v6123_v52 = vpack.c.bf16 %v2027_v44, %v1959_v28  ;;  %v6125_v5 = vpack.c.bf16 %v2028_v56, %v1960_v31 }
 0x33a   : > { %v6128_v6 = vrot.slane %v2243_v60, %v5995_v1  ;;  %v6131_v7 = vrot.slane %v5102_v61, %v5995_v1  ;;  %v6134_v8 = vrot.slane %v2259_v62, %v5995_v1  ;;  %v6137_v12 = vrot.slane %v5103_v51, %v5995_v1  ;;  %v1286_v20 = vpop.permute.xlu1 %1285  ;;  %v1292_v21 = vpop.permute.xlu0 %1291 }
 0x33b   : > { %v1515_v15 = vcombine.low %v6030_v2, %v1286_v20  ;;  %v1516_v17 = vcombine.high %v6030_v2, %v1286_v20  ;;  %v1463_v28 = vcombine.low %v1276_v14, %v1292_v21  ;;  %v1464_v31 = vcombine.high %v1276_v14, %v1292_v21 }
 0x33c   : > { %v1455_v44 = vrot.slane %v1447_v54, %v5995_v1  ;;  %v1462_v56 = vrot.slane %v1448_v57, %v5995_v1  ;;  %v6146_v22 = vpack.c.bf16 %v2029_v63, %v1961_v34  ;;  %v6151_v23 = vpack.c.bf16 %v2030_v0, %v1962_v35 }
 0x33d   : > { %v1471_v24 = vrot.slane %v1463_v28, %v5995_v1  ;;  %v1478_v2 = vrot.slane %v1464_v31, %v5995_v1  ;;  %v2239_v14 = vcombine.low %v6115_v3, %v6118_v4  ;;  %v2275_v25 = vcombine.low %v6128_v6, %v6131_v7 }
 0x33e   : > { %v1523_v26 = vrot.slane %v1515_v15, %v5995_v1  ;;  %v1530_v34 = vrot.slane %v1516_v17, %v5995_v1  ;;  %v1294_v63 = vpop.permute.xlu1 %1293  ;;  %v944_v27 = vpop.permute.xlu0 %943  ;;  %v2291_v18 = vcombine.low %v6134_v8, %v6137_v12  ;;  %v2240_v19 = vcombine.high %v6115_v3, %v6118_v4 }
 0x33f   : > { %v1479_v35 = vcombine.low %v1455_v44, %v1471_v24  ;;  %v1480_v0 = vcombine.high %v1455_v44, %v1471_v24  ;;  %v1495_v38 = vcombine.low %v1462_v56, %v1478_v2  ;;  %v1496_v39 = vcombine.high %v1462_v56, %v1478_v2 }
 0x340   : > { %v1531_v40 = vcombine.low %v1278_v45, %v1294_v63  ;;  %v1532_v41 = vcombine.high %v1278_v45, %v1294_v63  ;;  %v1099_v53 = vcombine.low %v5927_v33, %v944_v27  ;;  %v1100_v54 = vcombine.high %v5927_v33, %v944_v27 }
 0x341   : > { %v1487_v57 = vrot.slane %v1479_v35, %v6006_v16  ;;  %v1494_v58 = vrot.slane %v1480_v0, %v6006_v16  ;;  %v1503_v59 = vrot.slane %v1495_v38, %v6006_v16  ;;  %v1510_v60 = vrot.slane %v1496_v39, %v6006_v16 }
 0x342   : > { %v1539_v61 = vrot.slane %v1531_v40, %v5995_v1  ;;  %v1546_v62 = vrot.slane %v1532_v41, %v5995_v1  ;;  %v2283_v51 = vrot.slane %v2275_v25, %v6006_v16  ;;  %v2299_v45 = vrot.slane %v2291_v18, %v6006_v16  ;;  %v946_v17 = vpop.permute.xlu1 %945  ;;  %v956_v24 = vpop.permute.xlu0 %955 }
 0x343   : > { %v2311_v20 = vcombine.low %v1487_v57, %v1494_v58  ;;  %v5104_v21 = vcombine.high %v1487_v57, %v1494_v58  ;;  %v2327_v15 = vcombine.low %v1503_v59, %v1510_v60  ;;  %v5105_v33 = vcombine.high %v1503_v59, %v1510_v60 }
 0x344   : > { %v1547_v28 = vcombine.low %v1523_v26, %v1539_v61  ;;  %v1548_v31 = vcombine.high %v1523_v26, %v1539_v61  ;;  %v1563_v44 = vcombine.low %v1530_v34, %v1546_v62  ;;  %v1564_v56 = vcombine.high %v1530_v34, %v1546_v62 }
 0x345   : > { %v1107_v2 = vrot.slane %v1099_v53, %v5995_v1  ;;  %v1114_v63 = vrot.slane %v1100_v54, %v5995_v1  ;;  %v2208_v25 = vcombine.high %v6093_v29, %v6096_v30  ;;  %v2224_v27 = vcombine.high %v6099_v32, %v6102_v50 }
 0x346   : > { %v1555_v18 = vrot.slane %v1547_v28, %v6006_v16  ;;  %v1562_v35 = vrot.slane %v1548_v31, %v6006_v16  ;;  %v1571_v26 = vrot.slane %v1563_v44, %v6006_v16  ;;  %v1578_v34 = vrot.slane %v1564_v56, %v6006_v16  ;;  %v958_v61 = vpop.permute.xlu1 %957 }
 0x347   : > { %v1167_v0 = vcombine.low %v5932_v36, %v946_v17  ;;  %v1168_v38 = vcombine.high %v5932_v36, %v946_v17  ;;  %v1115_v39 = vcombine.low %v6074_v55, %v956_v24  ;;  %v1116_v40 = vcombine.high %v6074_v55, %v956_v24 }
 0x348   : > { %v6190_v41 = vrot.slane %v2311_v20, %v5995_v1  ;;  %v6193_v53 = vrot.slane %v5104_v21, %v5995_v1  ;;  %v6196_v54 = vrot.slane %v2327_v15, %v5995_v1  ;;  %v6199_v57 = vrot.slane %v5105_v33, %v5995_v1 }
 0x349   : > { %v2379_v58 = vcombine.low %v1555_v18, %v1562_v35  ;;  %v5106_v59 = vcombine.high %v1555_v18, %v1562_v35  ;;  %v1123_v36 = vrot.slane %v1115_v39, %v5995_v1  ;;  %v1130_v60 = vrot.slane %v1116_v40, %v5995_v1 }
 0x34a   : > { %v2395_v55 = vcombine.low %v1571_v26, %v1578_v34  ;;  %v5107_v62 = vcombine.high %v1571_v26, %v1578_v34  ;;  %v1175_v20 = vrot.slane %v1167_v0, %v5995_v1  ;;  %v1182_v21 = vrot.slane %v1168_v38, %v5995_v1 }
 0x34b   : > { %v1131_v17 = vcombine.low %v1107_v2, %v1123_v36  ;;  %v1132_v28 = vcombine.high %v1107_v2, %v1123_v36  ;;  %v1147_v15 = vcombine.low %v1114_v63, %v1130_v60  ;;  %v1148_v31 = vcombine.high %v1114_v63, %v1130_v60  ;;  %v1588_v63 = vpop.permute.xlu0 %1587  ;;  %v6219_v36 = vpop.permute.xlu1 %1589 }
 0x34c   : > { %v2307_v44 = vcombine.low %v2283_v51, %v2299_v45  ;;  %v2308_v33 = vcombine.high %v2283_v51, %v2299_v45  ;;  %v1183_v56 = vcombine.low %v6090_v13, %v958_v61  ;;  %v1184_v24 = vcombine.high %v6090_v13, %v958_v61 }
 0x34d   : > { %v1139_v18 = vrot.slane %v1131_v17, %v6006_v16  ;;  %v1146_v35 = vrot.slane %v1132_v28, %v6006_v16  ;;  %v1155_v26 = vrot.slane %v1147_v15, %v6006_v16  ;;  %v1162_v34 = vrot.slane %v1148_v31, %v6006_v16 }
 0x34e   : > { %v2447_v2 = vpack.c.bf16 %v2307_v44, %v2239_v14  ;;  %v2448_v51 = vpack.c.bf16 %v2308_v33, %v2240_v19  ;;  %v1191_v45 = vrot.slane %v1183_v56, %v5995_v1  ;;  %v1198_v13 = vrot.slane %v1184_v24, %v5995_v1 }
 0x34f   : > { %v2031_v0 = vcombine.low %v1139_v18, %v1146_v35  ;;  %v5096_v38 = vcombine.high %v1139_v18, %v1146_v35  ;;  %v2047_v39 = vcombine.low %v1155_v26, %v1162_v34  ;;  %v5097_v40 = vcombine.high %v1155_v26, %v1162_v34 }
 0x350   : > { %v2749_v60 = vsel %vm2744_vm3, %v2447_v2, 0  ;;  %v2796_v61 = vsel %vm2744_vm3, %v2448_v51, 0  ;;  %v1199_v14 = vcombine.low %v1175_v20, %v1191_v45  ;;  %v1200_v17 = vcombine.high %v1175_v20, %v1191_v45  ;;  %v1612_v2 = vpop.permute.xlu0 %1611 }
 0x351   : > { %v2038_v3 = vrot.slane %v2031_v0, %v5995_v1  ;;  %v2046_v4 = vrot.slane %v5096_v38, %v5995_v1  ;;  %v2054_v19 = vrot.slane %v2047_v39, %v5995_v1  ;;  %v2062_v28 = vrot.slane %v5097_v40, %v5995_v1  ;;  %5258 = vmatpush3.bf16.xpose.msra.mxu0 %v2749_v60 }
 0x352   : > { %5264 = vmatpush3.bf16.xpose.msra.mxu1 %v2796_v61  ;;  %v1207_v15 = vrot.slane %v1199_v14, %v6006_v16  ;;  %v1214_v31 = vrot.slane %v1200_v17, %v6006_v16  ;;  %v1215_v44 = vcombine.low %v1182_v21, %v1198_v13  ;;  %v1216_v33 = vcombine.high %v1182_v21, %v1198_v13 }
 0x353   : > { %v6230_v56 = vrot.slane %v2379_v58, %v5995_v1  ;;  %v6233_v20 = vrot.slane %v5106_v59, %v5995_v1  ;;  %v6236_v24 = vrot.slane %v2395_v55, %v5995_v1  ;;  %v6239_v18 = vrot.slane %v5107_v62, %v5995_v1  ;;  %5269 = vmatprep.subr.bf16.mxu1 %v5651_v42  ;;  %v1600_v55 = vpop.permute.xlu1 %1599 }
 0x354   : > { %v1223_v35 = vrot.slane %v1215_v44, %v6006_v16  ;;  %v1230_v26 = vrot.slane %v1216_v33, %v6006_v16  ;;  %v2099_v34 = vcombine.low %v1207_v15, %v1214_v31  ;;  %v5098_v21 = vcombine.high %v1207_v15, %v1214_v31  ;;  %5275 = vmatprep.subr.bf16.mxu0 %v5651_v42 }
 0x355   : > { %v2063_v58 = vcombine.low %v2038_v3, %v2046_v4  ;;  %v2064_v59 = vcombine.high %v2038_v3, %v2046_v4  ;;  %v2079_v51 = vcombine.low %v2054_v19, %v2062_v28  ;;  %v2080_v45 = vcombine.high %v2054_v19, %v2062_v28 }
 0x356   : > { %v2106_v13 = vrot.slane %v2099_v34, %v5995_v1  ;;  %v2114_v62 = vrot.slane %v5098_v21, %v5995_v1  ;;  %v2115_v0 = vcombine.low %v1223_v35, %v1230_v26  ;;  %v5099_v38 = vcombine.high %v1223_v35, %v1230_v26 }
 0x357   : > { %v1639_v39 = vcombine.low %v1588_v63, %v1612_v2  ;;  %v1640_v40 = vcombine.high %v1588_v63, %v1612_v2  ;;  %v2222_v60 = vrot.slane %v2208_v25, %v6006_v16  ;;  %v2238_v61 = vrot.slane %v2224_v27, %v6006_v16 }
 0x358   : > { %v2122_v14 = vrot.slane %v2115_v0, %v5995_v1  ;;  %v2130_v17 = vrot.slane %v5099_v38, %v5995_v1  ;;  %v2131_v3 = vcombine.low %v2106_v13, %v2114_v62  ;;  %v2132_v4 = vcombine.high %v2106_v13, %v2114_v62  ;;  %5260 = vmatmul.mubr.msk.bf16.vlgmr.msra.gmra.mrb[8].mxu0 %vm2744_vm3, %v6123_v52 }
 0x359   : > { %v6260_v63 = vrot.slane %v2063_v58, %v6006_v16  ;;  %v6263_v29 = vrot.slane %v2064_v59, %v6006_v16  ;;  %v6266_v30 = vrot.slane %v2079_v51, %v6006_v16  ;;  %5266 = vmatmul.mubr.msk.bf16.vlgmr.msra.gmra.mrb[0].mxu1 %vm2744_vm3, %v6125_v5  ;;  %v2276_v32 = vcombine.high %v6128_v6, %v6131_v7  ;;  %v1602_v6 = vpop.permute.xlu1 %1601 }
 0x35a   : > { %v6273_v50 = vrot.slane %v2080_v45, %v6006_v16  ;;  %v2147_v25 = vcombine.low %v2122_v14, %v2130_v17  ;;  %v1647_v52 = vrot.slane %v1639_v39, %v5995_v1  ;;  %v1654_v27 = vrot.slane %v1640_v40, %v5995_v1  ;;  %5271 = vmatprep.mubr.msk.bf16.mxu1 %vm5652_vm2, %v5651_v42 }
 0x35b   : > { %v2241_v19 = vcombine.low %v2222_v60, %v2238_v61  ;;  %v2290_v28 = vrot.slane %v2276_v32, %v6006_v16  ;;  %v2292_v5 = vcombine.high %v6134_v8, %v6137_v12  ;;  %v1623_v15 = vcombine.low %v5955_v46, %v1600_v55  ;;  %5277 = vmatprep.mubr.msk.bf16.mxu0 %vm5652_vm2, %v5651_v42 }
 0x35c   : > { %v6286_v7 = vrot.slane %v2131_v3, %v6006_v16  ;;  %v6289_v31 = vrot.slane %v2132_v4, %v6006_v16  ;;  %v2148_v44 = vcombine.high %v2122_v14, %v2130_v17  ;;  %v1624_v33 = vcombine.high %v5955_v46, %v1600_v55 }
 0x35d   : > { %v6293_v35 = vrot.slane %v2147_v25, %v6006_v16  ;;  %v2306_v8 = vrot.slane %v2292_v5, %v6006_v16  ;;  %v2242_v12 = vcombine.high %v2222_v60, %v2238_v61  ;;  %v1631_v26 = vrot.slane %v1623_v15, %v5995_v1 }
 0x35e   : > { %v1638_v34 = vrot.slane %v1624_v33, %v5995_v1  ;;  %v1691_v21 = vcombine.low %v5962_v47, %v1602_v6  ;;  %v2343_v2 = vcombine.low %v6190_v41, %v6193_v53  ;;  %v2359_v58 = vcombine.low %v6196_v54, %v6199_v57 }
 0x35f   : > { %v2309_v59 = vcombine.low %v2290_v28, %v2306_v8  ;;  %v2310_v46 = vcombine.high %v2290_v28, %v2306_v8  ;;  %v1655_v51 = vcombine.low %v1631_v26, %v1647_v52  ;;  %v1656_v45 = vcombine.high %v1631_v26, %v1647_v52  ;;  %v1614_v52 = vpop.permute.xlu1 %1613 }
 0x360   : > { %v1671_v55 = vcombine.low %v1638_v34, %v1654_v27  ;;  %v1672_v13 = vcombine.high %v1638_v34, %v1654_v27  ;;  %v1692_v62 = vcombine.high %v5962_v47, %v1602_v6  ;;  %v2411_v0 = vcombine.low %v6230_v56, %v6233_v20 }
 0x361   : > { %v2449_v38 = vpack.c.bf16 %v2309_v59, %v2241_v19  ;;  %v2450_v39 = vpack.c.bf16 %v2310_v46, %v2242_v12  ;;  %v1663_v40 = vrot.slane %v1655_v51, %v6006_v16  ;;  %v1670_v60 = vrot.slane %v1656_v45, %v6006_v16 }
 0x362   : > { %v6309_v61 = vrot.slane %v1671_v55, %v6006_v16  ;;  %v6312_v14 = vrot.slane %v1672_v13, %v6006_v16  ;;  %v2351_v17 = vrot.slane %v2343_v2, %v6006_v16  ;;  %v2367_v3 = vrot.slane %v2359_v58, %v6006_v16 }
 0x363   : > { %v2843_v47 = vsel %vm2744_vm3, %v2449_v38, 0  ;;  %v2890_v4 = vsel %vm2744_vm3, %v2450_v39, 0  ;;  %v2455_v32 = vcombine.low %v1663_v40, %v1670_v60  ;;  %v5108_v25 = vcombine.high %v1663_v40, %v1670_v60 }
 0x364   : > { %v6319_v27 = vrot.slane %v2148_v44, %v6006_v16  ;;  %5270 = vmatpush3.bf16.xpose.msra.mxu1 %v2843_v47  ;;  %5276 = vmatpush3.bf16.xpose.msra.mxu0 %v2890_v4  ;;  %v1699_v19 = vrot.slane %v1691_v21, %v5995_v1  ;;  %v1706_v28 = vrot.slane %v1692_v62, %v5995_v1 }
 0x365   : > { %v2471_v5 = vcombine.low %v6309_v61, %v6312_v14  ;;  %5281 = vmatprep.subr.bf16.mxu1 %v5651_v42  ;;  %5287 = vmatprep.subr.bf16.mxu0 %v5651_v42  ;;  %v2419_v15 = vrot.slane %v2411_v0, %v6006_v16  ;;  %v2427_v6 = vcombine.low %v6236_v24, %v6239_v18 }
 0x366   : > { %v6331_v44 = vrot.slane %v2455_v32, %v5995_v1  ;;  %v5109_v33 = vcombine.high %v6309_v61, %v6312_v14  ;;  %v2375_v8 = vcombine.low %v2351_v17, %v2367_v3  ;;  %v1707_v12 = vcombine.low %v6219_v36, %v1614_v52 }
 0x367   : > { %v6337_v26 = vrot.slane %v5108_v25, %v5995_v1  ;;  %v2435_v34 = vrot.slane %v2427_v6, %v6006_v16  ;;  %v2376_v21 = vcombine.high %v2351_v17, %v2367_v3  ;;  %v1708_v2 = vcombine.high %v6219_v36, %v1614_v52 }
 0x368   : > { %v1715_v58 = vrot.slane %v1707_v12, %v5995_v1  ;;  %v2095_v59 = vcombine.low %v6260_v63, %v6266_v30  ;;  %v2163_v46 = vcombine.low %v6286_v7, %v6293_v35  ;;  %v2344_v51 = vcombine.high %v6190_v41, %v6193_v53 }
 0x369   : > { %v2443_v45 = vcombine.low %v2419_v15, %v2435_v34  ;;  %v2444_v55 = vcombine.high %v2419_v15, %v2435_v34  ;;  %v1722_v13 = vrot.slane %v1708_v2, %v5995_v1  ;;  %v2096_v62 = vcombine.high %v6260_v63, %v6266_v30 }
 0x36a   : > { %v1723_v0 = vcombine.low %v1699_v19, %v1715_v58  ;;  %v1724_v36 = vcombine.high %v1699_v19, %v1715_v58  ;;  %v2164_v38 = vcombine.high %v6286_v7, %v6293_v35  ;;  %v2358_v39 = vrot.slane %v2344_v51, %v6006_v16 }
 0x36b   : > { %5272 = vmatmul.mubr.msk.bf16.vlgmr.msra.gmra.mrb[4].mxu1 %vm2744_vm3, %v6146_v22  ;;  %5278 = vmatmul.mubr.msk.bf16.vlgmr.msra.gmra.mrb[12].mxu0 %vm2744_vm3, %v6151_v23  ;;  %v2451_v41 = vpack.c.bf16 %v2443_v45, %v2375_v8  ;;  %v2452_v53 = vpack.c.bf16 %v2444_v55, %v2376_v21  ;;  %v1739_v40 = vcombine.low %v1706_v28, %v1722_v13 }
 0x36c   : > { %v1731_v60 = vrot.slane %v1723_v0, %v6006_v16  ;;  %v1738_v63 = vrot.slane %v1724_v36, %v6006_v16  ;;  %v1740_v30 = vcombine.high %v1706_v28, %v1722_v13  ;;  %5283 = vmatprep.mubr.msk.bf16.mxu1 %vm5652_vm2, %v5651_v42  ;;  %5289 = vmatprep.mubr.msk.bf16.mxu0 %vm5652_vm2, %v5651_v42 }
 0x36d   : > { %v2937_v7 = vsel %vm2744_vm3, %v2451_v41, 0  ;;  %v2984_v22 = vsel %vm2744_vm3, %v2452_v53, 0  ;;  %v1747_v23 = vrot.slane %v1739_v40, %v6006_v16  ;;  %v2360_v35 = vcombine.high %v6196_v54, %v6199_v57 }
 0x36e   : > { %5282 = vmatpush3.bf16.xpose.msra.mxu1 %v2937_v7  ;;  %5288 = vmatpush3.bf16.xpose.msra.mxu0 %v2984_v22  ;;  %v1754_v61 = vrot.slane %v1740_v30, %v6006_v16  ;;  %v2523_v14 = vcombine.low %v1731_v60, %v1738_v63  ;;  %v5110_v17 = vcombine.high %v1731_v60, %v1738_v63 }
 0x36f   : > { %5293 = vmatprep.subr.bf16.mxu1 %v5651_v42  ;;  %5299 = vmatprep.subr.bf16.mxu0 %v5651_v42  ;;  %v2374_v3 = vrot.slane %v2360_v35, %v6006_v16  ;;  %v2412_v47 = vcombine.high %v6230_v56, %v6233_v20  ;;  %v2428_v4 = vcombine.high %v6236_v24, %v6239_v18 }
 0x370   : > { %v2478_v54 = vrot.slane %v2471_v5, %v5995_v1  ;;  %v2486_v57 = vrot.slane %v5109_v33, %v5995_v1  ;;  %v2539_v32 = vcombine.low %v1747_v23, %v1754_v61  ;;  %v5111_v25 = vcombine.high %v1747_v23, %v1754_v61 }
 0x371   : > { %v2171_v52 = vpack.c.bf16 %v2163_v46, %v2095_v59  ;;  %v2172_v19 = vpack.c.bf16 %v2164_v38, %v2096_v62  ;;  %v2426_v28 = vrot.slane %v2412_v47, %v6006_v16  ;;  %v2442_v15 = vrot.slane %v2428_v4, %v6006_v16 }
 0x372   : > { %v2530_v6 = vrot.slane %v2523_v14, %v5995_v1  ;;  %v2538_v8 = vrot.slane %v5110_v17, %v5995_v1  ;;  %v2377_v56 = vcombine.low %v2358_v39, %v2374_v3  ;;  %v2378_v20 = vcombine.high %v2358_v39, %v2374_v3 }
 0x373   : > { %v2546_v24 = vrot.slane %v2539_v32, %v5995_v1  ;;  %v2554_v18 = vrot.slane %v5111_v25, %v5995_v1  ;;  %v2445_v5 = vcombine.low %v2426_v28, %v2442_v15  ;;  %v2446_v33 = vcombine.high %v2426_v28, %v2442_v15 }
 0x374   : > { %v2097_v12 = vcombine.low %v6263_v29, %v6273_v50  ;;  %v2165_v34 = vcombine.low %v6289_v31, %v6319_v27  ;;  %v2098_v58 = vcombine.high %v6263_v29, %v6273_v50  ;;  %v2166_v59 = vcombine.high %v6289_v31, %v6319_v27 }
 0x375   : > { %5284 = vmatmul.mubr.msk.bf16.vlgmr.msra.gmra.mrb[8].mxu1 %vm2744_vm3, %v2171_v52  ;;  %5290 = vmatmul.mubr.msk.bf16.vlgmr.msra.gmra.mrb[16].mxu0 %vm2744_vm3, %v2172_v19  ;;  %v2453_v21 = vpack.c.bf16 %v2445_v5, %v2377_v56  ;;  %v2454_v2 = vpack.c.bf16 %v2446_v33, %v2378_v20  ;;  %v2487_v46 = vcombine.low %v6331_v44, %v6337_v26 }
 0x376   : > { %5295 = vmatprep.mubr.msk.bf16.mxu1 %vm5652_vm2, %v5651_v42  ;;  %5301 = vmatprep.mubr.msk.bf16.mxu0 %vm5652_vm2, %v5651_v42  ;;  %v2503_v51 = vcombine.low %v2478_v54, %v2486_v57  ;;  %v2555_v13 = vcombine.low %v2530_v6, %v2538_v8  ;;  %v2571_v62 = vcombine.low %v2546_v24, %v2554_v18 }
 0x377   : > { %v3031_v45 = vsel %vm2744_vm3, %v2453_v21, 0  ;;  %v3078_v55 = vsel %vm2744_vm3, %v2454_v2, 0  ;;  %v2495_v29 = vrot.slane %v2487_v46, %v6006_v16  ;;  %v2488_v0 = vcombine.high %v6331_v44, %v6337_v26 }
 0x378   : > { %5294 = vmatpush3.bf16.xpose.msra.mxu1 %v3031_v45  ;;  %5300 = vmatpush3.bf16.xpose.msra.mxu0 %v3078_v55  ;;  %v2511_v50 = vrot.slane %v2503_v51, %v6006_v16  ;;  %v2563_v31 = vrot.slane %v2555_v13, %v6006_v16  ;;  %v2579_v27 = vrot.slane %v2571_v62, %v6006_v16 }
 0x379   : > { %5305 = vmatprep.subr.bf16.mxu1 %v5651_v42  ;;  %5311 = vmatprep.subr.bf16.mxu0 %v5651_v42  ;;  %v2504_v36 = vcombine.high %v2478_v54, %v2486_v57  ;;  %v2502_v41 = vrot.slane %v2488_v0, %v6006_v16  ;;  %v2556_v53 = vcombine.high %v2530_v6, %v2538_v8  ;;  %v2739_v54 = vand.u32 127, %v810_v9 }
 0x37a   : > { %v2519_v38 = vcombine.low %v2495_v29, %v2511_v50  ;;  %v2520_v39 = vcombine.high %v2495_v29, %v2511_v50  ;;  %v2587_v40 = vcombine.low %v2563_v31, %v2579_v27  ;;  %v2588_v60 = vcombine.high %v2563_v31, %v2579_v27 }
 0x37b   : > { %v2518_v63 = vrot.slane %v2504_v36, %v6006_v16  ;;  %v2572_v30 = vcombine.high %v2546_v24, %v2554_v18  ;;  %v2173_v44 = vpack.c.bf16 %v2165_v34, %v2097_v12  ;;  %v2174_v26 = vpack.c.bf16 %v2166_v59, %v2098_v58 }
 0x37c   : > { %v2570_v7 = vrot.slane %v2556_v53, %v6006_v16  ;;  %v2727_v22 = vpack.c.bf16 %v2587_v40, %v2519_v38  ;;  %v2728_v23 = vpack.c.bf16 %v2588_v60, %v2520_v39  ;;  %v2737_v57 = vadd.s32 8, %v5873_v10 }
 0x37d   : > { %v2521_v35 = vcombine.low %v2502_v41, %v2518_v63  ;;  %v2586_v61 = vrot.slane %v2572_v30, %v6006_v16  ;;  %v2522_v14 = vcombine.high %v2502_v41, %v2518_v63  ;;  %vm2740_vm4 = vcmp.gt.s32.totalorder %v2739_v54, %v5873_v10 }
 0x37e   : > { %vm2741_vm5 = vcmp.gt.s32.totalorder %v2739_v54, %v2737_v57  ;;  %v6431_v32 = vsel %vm2740_vm4, -1e+30, %v5651_v42 }
 0x37f   : > { %5296 = vmatmul.mubr.msk.bf16.vlgmr.msra.gmra.mrb[12].mxu1 %vm2744_vm3, %v2173_v44  ;;  %5302 = vmatmul.mubr.msk.bf16.vlgmr.msra.gmra.mrb[20].mxu0 %vm2744_vm3, %v2174_v26  ;;  %v2589_v17 = vcombine.low %v2570_v7, %v2586_v61  ;;  %v2590_v3 = vcombine.high %v2570_v7, %v2586_v61  ;;  %v6434_v52 = vsel %vm2741_vm5, -1e+30, %v5651_v42 }
 0x380   : > { %5306 = vmatpush3.bf16.msra.mxu1 %v2727_v22  ;;  %5312 = vmatpush3.bf16.msra.mxu0 %v2728_v23 }
 0x381   : > { %5307 = vmatprep.mubr.msk.bf16.mxu1 %vm5652_vm2, %v5651_v42  ;;  %5317 = vmatprep.subr.bf16.mxu1 %v5651_v42  ;;  %v6420_v47 = vpack.c.bf16 %v2589_v17, %v2521_v35  ;;  %v6422_v4 = vpack.c.bf16 %v2590_v3, %v2522_v14 }
 0x382   : > { %5313 = vmatprep.mubr.msk.bf16.mxu0 %vm5652_vm2, %v5651_v42  ;;  %5323 = vmatprep.subr.bf16.mxu0 %v5651_v42 }
 0x42b   : > { %v2785_v25 = vpop.f32.mrb[8].mxu0 }
 0x42c   : > { %v6437_v19 = vadd.f32 %v2785_v25, %v6431_v32  ;;  %v2832_v28 = vpop.f32.mrb[0].mxu1  ;;  %v5261_v15 = vpop.f32.mrb[9].mxu0 }
 0x42d   : > { %v5267_v6 = vpop.f32.mrb[1].mxu1  ;;  %v2788_v8 = vpop.f32.mrb[10].mxu0  ;;  %v6440_v9 = vadd.f32 %v2832_v28, %v6431_v32 }
 0x42e   : > { %v6443_v56 = vadd.f32 %v2788_v8, %v6434_v52  ;;  %v2835_v20 = vpop.f32.mrb[2].mxu1  ;;  %v5262_v24 = vpop.f32.mrb[11].mxu0  ;;  %v3121_v18 = vsel %vm2744_vm3, %v6437_v19, -inf }
 0x42f   : > { %v5268_v5 = vpop.f32.mrb[3].mxu1  ;;  %3122 = vmax.xlane.f32.xlu0 %v3121_v18  ;;  %v6450_v12 = vadd.f32 %v2835_v20, %v6434_v52  ;;  %v3127_v34 = vsel %vm2744_vm3, %v6440_v9, -inf }
 0x430   : > { %v3124_v33 = vsel %vm2744_vm3, %v6443_v56, -inf }
 0x431   : > { %3125 = vmax.xlane.f32.xlu1 %v3124_v33  ;;  %v3130_v21 = vsel %vm2744_vm3, %v6450_v12, -inf }
 0x433   : > { %3128 = vmax.xlane.f32.xlu0 %v3127_v34 }
 0x437   : > { %3131 = vmax.xlane.f32.xlu0 %v3130_v21 }
 0x43e   : > { %v2879_v2 = vpop.f32.mrb[4].mxu1  ;;  %v2926_v58 = vpop.f32.mrb[12].mxu0 }
 0x43f   : > { %v6457_v59 = vadd.f32 %v2879_v2, %v6431_v32  ;;  %v5273_v46 = vpop.f32.mrb[5].mxu1  ;;  %v5279_v51 = vpop.f32.mrb[13].mxu0  ;;  %v6460_v13 = vadd.f32 %v2926_v58, %v6431_v32 }
 0x440   : > { %v2882_v45 = vpop.f32.mrb[6].mxu1  ;;  %v2929_v55 = vpop.f32.mrb[14].mxu0 }
 0x441   : > { %v6463_v62 = vadd.f32 %v2882_v45, %v6434_v52  ;;  %v5274_v29 = vpop.f32.mrb[7].mxu1  ;;  %v5280_v50 = vpop.f32.mrb[15].mxu0  ;;  %v3133_v0 = vsel %vm2744_vm3, %v6457_v59, -inf  ;;  %v6468_v31 = vadd.f32 %v2929_v55, %v6434_v52  ;;  %v3139_v36 = vsel %vm2744_vm3, %v6460_v13, -inf }
 0x442   : > { %3134 = vmax.xlane.f32.xlu0 %v3133_v0  ;;  %v6522_v2 = vpop.permute.xlu0 %1591 }
 0x443   : > { %v3136_v27 = vsel %vm2744_vm3, %v6463_v62, -inf  ;;  %v3142_v38 = vsel %vm2744_vm3, %v6468_v31, -inf }
 0x444   : > { %3137 = vmax.xlane.f32.xlu1 %v3136_v27 }
 0x446   : > { %3140 = vmax.xlane.f32.xlu0 %v3139_v36 }
 0x448   : > { %v2973_v39 = vpop.f32.mrb[8].mxu1  ;;  %v3020_v41 = vpop.f32.mrb[16].mxu0  ;;  %3143 = vmax.xlane.f32.xlu1 %v3142_v38 }
 0x449   : > { %v6477_v53 = vadd.f32 %v2973_v39, %v6431_v32  ;;  %v5285_v40 = vpop.f32.mrb[9].mxu1  ;;  %v5291_v60 = vpop.f32.mrb[17].mxu0  ;;  %v6480_v44 = vadd.f32 %v3020_v41, %v6431_v32 }
 0x44a   : > { %v2976_v63 = vpop.f32.mrb[10].mxu1  ;;  %v3023_v30 = vpop.f32.mrb[18].mxu0 }
 0x44b   : > { %v6483_v26 = vadd.f32 %v2976_v63, %v6434_v52  ;;  %v5286_v7 = vpop.f32.mrb[11].mxu1  ;;  %v5292_v22 = vpop.f32.mrb[19].mxu0  ;;  %v3145_v23 = vsel %vm2744_vm3, %v6477_v53, -inf  ;;  %v6488_v35 = vadd.f32 %v3023_v30, %v6434_v52  ;;  %v3151_v14 = vsel %vm2744_vm3, %v6480_v44, -inf }
 0x44c   : > { %3146 = vmax.xlane.f32.xlu0 %v3145_v23 }
 0x44d   : > { %v3148_v61 = vsel %vm2744_vm3, %v6483_v26, -inf  ;;  %v3154_v17 = vsel %vm2744_vm3, %v6488_v35, -inf }
 0x44e   : > { %3149 = vmax.xlane.f32.xlu1 %v3148_v61 }
 0x450   : > { %3152 = vmax.xlane.f32.xlu0 %v3151_v14 }
 0x452   : > { %v3114_v3 = vpop.f32.mrb[20].mxu0  ;;  %v3067_v54 = vpop.f32.mrb[12].mxu1  ;;  %3155 = vmax.xlane.f32.xlu1 %v3154_v17 }
 0x453   : > { %v6497_v57 = vadd.f32 %v3067_v54, %v6431_v32  ;;  %v5297_v25 = vpop.f32.mrb[13].mxu1  ;;  %v5303_v28 = vpop.f32.mrb[21].mxu0  ;;  %v6500_v8 = vadd.f32 %v3114_v3, %v6431_v32 }
 0x454   : > { %v3117_v15 = vpop.f32.mrb[22].mxu0  ;;  %v3070_v6 = vpop.f32.mrb[14].mxu1 }
 0x455   : > { %v6503_v20 = vadd.f32 %v3070_v6, %v6434_v52  ;;  %v5298_v24 = vpop.f32.mrb[15].mxu1  ;;  %v5304_v18 = vpop.f32.mrb[23].mxu0  ;;  %v3157_v5 = vsel %vm2744_vm3, %v6497_v57, -inf  ;;  %v6508_v33 = vadd.f32 %v3117_v15, %v6434_v52  ;;  %v3163_v32 = vsel %vm2744_vm3, %v6500_v8, -inf }
 0x456   : > { %3158 = vmax.xlane.f32.xlu0 %v3157_v5  ;;  %v6520_v52 = vpop.permute.xlu1 %1593 }
 0x457   : > { %v3160_v34 = vsel %vm2744_vm3, %v6503_v20, -inf  ;;  %v3166_v21 = vsel %vm2744_vm3, %v6508_v33, -inf }
 0x458   : > { %3161 = vmax.xlane.f32.xlu1 %v3160_v34 }
 0x45a   : > { %3164 = vmax.xlane.f32.xlu0 %v3163_v32  ;;  %v6524_v58 = vpop.permute.xlu1 %1603 }
 0x45c   : > { %3167 = vmax.xlane.f32.xlu1 %v3166_v21 }
 0x46d   : > { %1605 = vrot.lane.b32.xlu1 %v5984_v49, %s5647_s17 }
 0x470   : > { %1615 = vrot.lane.b32.xlu0 %v5973_v48, %s5649_s14 }
 0x4bc   : > { %v3123_v46 = vpop.xlane.xlu0 %3122 }
 0x4bd   : > { %v3169_v51 = vsub.f32 %v6437_v19, %v3123_v46 }
 0x4be   : > { %v3126_v45 = vpop.xlane.xlu1 %3125 }
 0x4bf   : > { %v3185_v55 = vmul.f32 1.442695, %v3169_v51  ;;  %v3170_v29 = vsub.f32 %v6443_v56, %v3126_v45 }
 0x4c0   : > { %v3129_v50 = vpop.xlane.xlu0 %3128 }
 0x4c1   : > { %5492 = vpow2.f32 %v3185_v55  ;;  %v3187_v0 = vmul.f32 1.442695, %v3170_v29  ;;  %v3171_v27 = vsub.f32 %v6440_v9, %v3129_v50 }
 0x4c3   : > { %5494 = vpow2.f32 %v3187_v0  ;;  %v3189_v36 = vmul.f32 1.442695, %v3171_v27 }
 0x4c4   : > { %v3132_v38 = vpop.xlane.xlu0 %3131 }
 0x4c5   : > { %5496 = vpow2.f32 %v3189_v36  ;;  %v3172_v39 = vsub.f32 %v6450_v12, %v3132_v38 }
 0x4c7   : > { %v3191_v41 = vmul.f32 1.442695, %v3172_v39 }
 0x4c9   : > { %5498 = vpow2.f32 %v3191_v41 }
 0x4cb   : > { %v6530_v40 = vpop.eup %5492 }
 0x4cc   : > { %v3217_v19 = vsel %vm2744_vm3, %v6530_v40, 0.0 }
 0x4cd   : > { %v6534_v60 = vpop.eup %5494  ;;  %3218 = vadd.xlane.f32.xlu0 %v3217_v19 }
 0x4ce   : > { %v3220_v56 = vsel %vm2744_vm3, %v6534_v60, 0.0 }
 0x4cf   : > { %v6538_v9 = vpop.eup %5496  ;;  %v3135_v63 = vpop.xlane.xlu0 %3134  ;;  %3221 = vadd.xlane.f32.xlu1 %v3220_v56 }
 0x4d0   : > { %v3173_v30 = vsub.f32 %v6457_v59, %v3135_v63  ;;  %v3223_v12 = vsel %vm2744_vm3, %v6538_v9, 0.0 }
 0x4d1   : > { %v3138_v7 = vpop.xlane.xlu1 %3137  ;;  %3224 = vadd.xlane.f32.xlu0 %v3223_v12 }
 0x4d2   : > { %v3174_v22 = vsub.f32 %v6463_v62, %v3138_v7  ;;  %v3193_v23 = vmul.f32 1.442695, %v3173_v30 }
 0x4d3   : > { %v6544_v61 = vpop.eup %5498  ;;  %v3141_v14 = vpop.xlane.xlu0 %3140 }
 0x4d4   : > { %v3195_v17 = vmul.f32 1.442695, %v3174_v22  ;;  %5500 = vpow2.f32 %v3193_v23  ;;  %v3175_v3 = vsub.f32 %v6460_v13, %v3141_v14  ;;  %v3226_v54 = vsel %vm2744_vm3, %v6544_v61, 0.0 }
 0x4d5   : > { %v3144_v25 = vpop.xlane.xlu1 %3143  ;;  %3227 = vadd.xlane.f32.xlu1 %v3226_v54 }
 0x4d6   : > { %5502 = vpow2.f32 %v3195_v17  ;;  %v3176_v59 = vsub.f32 %v6468_v31, %v3144_v25  ;;  %v3197_v28 = vmul.f32 1.442695, %v3175_v3 }
 0x4d8   : > { %v3199_v15 = vmul.f32 1.442695, %v3176_v59  ;;  %5504 = vpow2.f32 %v3197_v28 }
 0x4d9   : > { %v3147_v62 = vpop.xlane.xlu0 %3146 }
 0x4da   : > { %5506 = vpow2.f32 %v3199_v15  ;;  %v3177_v6 = vsub.f32 %v6477_v53, %v3147_v62 }
 0x4db   : > { %v3150_v24 = vpop.xlane.xlu1 %3149 }
 0x4dc   : > { %v3178_v18 = vsub.f32 %v6483_v26, %v3150_v24  ;;  %v3201_v5 = vmul.f32 1.442695, %v3177_v6 }
 0x4dd   : > { %v3153_v13 = vpop.xlane.xlu0 %3152 }
 0x4de   : > { %v6552_v34 = vpop.eup %5500  ;;  %v3203_v32 = vmul.f32 1.442695, %v3178_v18  ;;  %5508 = vpow2.f32 %v3201_v5  ;;  %v3179_v21 = vsub.f32 %v6480_v44, %v3153_v13 }
 0x4df   : > { %v3156_v46 = vpop.xlane.xlu1 %3155  ;;  %v3229_v31 = vsel %vm2744_vm3, %v6552_v34, 0.0 }
 0x4e0   : > { %v6557_v51 = vpop.eup %5502  ;;  %5510 = vpow2.f32 %v3203_v32  ;;  %v3180_v53 = vsub.f32 %v6488_v35, %v3156_v46  ;;  %v3205_v45 = vmul.f32 1.442695, %v3179_v21  ;;  %3230 = vadd.xlane.f32.xlu0 %v3229_v31 }
 0x4e1   : > { %v3232_v26 = vsel %vm2744_vm3, %v6557_v51, 0.0 }
 0x4e2   : > { %v6562_v55 = vpop.eup %5504  ;;  %v3207_v29 = vmul.f32 1.442695, %v3180_v53  ;;  %3233 = vadd.xlane.f32.xlu1 %v3232_v26  ;;  %5512 = vpow2.f32 %v3205_v45 }
 0x4e3   : > { %v3159_v44 = vpop.xlane.xlu0 %3158  ;;  %v3235_v50 = vsel %vm2744_vm3, %v6562_v55, 0.0 }
 0x4e4   : > { %v6566_v0 = vpop.eup %5506  ;;  %5514 = vpow2.f32 %v3207_v29  ;;  %v3181_v27 = vsub.f32 %v6497_v57, %v3159_v44  ;;  %3236 = vadd.xlane.f32.xlu0 %v3235_v50 }
 0x4e5   : > { %v3162_v35 = vpop.xlane.xlu1 %3161  ;;  %v3238_v39 = vsel %vm2744_vm3, %v6566_v0, 0.0 }
 0x4e6   : > { %v3209_v36 = vmul.f32 1.442695, %v3181_v27  ;;  %v3182_v15 = vsub.f32 %v6503_v20, %v3162_v35 }
 0x4e7   : > { %v3165_v38 = vpop.xlane.xlu0 %3164 }
 0x4e8   : > { %v6571_v41 = vpop.eup %5508  ;;  %5516 = vpow2.f32 %v3209_v36  ;;  %v3183_v19 = vsub.f32 %v6500_v8, %v3165_v38  ;;  %3239 = vadd.xlane.f32.xlu0 %v3238_v39  ;;  %v3211_v62 = vmul.f32 1.442695, %v3182_v15 }
 0x4e9   : > { %v3168_v56 = vpop.xlane.xlu1 %3167  ;;  %v3241_v7 = vsel %vm2744_vm3, %v6571_v41, 0.0 }
 0x4ea   : > { %v6574_v63 = vpop.eup %5510  ;;  %v3184_v30 = vsub.f32 %v6508_v33, %v3168_v56  ;;  %v3213_v12 = vmul.f32 1.442695, %v3183_v19 }
 0x4eb   : > { %v3244_v57 = vsel %vm2744_vm3, %v6574_v63, 0.0  ;;  %v1616_v18 = vpop.permute.xlu0 %1615 }
 0x4ec   : > { %v3215_v22 = vmul.f32 1.442695, %v3184_v30  ;;  %5518 = vpow2.f32 %v3213_v12  ;;  %3245 = vadd.xlane.f32.xlu1 %v3244_v57  ;;  %3242 = vadd.xlane.f32.xlu0 %v3241_v7  ;;  %v6581_v23 = vpop.eup %5512  ;;  %v1775_v36 = vcombine.low %v6522_v2, %v1616_v18  ;;  %v1776_v39 = vcombine.high %v6522_v2, %v1616_v18 }
 0x4ed   : > { %v3247_v33 = vsel %vm2744_vm3, %v6581_v23, 0.0  ;;  %v6608_v5 = vpop.permute.xlu1 %1605 }
 0x4ee   : > { %v6583_v8 = vpop.eup %5514  ;;  %5520 = vpow2.f32 %v3215_v22  ;;  %v1790_v30 = vrot.slane %v1776_v39, %v5995_v1 }
 0x4ef   : > { %v3250_v14 = vsel %vm2744_vm3, %v6583_v8, 0.0  ;;  %5522 = vpow2.f32 %v3211_v62 }
 0x4f0   : > { %3251 = vadd.xlane.f32.xlu1 %v3250_v14  ;;  %3248 = vadd.xlane.f32.xlu0 %v3247_v33 }
 0x4f2   : > { %v6589_v17 = vpop.eup %5516 }
 0x4f3   : > { %v3253_v3 = vsel %vm2744_vm3, %v6589_v17, 0.0 }
 0x4f4   : > { %3254 = vadd.xlane.f32.xlu0 %v3253_v3 }
 0x4f6   : > { %v6593_v54 = vpop.eup %5518 }
 0x4f7   : > { %v3259_v25 = vsel %vm2744_vm3, %v6593_v54, 0.0 }
 0x4f8   : > { %v6597_v59 = vpop.eup %5520  ;;  %3260 = vadd.xlane.f32.xlu0 %v3259_v25 }
 0x4f9   : > { %v3262_v28 = vsel %vm2744_vm3, %v6597_v59, 0.0  ;;  %v6604_v6 = vpop.eup %5522 }
 0x4fa   : > { %v3256_v24 = vsel %vm2744_vm3, %v6604_v6, 0.0 }
 0x4fc   : > { %3263 = vadd.xlane.f32.xlu0 %v3262_v28 }
 0x501   : > { %1617 = vrot.lane.b32.xlu1 %v5984_v49, %s5649_s14 }
 0x525   : > { %3257 = vadd.xlane.f32.xlu1 %v3256_v24 }
 0x55a   : > { %v3219_v13 = vpop.xlane.xlu0 %3218 }
 0x55b   : > { %5524 = vrcp.f32 %v3219_v13 }
 0x55c   : > { %v3222_v32 = vpop.xlane.xlu1 %3221 }
 0x55d   : > { %5526 = vrcp.f32 %v3222_v32 }
 0x55e   : > { %v3225_v21 = vpop.xlane.xlu0 %3224 }
 0x55f   : > { %5528 = vrcp.f32 %v3225_v21  ;;  %v1827_v21 = vcombine.low %v5984_v49, %v6608_v5 }
 0x562   : > { %v3228_v46 = vpop.xlane.xlu1 %3227 }
 0x563   : > { %5530 = vrcp.f32 %v3228_v46 }
 0x565   : > { %v5525_v20 = vpop.eup %5524 }
 0x566   : > { %v3281_v53 = vmul.f32 %v5525_v20, %v6530_v40 }
 0x567   : > { %v5527_v31 = vpop.eup %5526 }
 0x568   : > { %v3282_v45 = vmul.f32 %v5527_v31, %v6534_v60 }
 0x569   : > { %v5529_v29 = vpop.eup %5528 }
 0x56a   : > { %v3297_v26 = vpack.c.bf16 %v3282_v45, %v3281_v53  ;;  %v3283_v27 = vmul.f32 %v5529_v29, %v6538_v9  ;;  %v1760_v9 = vcombine.high %v5973_v48, %v6524_v58 }
 0x56c   : > { %5308 = vmatmul.mubr.msk.bf16.vlgmr.msra.gmra.mrb[16].mxu1 %vm2744_vm3, %v3297_v26 }
 0x56d   : > { %v5531_v44 = vpop.eup %5530  ;;  %v3231_v50 = vpop.xlane.xlu0 %3230  ;;  %5318 = vmatpush3.bf16.msra.mxu1 %v6420_v47  ;;  %5319 = vmatprep.mubr.msk.bf16.mxu1 %vm5652_vm2, %v5651_v42  ;;  %v1759_v47 = vcombine.low %v5973_v48, %v6524_v58 }
 0x56e   : > { %v3284_v35 = vmul.f32 %v5531_v44, %v6544_v61  ;;  %5532 = vrcp.f32 %v3231_v50  ;;  %5329 = vmatprep.subr.bf16.mxu1 %v5651_v42  ;;  %v1783_v61 = vrot.slane %v1775_v36, %v5995_v1 }
 0x56f   : > { %v3234_v40 = vpop.xlane.xlu1 %3233  ;;  %v1767_v56 = vrot.slane %v1759_v47, %v5995_v1 }
 0x570   : > { %5534 = vrcp.f32 %v3234_v40  ;;  %v3298_v60 = vpack.c.bf16 %v3284_v35, %v3283_v27 }
 0x571   : > { %v3237_v38 = vpop.xlane.xlu0 %3236  ;;  %v1791_v12 = vcombine.low %v1767_v56, %v1783_v61  ;;  %v1792_v57 = vcombine.high %v1767_v56, %v1783_v61 }
 0x572   : > { %5314 = vmatmul.mubr.msk.bf16.vlgmr.msra.gmra.mrb[24].mxu0 %vm2744_vm3, %v3298_v60  ;;  %5536 = vrcp.f32 %v3237_v38 }
 0x573   : > { %5324 = vmatpush3.bf16.msra.mxu0 %v6422_v4  ;;  %5325 = vmatprep.mubr.msk.bf16.mxu0 %vm5652_vm2, %v5651_v42  ;;  %v1774_v4 = vrot.slane %v1760_v9, %v5995_v1  ;;  %v1799_v25 = vrot.slane %v1791_v12, %v6006_v16  ;;  %v1806_v28 = vrot.slane %v1792_v57, %v6006_v16 }
 0x574   : > { %5335 = vmatprep.subr.bf16.mxu0 %v5651_v42 }
 0x575   : > { %v3240_v19 = vpop.xlane.xlu0 %3239  ;;  %v1807_v3 = vcombine.low %v1774_v4, %v1790_v30  ;;  %v1808_v48 = vcombine.high %v1774_v4, %v1790_v30  ;;  %v2591_v46 = vcombine.low %v1799_v25, %v1806_v28  ;;  %v5112_v20 = vcombine.high %v1799_v25, %v1806_v28 }
 0x576   : > { %5538 = vrcp.f32 %v3240_v19 }
 0x577   : > { %v1815_v13 = vrot.slane %v1807_v3, %v6006_v16  ;;  %v1822_v32 = vrot.slane %v1808_v48, %v6006_v16  ;;  %v2606_v60 = vrot.slane %v5112_v20, %v5995_v1 }
 0x578   : > { %v5533_v2 = vpop.eup %5532 }
 0x579   : > { %v3285_v7 = vmul.f32 %v5533_v2, %v6552_v34  ;;  %v3246_v22 = vpop.xlane.xlu1 %3245  ;;  %v3243_v14 = vpop.xlane.xlu0 %3242  ;;  %v2607_v50 = vcombine.low %v1815_v13, %v1822_v32  ;;  %v5113_v27 = vcombine.high %v1815_v13, %v1822_v32 }
 0x57a   : > { %v5535_v33 = vpop.eup %5534  ;;  %5540 = vrcp.f32 %v3243_v14 }
 0x57b   : > { %v3286_v58 = vmul.f32 %v5535_v33, %v6557_v51  ;;  %v1828_v51 = vcombine.high %v5984_v49, %v6608_v5  ;;  %v1835_v49 = vrot.slane %v1827_v21, %v5995_v1  ;;  %v2614_v39 = vrot.slane %v2607_v50, %v5995_v1 }
 0x57c   : > { %v5537_v24 = vpop.eup %5536  ;;  %v2622_v9 = vrot.slane %v5113_v27, %v5995_v1 }
 0x57d   : > { %v3252_v15 = vpop.xlane.xlu1 %3251  ;;  %v3299_v62 = vpack.c.bf16 %v3286_v58, %v3285_v7  ;;  %v3249_v18 = vpop.xlane.xlu0 %3248  ;;  %v3287_v31 = vmul.f32 %v5537_v24, %v6562_v55  ;;  %v1842_v5 = vrot.slane %v1828_v51, %v5995_v1 }
 0x57e   : > { %5542 = vrcp.f32 %v3249_v18  ;;  %v2639_v33 = vcombine.low %v2614_v39, %v2622_v9  ;;  %v2640_v24 = vcombine.high %v2614_v39, %v2622_v9 }
 0x57f   : > { %5320 = vmatmul.mubr.msk.bf16.vlgmr.msra.gmra.mrb[20].mxu1 %vm2744_vm3, %v3299_v62  ;;  %5544 = vrcp.f32 %v3246_v22 }
 0x580   : > { %v5539_v34 = vpop.eup %5538  ;;  %5331 = vmatprep.mubr.msk.bf16.mxu1 %vm5652_vm2, %v5651_v42  ;;  %5546 = vrcp.f32 %v3252_v15  ;;  %v2647_v13 = vrot.slane %v2639_v33, %v6006_v16 }
 0x581   : > { %v3288_v53 = vmul.f32 %v5539_v34, %v6566_v0  ;;  %v1618_v45 = vpop.permute.xlu1 %1617  ;;  %v6651_v44 = vpop.xlane.xlu0 %3254  ;;  %v2598_v0 = vrot.slane %v2591_v46, %v5995_v1 }
 0x582   : > { %v1843_v26 = vcombine.low %v6520_v52, %v1618_v45  ;;  %v1844_v29 = vcombine.high %v6520_v52, %v1618_v45 }
 0x583   : > { %v3300_v35 = vpack.c.bf16 %v3288_v53, %v3287_v31  ;;  %v2623_v57 = vcombine.low %v2598_v0, %v2606_v60  ;;  %v2624_v28 = vcombine.high %v2598_v0, %v2606_v60 }
 0x584   : > { %v1851_v40 = vrot.slane %v1843_v26, %v5995_v1  ;;  %v1858_v55 = vrot.slane %v1844_v29, %v5995_v1  ;;  %v5541_v21 = vpop.eup %5540  ;;  %v2654_v29 = vrot.slane %v2640_v24, %v6006_v16 }
 0x585   : > { %5326 = vmatmul.mubr.msk.bf16.vlgmr.msra.gmra.mrb[28].mxu0 %vm2744_vm3, %v3300_v35  ;;  %v3261_v47 = vpop.xlane.xlu0 %3260  ;;  %v2631_v15 = vrot.slane %v2623_v57, %v6006_v16  ;;  %v2638_v26 = vrot.slane %v2624_v28, %v6006_v16 }
 0x586   : > { %v1859_v52 = vcombine.low %v1835_v49, %v1851_v40  ;;  %v1860_v36 = vcombine.high %v1835_v49, %v1851_v40  ;;  %v1875_v38 = vcombine.low %v1842_v5, %v1858_v55  ;;  %5337 = vmatprep.mubr.msk.bf16.mxu0 %vm5652_vm2, %v5651_v42  ;;  %v1876_v61 = vcombine.high %v1842_v5, %v1858_v55 }
 0x587   : > { %v2655_v27 = vcombine.low %v2631_v15, %v2647_v13  ;;  %v2656_v49 = vcombine.high %v2631_v15, %v2647_v13  ;;  %v3289_v40 = vmul.f32 %v5541_v21, %v6571_v41  ;;  %v2657_v39 = vcombine.low %v2638_v26, %v2654_v29 }
 0x588   : > { %v1867_v19 = vrot.slane %v1859_v52, %v6006_v16  ;;  %v1874_v56 = vrot.slane %v1860_v36, %v6006_v16  ;;  %v1883_v30 = vrot.slane %v1875_v38, %v6006_v16  ;;  %v1890_v2 = vrot.slane %v1876_v61, %v6006_v16  ;;  %v5543_v46 = vpop.eup %5542 }
 0x589   : > { %v3264_v22 = vpop.xlane.xlu0 %3263  ;;  %v5545_v45 = vpop.eup %5544  ;;  %v3291_v55 = vmul.f32 %v5543_v46, %v6581_v23  ;;  %v2658_v9 = vcombine.high %v2638_v26, %v2654_v29 }
 0x58a   : > { %v2659_v4 = vcombine.low %v1867_v19, %v1874_v56  ;;  %v5114_v12 = vcombine.high %v1867_v19, %v1874_v56  ;;  %v2675_v7 = vcombine.low %v1883_v30, %v1890_v2  ;;  %v5115_v14 = vcombine.high %v1883_v30, %v1890_v2  ;;  %v5547_v50 = vpop.eup %5546 }
 0x58b   : > { %5548 = vrcp.f32 %v3264_v22  ;;  %v3290_v38 = vmul.f32 %v5545_v45, %v6574_v63 }
 0x58c   : > { %v2666_v3 = vrot.slane %v2659_v4, %v5995_v1  ;;  %v2674_v48 = vrot.slane %v5114_v12, %v5995_v1  ;;  %v2682_v58 = vrot.slane %v2675_v7, %v5995_v1  ;;  %v2690_v25 = vrot.slane %v5115_v14, %v5995_v1 }
 0x58d   : > { %5550 = vrcp.f32 %v3261_v47  ;;  %v3292_v47 = vmul.f32 %v5547_v50, %v6583_v8  ;;  %v3301_v61 = vpack.c.bf16 %v3290_v38, %v3289_v40 }
 0x58e   : > { %v2691_v62 = vcombine.low %v2666_v3, %v2674_v48  ;;  %v2692_v18 = vcombine.high %v2666_v3, %v2674_v48  ;;  %v2707_v32 = vcombine.low %v2682_v58, %v2690_v25  ;;  %v2708_v34 = vcombine.high %v2682_v58, %v2690_v25 }
 0x58f   : > { %v3302_v19 = vpack.c.bf16 %v3292_v47, %v3291_v55  ;;  %5552 = vrcp.f32 %v6651_v44 }
 0x590   : > { %v2699_v51 = vrot.slane %v2691_v62, %v6006_v16  ;;  %v2715_v20 = vrot.slane %v2707_v32, %v6006_v16  ;;  %v2706_v31 = vrot.slane %v2692_v18, %v6006_v16  ;;  %v2722_v53 = vrot.slane %v2708_v34, %v6006_v16 }
 0x592   : > { %v2723_v35 = vcombine.low %v2699_v51, %v2715_v20  ;;  %v2724_v5 = vcombine.high %v2699_v51, %v2715_v20  ;;  %v2725_v52 = vcombine.low %v2706_v31, %v2722_v53  ;;  %v2726_v36 = vcombine.high %v2706_v31, %v2722_v53 }
 0x594   : > { %v2731_v0 = vpack.c.bf16 %v2723_v35, %v2655_v27  ;;  %v2732_v60 = vpack.c.bf16 %v2724_v5, %v2656_v49  ;;  %v2733_v23 = vpack.c.bf16 %v2725_v52, %v2657_v39  ;;  %v2734_v56 = vpack.c.bf16 %v2726_v36, %v2658_v9 }
 0x595   : > { %v5549_v41 = vpop.eup %5548 }
 0x596   : > { %5330 = vmatpush3.bf16.msra.mxu1 %v2731_v0  ;;  %5336 = vmatpush3.bf16.msra.mxu0 %v2732_v60  ;;  %v3296_v8 = vmul.f32 %v5549_v41, %v6597_v59 }
 0x597   : > { %5341 = vmatprep.subr.bf16.mxu1 %v5651_v42  ;;  %5347 = vmatprep.subr.bf16.mxu0 %v5651_v42  ;;  %v5551_v63 = vpop.eup %5550 }
 0x598   : > { %v3295_v30 = vmul.f32 %v5551_v63, %v6593_v54 }
 0x599   : > { %5332 = vmatmul.mubr.msk.bf16.vlgmr.msra.gmra.mrb[24].mxu1 %vm2744_vm3, %v3301_v61  ;;  %5338 = vmatmul.mubr.msk.bf16.vlgmr.msra.gmra.mrb[32].mxu0 %vm2744_vm3, %v3302_v19  ;;  %v5553_v12 = vpop.eup %5552 }
 0x59a   : > { %5342 = vmatpush3.bf16.msra.mxu1 %v2733_v23  ;;  %5348 = vmatpush3.bf16.msra.mxu0 %v2734_v56  ;;  %v3304_v2 = vpack.c.bf16 %v3296_v8, %v3295_v30  ;;  %v3293_v59 = vmul.f32 %v5553_v12, %v6589_v17 }
 0x59b   : > { %5349 = vmatprep.mubr.msk.bf16.mxu0 %vm5652_vm2, %v5651_v42  ;;  %5343 = vmatprep.mubr.msk.bf16.mxu1 %vm5652_vm2, %v5651_v42 }
 0x5a1   : > { %5350 = vmatmul.mubr.msk.bf16.vlgmr.msra.gmra.mrb[36].mxu0 %vm2744_vm3, %v3304_v2 }
 0x5a2   : > { %4537 = vmatprep.mubr.bf16.mxu0 %v5646_v37 }
 0x5b2   : > { %v3258_v4 = vpop.xlane.xlu1 %3257 }
 0x5b3   : > { %5554 = vrcp.f32 %v3258_v4 }
 0x5bd   : > { %v5555_v57 = vpop.eup %5554 }
 0x5be   : > { %v3294_v7 = vmul.f32 %v5555_v57, %v6604_v6 }
 0x5c0   : > { %v3303_v14 = vpack.c.bf16 %v3294_v7, %v3293_v59 }
 0x5c2   : > { %5344 = vmatmul.mubr.msk.bf16.vlgmr.msra.gmra.mrb[28].mxu1 %vm2744_vm3, %v3303_v14 }
 0x63f   : > { %v3342_v42 = vpop.f32.mrb[16].mxu1 }
 0x640   : > { %v5309_v54 = vpop.f32.mrb[17].mxu1 }
 0x641   : > { %v3345_v33 = vpop.f32.mrb[18].mxu1 }
 0x642   : > { %v5310_v3 = vpop.f32.mrb[19].mxu1 }
 0x645   : > { %v3386_v48 = vpop.f32.mrb[24].mxu0 }
 0x646   : > { %v5315_v22 = vpop.f32.mrb[25].mxu0 }
 0x647   : > { %v3389_v58 = vpop.f32.mrb[26].mxu0 }
 0x648   : > { %v5316_v25 = vpop.f32.mrb[27].mxu0 }
 0x652   : > { %v3430_v44 = vpop.f32.mrb[20].mxu1 }
 0x653   : > { %v3657_v28 = vcombine.low %v3342_v42, %v3430_v44  ;;  %v3658_v15 = vcombine.high %v3342_v42, %v3430_v44  ;;  %v5321_v62 = vpop.f32.mrb[21].mxu1 }
 0x654   : > { %v3433_v24 = vpop.f32.mrb[22].mxu1 }
 0x655   : > { %v3725_v18 = vcombine.low %v3345_v33, %v3433_v24  ;;  %v3726_v17 = vcombine.high %v3345_v33, %v3433_v24  ;;  %v5322_v13 = vpop.f32.mrb[23].mxu1  ;;  %v3665_v51 = vrot.slane %v3657_v28, %v5995_v1  ;;  %v3672_v46 = vrot.slane %v3658_v15, %v5995_v1 }
 0x657   : > { %v3733_v5 = vrot.slane %v3725_v18, %v5995_v1  ;;  %v3740_v40 = vrot.slane %v3726_v17, %v5995_v1 }
 0x658   : > { %v3474_v6 = vpop.f32.mrb[28].mxu0 }
 0x659   : > { %v3673_v32 = vcombine.low %v3386_v48, %v3474_v6  ;;  %v3674_v34 = vcombine.high %v3386_v48, %v3474_v6  ;;  %v5327_v21 = vpop.f32.mrb[29].mxu0 }
 0x65a   : > { %v3477_v20 = vpop.f32.mrb[30].mxu0 }
 0x65b   : > { %v3681_v31 = vrot.slane %v3673_v32, %v5995_v1  ;;  %v3688_v53 = vrot.slane %v3674_v34, %v5995_v1  ;;  %v3741_v45 = vcombine.low %v3389_v58, %v3477_v20  ;;  %v3742_v26 = vcombine.high %v3389_v58, %v3477_v20  ;;  %v5328_v29 = vpop.f32.mrb[31].mxu0 }
 0x65d   : > { %v3689_v50 = vcombine.low %v3665_v51, %v3681_v31  ;;  %v3690_v27 = vcombine.high %v3665_v51, %v3681_v31  ;;  %v3705_v35 = vcombine.low %v3672_v46, %v3688_v53  ;;  %v3706_v49 = vcombine.high %v3672_v46, %v3688_v53 }
 0x65e   : > { %v3749_v55 = vrot.slane %v3741_v45, %v5995_v1  ;;  %v3756_v0 = vrot.slane %v3742_v26, %v5995_v1 }
 0x65f   : > { %v3697_v60 = vrot.slane %v3689_v50, %v6006_v16  ;;  %v3704_v52 = vrot.slane %v3690_v27, %v6006_v16  ;;  %v3713_v36 = vrot.slane %v3705_v35, %v6006_v16  ;;  %v3720_v38 = vrot.slane %v3706_v49, %v6006_v16  ;;  %v5452_v35 = vld [vmem:[%s5794_s28] sm:$0xff]  }
 0x660   : > { %v3757_v47 = vcombine.low %v3733_v5, %v3749_v55  ;;  %v3758_v39 = vcombine.high %v3733_v5, %v3749_v55  ;;  %v3773_v9 = vcombine.low %v3740_v40, %v3756_v0  ;;  %v3774_v61 = vcombine.high %v3740_v40, %v3756_v0  ;;  %5353 = vmatprep.subr.bf16.mxu1 %v5452_v35 }
 0x661   : > { %v3929_v19 = vcombine.low %v3697_v60, %v3704_v52  ;;  %v5132_v41 = vcombine.high %v3697_v60, %v3704_v52  ;;  %v3945_v23 = vcombine.low %v3713_v36, %v3720_v38  ;;  %v5133_v56 = vcombine.high %v3713_v36, %v3720_v38  ;;  %5354 = vmatpush3.bf16.msra.mxu1 %v5452_v35 }
 0x662   : > { %v3765_v63 = vrot.slane %v3757_v47, %v6006_v16  ;;  %v3772_v8 = vrot.slane %v3758_v39, %v6006_v16  ;;  %v3781_v30 = vrot.slane %v3773_v9, %v6006_v16  ;;  %v3788_v2 = vrot.slane %v3774_v61, %v6006_v16 }
 0x663   : > { %v3936_v4 = vrot.slane %v3929_v19, %v5995_v1  ;;  %v3944_v12 = vrot.slane %v5132_v41, %v5995_v1  ;;  %v3952_v57 = vrot.slane %v3945_v23, %v5995_v1  ;;  %v3960_v59 = vrot.slane %v5133_v56, %v5995_v1 }
 0x664   : > { %v3997_v7 = vcombine.low %v3765_v63, %v3772_v8  ;;  %v5134_v14 = vcombine.high %v3765_v63, %v3772_v8  ;;  %v4013_v42 = vcombine.low %v3781_v30, %v3788_v2  ;;  %v5135_v54 = vcombine.high %v3781_v30, %v3788_v2 }
 0x665   : > { %v3962_v33 = vcombine.high %v3936_v4, %v3944_v12  ;;  %v3978_v3 = vcombine.high %v3952_v57, %v3960_v59  ;;  %v3961_v48 = vcombine.low %v3936_v4, %v3944_v12  ;;  %v3977_v22 = vcombine.low %v3952_v57, %v3960_v59 }
 0x666   : > { %v4004_v58 = vrot.slane %v3997_v7, %v5995_v1  ;;  %v4012_v25 = vrot.slane %v5134_v14, %v5995_v1  ;;  %v4020_v44 = vrot.slane %v4013_v42, %v5995_v1  ;;  %v4028_v28 = vrot.slane %v5135_v54, %v5995_v1 }
 0x667   : > { %v3976_v15 = vrot.slane %v3962_v33, %v6006_v16  ;;  %v3992_v62 = vrot.slane %v3978_v3, %v6006_v16  ;;  %v6727_v24 = vrot.slane %v3961_v48, %v6006_v16  ;;  %v6730_v18 = vrot.slane %v3977_v22, %v6006_v16 }
 0x668   : > { %v4030_v17 = vcombine.high %v4004_v58, %v4012_v25  ;;  %v4046_v13 = vcombine.high %v4020_v44, %v4028_v28  ;;  %v4029_v6 = vcombine.low %v4004_v58, %v4012_v25  ;;  %v4045_v32 = vcombine.low %v4020_v44, %v4028_v28 }
 0x669   : > { %v3995_v34 = vcombine.low %v3976_v15, %v3992_v62  ;;  %v3993_v21 = vcombine.low %v6727_v24, %v6730_v18  ;;  %v3994_v51 = vcombine.high %v6727_v24, %v6730_v18  ;;  %v3996_v46 = vcombine.high %v3976_v15, %v3992_v62 }
 0x66a   : > { %v4044_v20 = vrot.slane %v4030_v17, %v6006_v16  ;;  %v4060_v31 = vrot.slane %v4046_v13, %v6006_v16  ;;  %v6739_v53 = vrot.slane %v4029_v6, %v6006_v16  ;;  %v6742_v45 = vrot.slane %v4045_v32, %v6006_v16 }
 0x66c   : > { %v4063_v26 = vcombine.low %v4044_v20, %v4060_v31  ;;  %v4062_v29 = vcombine.high %v6739_v53, %v6742_v45  ;;  %v4061_v50 = vcombine.low %v6739_v53, %v6742_v45  ;;  %v4064_v27 = vcombine.high %v4044_v20, %v4060_v31  ;;  %v3518_v49 = vpop.f32.mrb[24].mxu1  ;;  %v3562_v5 = vpop.f32.mrb[32].mxu0 }
 0x66d   : > { %v5333_v40 = vpop.f32.mrb[25].mxu1  ;;  %v5339_v55 = vpop.f32.mrb[33].mxu0 }
 0x66e   : > { %v5415_v0 = vpack.i.bf16 %v4063_v26, %v3995_v34  ;;  %v5410_v60 = vpack.i.bf16 %v4062_v29, %v3994_v51  ;;  %v5420_v52 = vpack.i.bf16 %v4064_v27, %v3996_v46  ;;  %v3521_v36 = vpop.f32.mrb[26].mxu1  ;;  %v3565_v38 = vpop.f32.mrb[34].mxu0 }
 0x66f   : > { %v5334_v47 = vpop.f32.mrb[27].mxu1  ;;  %v5340_v39 = vpop.f32.mrb[35].mxu0 }
 0x670   : > { %5416 = vrot.lane.b32.xlu1 %v5415_v0, %s5655_s20  ;;  %5411 = vrot.lane.b32.xlu0 %v5410_v60, %s5656_s24 }
 0x674   : > { %5421 = vrot.lane.b32.xlu0 %v5420_v52, %s5657_s13  ;;  %v3650_v9 = vpop.f32.mrb[36].mxu0 }
 0x675   : > { %v3809_v61 = vcombine.low %v3562_v5, %v3650_v9  ;;  %v3810_v19 = vcombine.high %v3562_v5, %v3650_v9  ;;  %v5351_v41 = vpop.f32.mrb[37].mxu0 }
 0x676   : > { %v3653_v23 = vpop.f32.mrb[38].mxu0 }
 0x677   : > { %v3877_v56 = vcombine.low %v3565_v38, %v3653_v23  ;;  %v3878_v63 = vcombine.high %v3565_v38, %v3653_v23  ;;  %v5352_v8 = vpop.f32.mrb[39].mxu0  ;;  %v3817_v57 = vrot.slane %v3809_v61, %v5995_v1  ;;  %v3824_v59 = vrot.slane %v3810_v19, %v5995_v1  ;;  %v5453_v23 = vld [vmem:[%s5794_s28 + $0x8] sm:$0xff]  }
 0x678   : > { %5355 = vmatprep.subr.bf16.mxu1 %v5453_v23 }
 0x679   : > { %v3885_v44 = vrot.slane %v3877_v56, %v5995_v1  ;;  %v3892_v28 = vrot.slane %v3878_v63, %v5995_v1  ;;  %5356 = vmatpush3.bf16.msra.mxu1 %v5453_v23 }
 0x695   : > { %v3606_v30 = vpop.f32.mrb[28].mxu1 }
 0x696   : > { %v3793_v2 = vcombine.low %v3518_v49, %v3606_v30  ;;  %v3794_v4 = vcombine.high %v3518_v49, %v3606_v30  ;;  %v5345_v12 = vpop.f32.mrb[29].mxu1 }
 0x697   : > { %v3609_v7 = vpop.f32.mrb[30].mxu1 }
 0x698   : > { %v3801_v14 = vrot.slane %v3793_v2, %v5995_v1  ;;  %v3808_v42 = vrot.slane %v3794_v4, %v5995_v1  ;;  %v3861_v54 = vcombine.low %v3521_v36, %v3609_v7  ;;  %v3862_v33 = vcombine.high %v3521_v36, %v3609_v7  ;;  %v5346_v3 = vpop.f32.mrb[31].mxu1 }
 0x69a   : > { %v3825_v48 = vcombine.low %v3801_v14, %v3817_v57  ;;  %v3826_v22 = vcombine.high %v3801_v14, %v3817_v57  ;;  %v3841_v58 = vcombine.low %v3808_v42, %v3824_v59  ;;  %v3842_v25 = vcombine.high %v3808_v42, %v3824_v59 }
 0x69b   : > { %v3869_v15 = vrot.slane %v3861_v54, %v5995_v1  ;;  %v3876_v62 = vrot.slane %v3862_v33, %v5995_v1 }
 0x69c   : > { %v3833_v17 = vrot.slane %v3825_v48, %v6006_v16  ;;  %v3840_v13 = vrot.slane %v3826_v22, %v6006_v16  ;;  %v3849_v6 = vrot.slane %v3841_v58, %v6006_v16  ;;  %v3856_v32 = vrot.slane %v3842_v25, %v6006_v16 }
 0x69d   : > { %v3893_v34 = vcombine.low %v3869_v15, %v3885_v44  ;;  %v3894_v51 = vcombine.high %v3869_v15, %v3885_v44  ;;  %v3909_v46 = vcombine.low %v3876_v62, %v3892_v28  ;;  %v3910_v20 = vcombine.high %v3876_v62, %v3892_v28 }
 0x69e   : > { %v4065_v31 = vcombine.low %v3833_v17, %v3840_v13  ;;  %v5136_v26 = vcombine.high %v3833_v17, %v3840_v13  ;;  %v4081_v29 = vcombine.low %v3849_v6, %v3856_v32  ;;  %v5137_v27 = vcombine.high %v3849_v6, %v3856_v32 }
 0x69f   : > { %v3901_v35 = vrot.slane %v3893_v34, %v6006_v16  ;;  %v3908_v49 = vrot.slane %v3894_v51, %v6006_v16  ;;  %v3917_v5 = vrot.slane %v3909_v46, %v6006_v16  ;;  %v3924_v40 = vrot.slane %v3910_v20, %v6006_v16  ;;  %v5455_v34 = vld [vmem:[%s5794_s28 + $0x18] sm:$0xff]  }
 0x6a0   : > { %v4072_v55 = vrot.slane %v4065_v31, %v5995_v1  ;;  %v4080_v0 = vrot.slane %v5136_v26, %v5995_v1  ;;  %v4088_v60 = vrot.slane %v4081_v29, %v5995_v1  ;;  %v4096_v52 = vrot.slane %v5137_v27, %v5995_v1 }
 0x6a1   : > { %v4133_v36 = vcombine.low %v3901_v35, %v3908_v49  ;;  %v5138_v38 = vcombine.high %v3901_v35, %v3908_v49  ;;  %v4149_v47 = vcombine.low %v3917_v5, %v3924_v40  ;;  %v5139_v39 = vcombine.high %v3917_v5, %v3924_v40 }
 0x6a2   : > { %v4097_v9 = vcombine.low %v4072_v55, %v4080_v0  ;;  %v4113_v61 = vcombine.low %v4088_v60, %v4096_v52  ;;  %v4098_v19 = vcombine.high %v4072_v55, %v4080_v0  ;;  %v4114_v41 = vcombine.high %v4088_v60, %v4096_v52 }
 0x6a3   : > { %v4140_v56 = vrot.slane %v4133_v36, %v5995_v1  ;;  %v4148_v63 = vrot.slane %v5138_v38, %v5995_v1  ;;  %v4156_v8 = vrot.slane %v4149_v47, %v5995_v1  ;;  %v4164_v30 = vrot.slane %v5139_v39, %v5995_v1  ;;  %v5454_v1 = vld [vmem:[%s5794_s28 + $0x10] sm:$0xff]  }
 0x6a4   : > { %v4105_v2 = vrot.slane %v4097_v9, %v6006_v16  ;;  %v4121_v4 = vrot.slane %v4113_v61, %v6006_v16  ;;  %v4112_v12 = vrot.slane %v4098_v19, %v6006_v16  ;;  %v4128_v57 = vrot.slane %v4114_v41, %v6006_v16  ;;  %5357 = vmatprep.subr.bf16.mxu1 %v5454_v1 }
 0x6a5   : > { %v4165_v59 = vcombine.low %v4140_v56, %v4148_v63  ;;  %v4181_v7 = vcombine.low %v4156_v8, %v4164_v30  ;;  %v4166_v14 = vcombine.high %v4140_v56, %v4148_v63  ;;  %v4182_v42 = vcombine.high %v4156_v8, %v4164_v30  ;;  %5358 = vmatpush3.bf16.msra.mxu1 %v5454_v1  ;;  %v5140_v63 = vld [vmem:[%s6986_s27] ss:$0 sm:$0xff] }
 0x6a6   : > { %v4129_v54 = vcombine.low %v4105_v2, %v4121_v4  ;;  %v4130_v33 = vcombine.high %v4105_v2, %v4121_v4  ;;  %v4131_v3 = vcombine.low %v4112_v12, %v4128_v57  ;;  %v4132_v48 = vcombine.high %v4112_v12, %v4128_v57  ;;  %5359 = vmatprep.subr.bf16.mxu1 %v5455_v34 }
 0x6a7   : > { %v4173_v22 = vrot.slane %v4165_v59, %v6006_v16  ;;  %v4189_v58 = vrot.slane %v4181_v7, %v6006_v16  ;;  %v4180_v25 = vrot.slane %v4166_v14, %v6006_v16  ;;  %v4196_v44 = vrot.slane %v4182_v42, %v6006_v16  ;;  %v5580_v59 = vld [vmem:[#allocation2] sm:$0xff]  ;;  %v5581_v42 = vld [vmem:[#allocation2 + $0x10] sm:$0xff] }
 0x6a9   : > { %v4198_v28 = vcombine.high %v4173_v22, %v4189_v58  ;;  %v4197_v15 = vcombine.low %v4173_v22, %v4189_v58  ;;  %v4199_v62 = vcombine.low %v4180_v25, %v4196_v44  ;;  %v4200_v17 = vcombine.high %v4180_v25, %v4196_v44  ;;  %5360 = vmatpush3.bf16.msra.mxu1 %v5455_v34  ;;  %v5583_v58 = vld [vmem:[#allocation2 + $0x18] sm:$0xff] }
 0x6ab   : > { %v5425_v13 = vpack.i.bf16 %v4198_v28, %v4130_v33  ;;  %v5430_v6 = vpack.i.bf16 %v4199_v62, %v4131_v3  ;;  %v5435_v32 = vpack.i.bf16 %v4200_v17, %v4132_v48  ;;  %v5582_v3 = vld [vmem:[#allocation2 + $0x8] sm:$0xff] }
 0x6ad   : > { %5426 = vrot.lane.b32.xlu1 %v5425_v13, %s5656_s24 }
 0x6b1   : > { %5431 = vrot.lane.b32.xlu1 %v5430_v6, %s5655_s20 }
 0x6b5   : > { %5436 = vrot.lane.b32.xlu1 %v5435_v32, %s5657_s13 }
 0x6e2   : > { %v5417_v51 = vpop.permute.xlu1 %5416  ;;  %v5412_v16 = vpop.permute.xlu0 %5411 }
 0x6e3   : > { %v5414_v46 = vunpack.i.h.bf16 %v5412_v16  ;;  %v5413_v20 = vunpack.i.l.bf16 %v5412_v16  ;;  %v5419_v31 = vunpack.i.h.bf16 %v5417_v51  ;;  %v5418_v26 = vunpack.i.l.bf16 %v5417_v51 }
 0x6e5   : > { %v4250_v29 = vsel %vm2744_vm3, %v4061_v50, %v5414_v46  ;;  %v4249_v27 = vsel %vm2744_vm3, %v3993_v21, %v5413_v20 }
 0x6e6   : > { %v5422_v35 = vpop.permute.xlu0 %5421  ;;  %v4254_v40 = vsel %vm4253_vm6, %v4249_v27, %v5418_v26  ;;  %v4255_v55 = vsel %vm4253_vm6, %v4250_v29, %v5419_v31 }
 0x6e7   : > { %v5424_v49 = vunpack.i.h.bf16 %v5422_v35  ;;  %v5423_v5 = vunpack.i.l.bf16 %v5422_v35 }
 0x6e9   : > { %v4259_v0 = vsel %vm4258_vm7, %v4254_v40, %v5423_v5  ;;  %v4260_v53 = vsel %vm4258_vm7, %v4255_v55, %v5424_v49 }
 0x6ea   : > { %v4263_v45 = vpack.c.bf16 %v4260_v53, %v4259_v0  ;;  %v5458_v0 = vld [vmem:[%s5807_s19 + $0x4] ss:$8 sps:$4 sm:$0xff]   ;;  %v5456_v53 = vld [vmem:[%s5807_s19] ss:$8 sps:$4 sm:$0xff]  }
 0x6eb   : > { %4505 = vmatprep.subr.bf16.mxu0 %v5458_v0 }
 0x6ec   : > { %5361 = vmatprep.mubr.msk.bf16.mxu1 %vm724_vm1, %v4263_v45  ;;  %4506 = vmatpush1.bf16.msra.mxu0 %v5456_v53  ;;  %v5461_v45 = vld [vmem:[%s5807_s19 + $0x14] ss:$8 sps:$4 sm:$0xff]  }
 0x6ed   : > { %4507 = vmatprep.subr.bf16.mxu0 %v5461_v45 }
 0x71f   : > { %v5427_v50 = vpop.permute.xlu1 %5426 }
 0x720   : > { %v5429_v24 = vunpack.i.h.bf16 %v5427_v50  ;;  %v5428_v18 = vunpack.i.l.bf16 %v5427_v50  ;;  %v5459_v50 = vld [vmem:[%s5807_s19 + $0x10] ss:$8 sps:$4 sm:$0xff]  }
 0x721   : > { %4508 = vmatpush1.bf16.msra.mxu0 %v5459_v50 }
 0x722   : > { %v4251_v36 = vsel %vm2744_vm3, %v4129_v54, %v5428_v18  ;;  %v4252_v38 = vsel %vm2744_vm3, %v4197_v15, %v5429_v24  ;;  %v5464_v24 = vld [vmem:[%s5807_s19 + $0x24] ss:$8 sps:$4 sm:$0xff]   ;;  %v5462_v18 = vld [vmem:[%s5807_s19 + $0x20] ss:$8 sps:$4 sm:$0xff]  }
 0x723   : > { %v5432_v21 = vpop.permute.xlu1 %5431  ;;  %4509 = vmatprep.subr.bf16.mxu0 %v5464_v24 }
 0x724   : > { %v5434_v60 = vunpack.i.h.bf16 %v5432_v21  ;;  %v5433_v52 = vunpack.i.l.bf16 %v5432_v21  ;;  %v5467_v21 = vld [vmem:[%s5807_s19 + $0x34] ss:$8 sps:$4 sm:$0xff]  }
 0x725   : > { %4510 = vmatpush1.bf16.msra.mxu0 %v5462_v18 }
 0x726   : > { %v4256_v47 = vsel %vm4253_vm6, %v4251_v36, %v5433_v52  ;;  %v4257_v39 = vsel %vm4253_vm6, %v4252_v38, %v5434_v60  ;;  %v5465_v60 = vld [vmem:[%s5807_s19 + $0x30] ss:$8 sps:$4 sm:$0xff]   ;;  %4511 = vmatprep.subr.bf16.mxu0 %v5467_v21 }
 0x727   : > { %v5437_v9 = vpop.permute.xlu1 %5436 }
 0x728   : > { %v5439_v61 = vunpack.i.h.bf16 %v5437_v9  ;;  %v5438_v19 = vunpack.i.l.bf16 %v5437_v9 }
 0x729   : > { %4512 = vmatpush1.bf16.msra.mxu0 %v5465_v60 }
 0x72a   : > { %v4261_v41 = vsel %vm4258_vm7, %v4256_v47, %v5438_v19  ;;  %v4262_v23 = vsel %vm4258_vm7, %v4257_v39, %v5439_v61 }
 0x72b   : > { %v4264_v56 = vpack.c.bf16 %v4262_v23, %v4261_v41 }
 0x72d   : > { %5362 = vmatmul.mubr.msk.bf16.vlgmr.msra.gmra.mrb[32].mxu1 %vm724_vm1, %v4264_v56 }
 0x800   : > { %v5363_v8 = vpop.f32.mrb[32].mxu1 }
 0x801   : > { %v4344_v30 = vpop.f32.mrb[33].mxu1  ;;  %v4353_v2 = vadd.f32 %v5363_v8, %v5140_v63 }
 0x802   : > { %v4345_v4 = vadd.f32 %v5140_v63, %v4344_v30  ;;  %v5364_v12 = vpop.f32.mrb[34].mxu1  ;;  %v5147_v30 = vld [vmem:[%s6987_s4] ss:$0 sm:$0xff] }
 0x803   : > { %v4347_v57 = vpop.f32.mrb[35].mxu1  ;;  %v6817_v54 = vadd.f32 %v5581_v42, %v4353_v2  ;;  %v4356_v33 = vadd.f32 %v5364_v12, %v5140_v63 }
 0x804   : > { %v6815_v7 = vadd.f32 %v5580_v59, %v4345_v4  ;;  %v4348_v14 = vadd.f32 %v5140_v63, %v4347_v57 }
 0x805   : > { %v6825_v25 = vadd.f32 %v5583_v58, %v4356_v33  ;;  %v4371_v44 = vsel %vm724_vm1, %v6817_v54, 0.0 }
 0x806   : > { %v6819_v48 = vadd.f32 %v5582_v3, %v4348_v14  ;;  %v4365_v1 = vsel %vm724_vm1, %v6815_v7, 0.0  ;;  %v5148_v14 = vld [vmem:[%s683_s22] ss:$0 sm:$0xff] }
 0x807   : > { %4366 = vadd.xlane.f32.xlu0 %v4365_v1  ;;  %v4374_v28 = vsel %vm724_vm1, %v6825_v25, 0.0 }
 0x808   : > { %v4368_v22 = vsel %vm724_vm1, %v6819_v48, 0.0 }
 0x809   : > { %4369 = vadd.xlane.f32.xlu1 %v4368_v22 }
 0x80b   : > { %4372 = vadd.xlane.f32.xlu0 %v4371_v44 }
 0x80f   : > { %4375 = vadd.xlane.f32.xlu0 %v4374_v28 }
 0x894   : > { %v4367_v15 = vpop.xlane.xlu0 %4366 }
 0x895   : > { %v4377_v62 = vmul.f32 0.015625, %v4367_v15 }
 0x896   : > { %v4370_v17 = vpop.xlane.xlu1 %4369 }
 0x897   : > { %v4381_v13 = vsub.f32 %v6815_v7, %v4377_v62  ;;  %v4378_v6 = vmul.f32 0.015625, %v4370_v17 }
 0x898   : > { %v4373_v32 = vpop.xlane.xlu0 %4372 }
 0x899   : > { %v4382_v34 = vsub.f32 %v6819_v48, %v4378_v6  ;;  %v4379_v51 = vmul.f32 0.015625, %v4373_v32  ;;  %v4385_v16 = vmul.f32 %v4381_v13, %v4381_v13  ;;  %v5468_v6 = vld [vmem:[%s5818_s2 + $0x40] sm:$0xff]  }
 0x89a   : > { %v5469_v32 = vld [vmem:[%s5818_s2] sm:$0xff]   ;;  %5229 = vmatprep.subr.bf16.mxu1 %v5468_v6 }
 0x89b   : > { %v4383_v46 = vsub.f32 %v6817_v54, %v4379_v51  ;;  %v4389_v20 = vsel %vm724_vm1, %v4385_v16, 0.0  ;;  %v4386_v31 = vmul.f32 %v4382_v34, %v4382_v34  ;;  %5230 = vmatpush3.bf16.msra.mxu1 %v5469_v32  ;;  %v5471_v51 = vld [vmem:[%s5818_s2 + $0x8] sm:$0xff]   ;;  %v5473_v16 = vld [vmem:[%s5818_s2 + $0x10] sm:$0xff]  }
 0x89c   : > { %4390 = vadd.xlane.f32.xlu0 %v4389_v20  ;;  %v4376_v26 = vpop.xlane.xlu0 %4375  ;;  %v5475_v20 = vld [vmem:[%s5818_s2 + $0x18] sm:$0xff]  }
 0x89d   : > { %v4380_v29 = vmul.f32 0.015625, %v4376_v26  ;;  %v4392_v27 = vsel %vm724_vm1, %v4386_v31, 0.0  ;;  %v4387_v35 = vmul.f32 %v4383_v46, %v4383_v46  ;;  %v5476_v31 = vld [vmem:[%s5818_s2 + $0x60] sm:$0xff]  }
 0x89e   : > { %4393 = vadd.xlane.f32.xlu1 %v4392_v27  ;;  %v5477_v26 = vld [vmem:[%s5818_s2 + $0x20] sm:$0xff]   ;;  %v5479_v27 = vld [vmem:[%s5818_s2 + $0x28] sm:$0xff]  }
 0x89f   : > { %v4384_v49 = vsub.f32 %v6825_v25, %v4380_v29  ;;  %v4395_v5 = vsel %vm724_vm1, %v4387_v35, 0.0  ;;  %v5478_v29 = vld [vmem:[%s5818_s2 + $0x68] sm:$0xff]   ;;  %v5480_v35 = vld [vmem:[%s5818_s2 + $0x70] sm:$0xff]  }
 0x8a0   : > { %4396 = vadd.xlane.f32.xlu0 %v4395_v5  ;;  %v5482_v5 = vld [vmem:[%s5818_s2 + $0x78] sm:$0xff]  }
 0x8a1   : > { %v4388_v40 = vmul.f32 %v4384_v49, %v4384_v49 }
 0x8a3   : > { %v4398_v55 = vsel %vm724_vm1, %v4388_v40, 0.0  ;;  %v5483_v40 = vld [vmem:[%s5818_s2 + $0x38] sm:$0xff]  }
 0x8a4   : > { %4399 = vadd.xlane.f32.xlu1 %v4398_v55  ;;  %v4447_v55 = vld [vmem:[%s5812_s26] sm:$0x3] }
 0x8a5   : > { %v4452_v0 = vrot.slane %v4447_v55, %v812_v11  ;;  %v4456_v45 = vrot.slane %v4447_v55, %v816_v43 }
 0x929   : > { %v4391_v52 = vpop.xlane.xlu0 %4390 }
 0x92a   : > { %v4401_v36 = vmul.f32 0.015625, %v4391_v52 }
 0x92b   : > { %v4394_v38 = vpop.xlane.xlu1 %4393 }
 0x92c   : > { %v4405_v47 = vadd.f32 1e-05, %v4401_v36  ;;  %v4402_v39 = vmul.f32 0.015625, %v4394_v38 }
 0x92d   : > { %v4397_v9 = vpop.xlane.xlu0 %4396 }
 0x92e   : > { %5556 = vrsqrt.f32 %v4405_v47  ;;  %v4406_v61 = vadd.f32 1e-05, %v4402_v39  ;;  %v4403_v19 = vmul.f32 0.015625, %v4397_v9 }
 0x930   : > { %5558 = vrsqrt.f32 %v4406_v61  ;;  %v4407_v41 = vadd.f32 1e-05, %v4403_v19 }
 0x931   : > { %v4400_v23 = vpop.xlane.xlu1 %4399 }
 0x932   : > { %5560 = vrsqrt.f32 %v4407_v41  ;;  %v4404_v56 = vmul.f32 0.015625, %v4400_v23 }
 0x934   : > { %v4408_v63 = vadd.f32 1e-05, %v4404_v56 }
 0x936   : > { %5562 = vrsqrt.f32 %v4408_v63 }
 0x938   : > { %v5557_v8 = vpop.eup %5556 }
 0x939   : > { %v4413_v2 = vmul.f32 %v5557_v8, %v4381_v13 }
 0x93a   : > { %v5559_v4 = vpop.eup %5558 }
 0x93b   : > { %v4423_v12 = vmul.f32 %v5147_v30, %v4413_v2  ;;  %v4414_v57 = vmul.f32 %v5559_v4, %v4382_v34  ;;  %v5470_v34 = vld [vmem:[%s5818_s2 + $0x48] sm:$0xff]  }
 0x93c   : > { %v5561_v59 = vpop.eup %5560  ;;  %5231 = vmatprep.subr.bf16.mxu1 %v5470_v34 }
 0x93d   : > { %v4424_v42 = vmul.f32 %v5147_v30, %v4414_v57  ;;  %v4415_v33 = vmul.f32 %v5561_v59, %v4383_v46  ;;  %v4433_v3 = vadd.f32 %v5148_v14, %v4423_v12  ;;  %5232 = vmatpush3.bf16.msra.mxu1 %v5471_v51  ;;  %v5474_v46 = vld [vmem:[%s5818_s2 + $0x58] sm:$0xff]  }
 0x93f   : > { %v4434_v1 = vadd.f32 %v5148_v14, %v4424_v42  ;;  %v4425_v28 = vmul.f32 %v5147_v30, %v4415_v33 }
 0x940   : > { %v5563_v22 = vpop.eup %5562 }
 0x941   : > { %v4416_v58 = vmul.f32 %v5563_v22, %v4384_v49  ;;  %v4437_v44 = vpack.c.bf16 %v4434_v1, %v4433_v3  ;;  %v4435_v17 = vadd.f32 %v5148_v14, %v4425_v28  ;;  %v5481_v49 = vld [vmem:[%s5818_s2 + $0x30] sm:$0xff]  }
 0x943   : > { %5157 = vmatmul.mubr.msk.bf16.vlgmr.msra.gmra.mrb[40].mxu0 %vm724_vm1, %v4437_v44  ;;  %v4426_v15 = vmul.f32 %v5147_v30, %v4416_v58 }
 0x944   : > { %4547 = vmatprep.mubr.bf16.mxu0 %v5646_v37  ;;  %v5472_v37 = vld [vmem:[%s5818_s2 + $0x50] sm:$0xff]   ;;  %s6988_s2 = sld [smem:[#allocation13_spill]] (!%p5180_p6) }
 0x945   : > { %v4436_v62 = vadd.f32 %v5148_v14, %v4426_v15  ;;  %5233 = vmatprep.subr.bf16.mxu1 %v5472_v37 }
 0x946   : > { %5234 = vmatpush3.bf16.msra.mxu1 %v5473_v16 }
 0x947   : > { %v4438_v13 = vpack.c.bf16 %v4436_v62, %v4435_v17  ;;  %5235 = vmatprep.subr.bf16.mxu1 %v5474_v46 }
 0x94a   : > { %5236 = vmatpush3.bf16.msra.mxu1 %v5475_v20 }
 0x94b   : > { %5158 = vmatmul.mubr.msk.bf16.gmra.mrb[44].mxu0 %vm724_vm1, %v4438_v13  ;;  %5237 = vmatprep.subr.bf16.mxu1 %v5476_v31  ;;  %v5163_v31 = vld [vmem:[%s700_s3] ss:$0 sm:$0xff] }
 0x94e   : > { %5238 = vmatpush3.bf16.msra.mxu1 %v5477_v26 }
 0x94f   : > { %5239 = vmatprep.subr.bf16.mxu1 %v5478_v29 }
 0x952   : > { %5240 = vmatpush3.bf16.msra.mxu1 %v5479_v27 }
 0x953   : > { %5241 = vmatprep.subr.bf16.mxu1 %v5480_v35 }
 0x956   : > { %5242 = vmatpush3.bf16.msra.mxu1 %v5481_v49 }
 0x957   : > { %5243 = vmatprep.subr.bf16.mxu1 %v5482_v5 }
 0x95a   : > { %5244 = vmatpush3.bf16.msra.mxu1 %v5483_v40 }
 0xa16   : > { %v4539_v53 = vpop.f32.mrb[40].mxu0 }
 0xa17   : > { %v4541_v50 = vpop.f32.mrb[41].mxu0  ;;  %v4540_v18 = vadd.f32 %v4539_v53, %v4452_v0 }
 0xa18   : > { %v4543_v24 = vpop.f32.mrb[42].mxu0  ;;  %v4542_v52 = vadd.f32 %v4541_v50, %v4456_v45 }
 0xa19   : > { %v4544_v21 = vadd.f32 %v4543_v24, %v4452_v0  ;;  %v4545_v60 = vpop.f32.mrb[43].mxu0 }
 0xa1a   : > { %v4546_v36 = vadd.f32 %v4545_v60, %v4456_v45 }
 0xa1b   : > { %v4558_v38 = vpack.c.bf16 %v4544_v21, %v4540_v18 }
 0xa1c   : > { %v4559_v47 = vpack.c.bf16 %v4546_v36, %v4542_v52 }
 0xa1d   : > { %v5159_v39 = vmul.bf16 3218784218, %v4558_v38 }
 0xa1e   : > { %v5160_v9 = vmul.bf16 3218784218, %v4559_v47  ;;  %v4549_v61 = vpop.f32.mrb[44].mxu0 }
 0xa1f   : > { %v4571_v19 = vmul.bf16 1069105081, %v5159_v39  ;;  %v4551_v41 = vpop.f32.mrb[45].mxu0  ;;  %v4550_v56 = vadd.f32 %v4549_v61, %v4452_v0 }
 0xa20   : > { %v4574_v23 = vmul.bf16 1069105081, %v5160_v9  ;;  %v4553_v11 = vpop.f32.mrb[46].mxu0  ;;  %v4552_v63 = vadd.f32 %v4551_v41, %v4456_v45 }
 0xa21   : > { %5564 = vpow.bf16 %v4571_v19  ;;  %v4554_v10 = vadd.f32 %v4553_v11, %v4452_v0  ;;  %v4555_v43 = vpop.f32.mrb[47].mxu0 }
 0xa22   : > { %5566 = vpow.bf16 %v4574_v23  ;;  %v4556_v8 = vadd.f32 %v4555_v43, %v4456_v45 }
 0xa23   : > { %v4560_v30 = vpack.c.bf16 %v4554_v10, %v4550_v56 }
 0xa24   : > { %v4561_v2 = vpack.c.bf16 %v4556_v8, %v4552_v63 }
 0xa25   : > { %v5161_v4 = vmul.bf16 3218784218, %v4560_v30 }
 0xa26   : > { %v5162_v12 = vmul.bf16 3218784218, %v4561_v2 }
 0xa27   : > { %v4577_v57 = vmul.bf16 1069105081, %v5161_v4 }
 0xa28   : > { %v4580_v59 = vmul.bf16 1069105081, %v5162_v12 }
 0xa29   : > { %5568 = vpow.bf16 %v4577_v57 }
 0xa2a   : > { %5570 = vpow.bf16 %v4580_v59 }
 0xa2c   : > { %v5565_v14 = vpop.eup %5564 }
 0xa2d   : > { %v5567_v42 = vpop.eup %5566  ;;  %v4582_v33 = vadd.bf16 1065369472, %v5565_v14 }
 0xa2e   : > { %v4583_v3 = vadd.bf16 1065369472, %v5567_v42 }
 0xa2f   : > { %5572 = vrcp.bf16 %v4582_v33 }
 0xa30   : > { %5574 = vrcp.bf16 %v4583_v3 }
 0xa34   : > { %v5569_v1 = vpop.eup %5568 }
 0xa35   : > { %v5571_v22 = vpop.eup %5570  ;;  %v4584_v58 = vadd.bf16 1065369472, %v5569_v1 }
 0xa36   : > { %v4585_v44 = vadd.bf16 1065369472, %v5571_v22 }
 0xa37   : > { %5576 = vrcp.bf16 %v4584_v58 }
 0xa38   : > { %5578 = vrcp.bf16 %v4585_v44 }
 0xa3a   : > { %v5573_v28 = vpop.eup %5572 }
 0xa3b   : > { %v5575_v15 = vpop.eup %5574  ;;  %v4587_v62 = vmul.bf16 1065369472, %v5573_v28 }
 0xa3c   : > { %v4589_v17 = vmul.bf16 1065369472, %v5575_v15 }
 0xa3d   : > { %v4594_v6 = vmul.bf16 %v4587_v62, %v4558_v38 }
 0xa3e   : > { %v4595_v13 = vmul.bf16 %v4589_v17, %v4559_v47 }
 0xa40   : > { %4765 = vmatprep.mubr.bf16.mxu1 %v4595_v13 }
 0xa41   : > { %4766 = vmatmul.mubr.bf16.vlgmr.msra.gmra.mrb[36].mxu1 %v4594_v6 }
 0xa42   : > { %v5577_v32 = vpop.eup %5576 }
 0xa43   : > { %v5579_v34 = vpop.eup %5578  ;;  %v4591_v51 = vmul.bf16 1065369472, %v5577_v32  ;;  %v5181_v32 = vld [vmem:[%s6988_s2] ss:$0 sm:$0xff] (!%p5180_p6) }
 0xa44   : > { %v4593_v37 = vmul.bf16 1065369472, %v5579_v34 }
 0xa45   : > { %v4596_v46 = vmul.bf16 %v4591_v51, %v4560_v30  ;;  %v5182_v51 = vld [vmem:[%s6989_s25] ss:$0 sm:$0xff] (!%p5180_p6) }
 0xa46   : > { %v4597_v16 = vmul.bf16 %v4593_v37, %v4561_v2 }
 0xa48   : > { %4773 = vmatprep.mubr.bf16.mxu1 %v4597_v16 }
 0xa49   : > { %4774 = vmatmul.mubr.bf16.gmra.mrb[40].mxu1 %v4596_v46 }
 0xb14   : > { %v5245_v20 = vpop.f32.mrb[36].mxu1 }
 0xb15   : > { %v5246_v26 = vpop.f32.mrb[37].mxu1 }
 0xb16   : > { %v5247_v29 = vadd.f32 %v5246_v26, %v5245_v20  ;;  %v5248_v27 = vpop.f32.mrb[38].mxu1 }
 0xb17   : > { %v5249_v35 = vpop.f32.mrb[39].mxu1 }
 0xb18   : > { %v4768_v49 = vadd.f32 %v5247_v29, %v5163_v31  ;;  %v5250_v5 = vadd.f32 %v5249_v35, %v5248_v27 }
 0xb1a   : > { %v4782_v40 = vadd.f32 %v4768_v49, %v6815_v7  ;;  %v4771_v55 = vadd.f32 %v5250_v5, %v5163_v31 }
 0xb1c   : > { %4786 = vst.msk [vmem:[#allocation2] sm:$0xff] %vm724_vm1, %v4782_v40  ;;  %v4783_v0 = vadd.f32 %v4771_v55, %v6819_v48  ;;  %v5251_v53 = vpop.f32.mrb[40].mxu1  ;;  %v4796_v48 = vsel (!%p5180_p6), %vm724_vm1, %v4782_v40, 0.0 }
 0xb1d   : > { %v5252_v45 = vpop.f32.mrb[41].mxu1  ;;  %4797 = vadd.xlane.f32.xlu0 (!%p5180_p6), %v4796_v48 }
 0xb1e   : > { %4787 = vst.msk [vmem:[#allocation2 + $0x8] sm:$0xff] %vm724_vm1, %v4783_v0  ;;  %v5253_v50 = vadd.f32 %v5252_v45, %v5251_v53  ;;  %v5254_v24 = vpop.f32.mrb[42].mxu1  ;;  %v4799_v47 = vsel (!%p5180_p6), %vm724_vm1, %v4783_v0, 0.0 }
 0xb1f   : > { %v5255_v18 = vpop.f32.mrb[43].mxu1 }
 0xb20   : > { %v4776_v21 = vadd.f32 %v5253_v50, %v5163_v31  ;;  %v5256_v60 = vadd.f32 %v5255_v18, %v5254_v24  ;;  %4793 = sbr.rel (%p5180_p6) target bundleno = 3170 (0xc62), region = 88 }
 0xb21   : > { %4800 = vadd.xlane.f32.xlu0 (!%p5180_p6), %v4799_v47 }
 0xb22   : > { %v4784_v52 = vadd.f32 %v4776_v21, %v6817_v54  ;;  %v4779_v36 = vadd.f32 %v5256_v60, %v5163_v31 }
 0xb24   : > { %4788 = vst.msk [vmem:[#allocation2 + $0x10] sm:$0xff] %vm724_vm1, %v4784_v52  ;;  %v4785_v7 = vadd.f32 %v4779_v36, %v6825_v25  ;;  %v4802_v38 = vsel (!%p5180_p6), %vm724_vm1, %v4784_v52, 0.0 }
 0xb25   : > { %4803 = vadd.xlane.f32.xlu1 (!%p5180_p6), %v4802_v38 }
 0xb26   : > { %4789 = vst.msk [vmem:[#allocation2 + $0x18] sm:$0xff] %vm724_vm1, %v4785_v7  ;;  %v4805_v54 = vsel (!%p5180_p6), %vm724_vm1, %v4785_v7, 0.0 }
 0xb29   : > { %4806 = vadd.xlane.f32.xlu1 %v4805_v54 }
 0xbaa   : > { %v4798_v39 = vpop.xlane.xlu0 %4797 }
 0xbab   : > { %v4808_v25 = vmul.f32 0.015625, %v4798_v39 }
 0xbad   : > { %v4812_v19 = vsub.f32 %v4782_v40, %v4808_v25 }
 0xbae   : > { %v4801_v23 = vpop.xlane.xlu0 %4800 }
 0xbaf   : > { %v4809_v56 = vmul.f32 0.015625, %v4801_v23  ;;  %v4816_v43 = vmul.f32 %v4812_v19, %v4812_v19 }
 0xbb1   : > { %v4813_v8 = vsub.f32 %v4783_v0, %v4809_v56  ;;  %v4820_v2 = vsel %vm724_vm1, %v4816_v43, 0.0 }
 0xbb2   : > { %v4804_v9 = vpop.xlane.xlu1 %4803  ;;  %4821 = vadd.xlane.f32.xlu0 %v4820_v2 }
 0xbb3   : > { %v4810_v61 = vmul.f32 0.015625, %v4804_v9  ;;  %v4817_v12 = vmul.f32 %v4813_v8, %v4813_v8 }
 0xbb5   : > { %v4814_v41 = vsub.f32 %v4784_v52, %v4810_v61  ;;  %v4823_v59 = vsel %vm724_vm1, %v4817_v12, 0.0 }
 0xbb6   : > { %v4807_v11 = vpop.xlane.xlu1 %4806  ;;  %4824 = vadd.xlane.f32.xlu1 %v4823_v59 }
 0xbb7   : > { %v4811_v10 = vmul.f32 0.015625, %v4807_v11  ;;  %v4818_v63 = vmul.f32 %v4814_v41, %v4814_v41 }
 0xbb9   : > { %v4815_v30 = vsub.f32 %v4785_v7, %v4811_v10  ;;  %v4826_v4 = vsel %vm724_vm1, %v4818_v63, 0.0 }
 0xbba   : > { %4827 = vadd.xlane.f32.xlu0 %v4826_v4 }
 0xbbb   : > { %v4819_v57 = vmul.f32 %v4815_v30, %v4815_v30 }
 0xbbd   : > { %v4829_v14 = vsel %vm724_vm1, %v4819_v57, 0.0 }
 0xbbe   : > { %4830 = vadd.xlane.f32.xlu1 %v4829_v14 }
 0xc3f   : > { %v4822_v42 = vpop.xlane.xlu0 %4821 }
 0xc40   : > { %v4832_v33 = vmul.f32 0.015625, %v4822_v42 }
 0xc42   : > { %v4836_v3 = vadd.f32 1e-05, %v4832_v33 }
 0xc43   : > { %v4825_v1 = vpop.xlane.xlu1 %4824 }
 0xc44   : > { %5584 = vrsqrt.f32 %v4836_v3  ;;  %v4833_v58 = vmul.f32 0.015625, %v4825_v1 }
 0xc46   : > { %v4837_v28 = vadd.f32 1e-05, %v4833_v58 }
 0xc47   : > { %v4828_v22 = vpop.xlane.xlu0 %4827 }
 0xc48   : > { %v4834_v44 = vmul.f32 0.015625, %v4828_v22  ;;  %5586 = vrsqrt.f32 %v4837_v28 }
 0xc4a   : > { %v4838_v15 = vadd.f32 1e-05, %v4834_v44 }
 0xc4b   : > { %v4831_v62 = vpop.xlane.xlu1 %4830 }
 0xc4c   : > { %v4835_v17 = vmul.f32 0.015625, %v4831_v62  ;;  %5588 = vrsqrt.f32 %v4838_v15 }
 0xc4e   : > { %v4839_v13 = vadd.f32 1e-05, %v4835_v17  ;;  %v5585_v6 = vpop.eup %5584 }
 0xc4f   : > { %v4844_v34 = vmul.f32 %v5585_v6, %v4812_v19 }
 0xc50   : > { %5590 = vrsqrt.f32 %v4839_v13 }
 0xc51   : > { %v4854_v37 = vmul.f32 %v5181_v32, %v4844_v34 }
 0xc52   : > { %v5587_v16 = vpop.eup %5586 }
 0xc53   : > { %v4864_v20 = vadd.f32 %v5182_v51, %v4854_v37  ;;  %v4845_v31 = vmul.f32 %v5587_v16, %v4813_v8 }
 0xc55   : > { %4868 = vst.msk [vmem:[#allocation3] sm:$0xff] %vm724_vm1, %v4864_v20  ;;  %v4855_v29 = vmul.f32 %v5181_v32, %v4845_v31 }
 0xc56   : > { %v5589_v46 = vpop.eup %5588 }
 0xc57   : > { %v4846_v26 = vmul.f32 %v5589_v46, %v4814_v41  ;;  %v4865_v49 = vadd.f32 %v5182_v51, %v4855_v29 }
 0xc59   : > { %v4856_v35 = vmul.f32 %v5181_v32, %v4846_v26  ;;  %4869 = vst.msk [vmem:[#allocation3 + $0x8] sm:$0xff] %vm724_vm1, %v4865_v49 }
 0xc5a   : > { %v5591_v27 = vpop.eup %5590 }
 0xc5b   : > { %v4847_v5 = vmul.f32 %v5591_v27, %v4815_v30  ;;  %v4866_v40 = vadd.f32 %v5182_v51, %v4856_v35 }
 0xc5d   : > { %v4857_v55 = vmul.f32 %v5181_v32, %v4847_v5  ;;  %4870 = vst.msk [vmem:[#allocation3 + $0x10] sm:$0xff] %vm724_vm1, %v4866_v40 }
 0xc5f   : > { %v4867_v0 = vadd.f32 %v5182_v51, %v4857_v55 }
 0xc61   : > { %4871 = vst.msk [vmem:[#allocation3 + $0x18] sm:$0xff] %vm724_vm1, %v4867_v0 }
 0xc62 PF: > { %s6990_s14 = sld [smem:[#allocation7_spill]]  ;;  %s5658_s24 = smov [#allocation3]  }
 0xc63   : > { %s4882_s13 = sshll.u32 %s5658_s24, 4  ;;  %s4883_s13 = int_to_ptr.vmem [resolvable:$true] %s4882_s13 }
 0xc64   : > { %s5592_s28 = scalar_lea.vmem %s4883_s13, 512  ;;  %p5599_p11 = scmp.lt.s32.totalorder %s4883_s13, %s4883_s13 }
 0xc65   : > { %p5593_p8 = scmp.ne.s32.totalorder %s4883_s13, %s5592_s28  ;;  %p5600_p12 = scmp.lt.s32.totalorder %s5592_s28, %s5592_s28 }
 0xc67   : > { %p5601_p13 = por %p5600_p12, %p5599_p11 }
 0xc68   : > { %s6991_s21 = sadd.s32 4294967295, %s6990_s14  }
 0xc69   : > { %p6915_p7 = scmp.eq.s32.totalorder %s6991_s21, 1 }
 0xc6b   : > { %p5594_p9 = pnand %p5593_p8, %p6915_p7 }
 0xc6d   : > { %p5595_p10 = pneg %p5594_p9 }
 0xc6f   : > { %p5602_p0 = pnand %p5601_p13, %p5595_p10 }
 0xc71   : > { %5605 = shalt.err (!%p5602_p0)
}
 0xc72   : > { %s6993_s19 = sld [smem:[#allocation15_spill]] }
 0xc78   : > { %s6994_s29 = smov %s6993_s19  ;;  %s5606_s4 = scalar_lea.hbm %s6993_s19, 512 }
 0xc79   : > { %p5607_p1 = scmp.ne.s32.totalorder %s6994_s29, %s5606_s4  ;;  %p5612_p4 = scmp.lt.u32.totalorder %s5606_s4, %s6994_s29 }
 0xc7b   : > { %p5608_p2 = pnand %p5607_p1, %p6915_p7 }
 0xc7d   : > { %p5609_p3 = pneg %p5608_p2 }
 0xc7f   : > { %p5614_p5 = pnand %p5612_p4, %p5609_p3 }
 0xc81   : > { %5617 = shalt.err (!%p5614_p5)
}
 0xc82   : > { %s5659_s18 = smov 128   ;;  %s5660_s23 = smov 8  }
 0xc83   : > { %5366 = dma.vmem_to_hbm [thread:$0]  (%p6915_p7), %s4883_s13, 512, %s6994_s29, [#allocation4], %s5659_s18, %s5659_s18, %s5660_s23  }
 0xc84   : > { %5631 = dma.done.wait (%p6915_p7), [#allocation4], 512  }
 0xc85   : > { %5633 = vsyncadd (%p6915_p7), [#allocation4], 4294966784 }
 0xc86 PF: > { %s6995_s17 = sld [smem:[#allocation7_spill]]  ;;  %s6996_s18 = sld [smem:[#allocation6_spill]] }
 0xc87   : > { %s6997_s19 = sld [smem:[#allocation8_spill]] }
 0xc8c   : > { %s26_s20 = sadd.s32 1, %s6995_s17  }
 0xc8d   : > { %p23_p6 = scmp.ge.s32.totalorder %s26_s20, 4  }
 0xc8f   :  { %25 = sbr.rel (!%p23_p6) target bundleno = 9 (0x9), region = 152 }
 0xc96   :  { %4898 = vsyncpa [#allocation4], 1 }
 0xc97   :  { %4900 = vsyncpa [#allocation4 + $0x1], 1 }

</bundles_post_ra>
